<compile_context>
chip_gen: v5e
topology: v5e:2x2
jax: 0.10.0
libtpu: 0.0.40
codegen_flags: <defaults>
</compile_context>

<pallas_src>
import functools
import math

import numpy as np
import jax
import jax.numpy as jnp
from jax.experimental import pallas as pl
from jax.experimental.pallas import tpu as pltpu


_MATMUL_DTYPE = jnp.bfloat16          # MXU operand dtype; accumulation stays f32
_SQRT_2_OVER_PI = 0.7978845608028654


# -----------------------------------------------------------------------------
# In-kernel math helpers
# -----------------------------------------------------------------------------

def _gelu(x):
    # TODO(synk): torch nn.GELU defaults to exact erf; tanh approximation used here
    # (guaranteed Mosaic lowering). Max deviation ~1e-3.
    return 0.5 * x * (1.0 + jnp.tanh(_SQRT_2_OVER_PI * (x + 0.044715 * x * x * x)))


def _two_layer(h, w1_ref, b1_ref, w2_ref, b2_ref):
    """TwoLayerNN with BatchNorm folded: Linear -> GELU -> Linear, + input residual."""
    t = jnp.dot(h.astype(_MATMUL_DTYPE), w1_ref[...],
                preferred_element_type=jnp.float32) + b1_ref[...]
    t = _gelu(t)
    t = jnp.dot(t.astype(_MATMUL_DTYPE), w2_ref[...],
                preferred_element_type=jnp.float32) + b2_ref[...]
    return t + h


# -----------------------------------------------------------------------------
# Patch embedding: 6 x (Linear + folded BN) (+GELU) + pose add, one fused kernel
# -----------------------------------------------------------------------------

def _embed_kernel(x_ref, pose_ref, *refs, n_layers):
    o_ref = refs[-1]
    h = x_ref[...]                                        # (N, in_f) f32
    for i in range(n_layers):
        w = refs[2 * i][...]
        b = refs[2 * i + 1][...]
        h = jnp.dot(h.astype(_MATMUL_DTYPE), w, preferred_element_type=jnp.float32) + b
        if i < n_layers - 1:                              # final layer: BN only, no GELU
            h = _gelu(h)
    o_ref[...] = h + pose_ref[...]


def patch_embed_pallas(patches, pose, layers):
    """patches: (B*N, in_f) f32; pose: (N, of) f32; layers: [(w, b)] with BN folded."""
    m, in_f = patches.shape
    N, of = pose.shape
    B = m // N
    n_layers = len(layers)

    inputs = [patches, pose]
    in_specs = [pl.BlockSpec((N, in_f), lambda b: (b, 0)),
                pl.BlockSpec((N, of), lambda b: (0, 0))]
    for w, bia in layers:
        wq = jnp.asarray(w).astype(_MATMUL_DTYPE)
        br = jnp.asarray(bia, jnp.float32).reshape(1, -1)
        inputs += [wq, br]
        in_specs += [pl.BlockSpec(wq.shape, lambda b: (0, 0)),
                     pl.BlockSpec(br.shape, lambda b: (0, 0))]

    return pl.pallas_call(
        functools.partial(_embed_kernel, n_layers=n_layers),
        out_shape=jax.ShapeDtypeStruct((m, of), jnp.float32),
        grid_spec=pltpu.PrefetchScalarGridSpec(
            num_scalar_prefetch=0,
            grid=(B,),                                    # >=2 parallel steps (v7x 2 TCs)
            in_specs=in_specs,
            out_specs=pl.BlockSpec((N, of), lambda b: (b, 0)),
        ),
        compiler_params=pltpu.CompilerParams(dimension_semantics=("parallel",)),
    )(*inputs)


# -----------------------------------------------------------------------------
# Whole ViG block as a single kernel (grid over batch)
# -----------------------------------------------------------------------------

def _vig_block_kernel(x_ref, *refs, k):
    (w_i1a, b_i1a, w_i1b, b_i1b,
     w_fc, b_fc,
     w_o1a, b_o1a, w_o1b, b_o1b,
     w_i2a, b_i2a, w_i2b, b_i2b,
     w_o2a, b_o2a, w_o2b, b_o2b,
     o_ref) = refs

    x = x_ref[0]                                          # (N, C) f32
    N = x.shape[0]

    # ---- in_layer1 (TwoLayerNN) ----
    h = _two_layer(x, w_i1a, b_i1a, w_i1b, b_i1b)         # (N, C)

    # ---- graph construction + neighbour gather, all in-kernel ----
    # sim in f32 so neighbour selection matches an f32 reference exactly.
    sim = jax.lax.dot_general(x, x, (((1,), (1,)), ((), ())),
                              preferred_element_type=jnp.float32)          # (N, N)
    col = jax.lax.broadcasted_iota(jnp.int32, (N, N), 1).astype(jnp.float32)
    work = sim
    neigh = jnp.full(h.shape, -jnp.inf, jnp.float32)
    for _ in range(k):                                    # exact top-k, k tiny (static)
        row_max = jnp.max(work, axis=1, keepdims=True)                     # (N, 1)
        is_max = work >= row_max
        first = jnp.min(jnp.where(is_max, col, float(N)), axis=1, keepdims=True)
        sel = (col == first)                              # exactly one True per row
        # one-hot @ h == gather of the selected neighbour's features (exact in f32)
        picked = jnp.dot(sel.astype(jnp.float32), h, preferred_element_type=jnp.float32)
        neigh = jnp.maximum(neigh, picked)
        work = jnp.where(sel, -jnp.inf, work)
    agg = neigh - h                                       # amax_k(neighbour - center)

    # ---- multi_head_fc (head_num=1) on concat([h, agg]) ----
    # torch stacks interleaved; the fc weight rows were permuted host-side so a
    # lane-contiguous concat is bit-equivalent.
    st = jnp.concatenate([h, agg], axis=-1)               # (N, 2C)
    g = _gelu(jnp.dot(st.astype(_MATMUL_DTYPE), w_fc[...],
                      preferred_element_type=jnp.float32) + b_fc[...])

    x1 = _two_layer(g, w_o1a, b_o1a, w_o1b, b_o1b) + x    # out_layer1 + shortcut
    a = _two_layer(x1, w_i2a, b_i2a, w_i2b, b_i2b)        # in_layer2
    out = _two_layer(_gelu(a), w_o2a, b_o2a, w_o2b, b_o2b) + x1   # out_layer2 + residual
    o_ref[0] = out


def _tl_flat(tl):
    (w1, b1), (w2, b2) = tl
    return [w1, b1, w2, b2]


def vig_block_pallas(x, prm, k):
    B, N, C = x.shape
    wlist = (_tl_flat(prm["in1"]) + [prm["fc"][0], prm["fc"][1]]
             + _tl_flat(prm["out1"]) + _tl_flat(prm["in2"]) + _tl_flat(prm["out2"]))

    inputs = [x]
    in_specs = [pl.BlockSpec((1, N, C), lambda b: (b, 0, 0))]
    for i, a in enumerate(wlist):
        if i % 2 == 0:                                    # weight matrix
            a = jnp.asarray(a).astype(_MATMUL_DTYPE)
        else:                                             # bias row vector
            a = jnp.asarray(a, jnp.float32).reshape(1, -1)
        inputs.append(a)
        in_specs.append(pl.BlockSpec(a.shape, lambda b: (0, 0)))

    return pl.pallas_call(
        functools.partial(_vig_block_kernel, k=k),
        out_shape=jax.ShapeDtypeStruct((B, N, C), jnp.float32),
        grid_spec=pltpu.PrefetchScalarGridSpec(
            num_scalar_prefetch=0,
            grid=(B,),
            in_specs=in_specs,
            out_specs=pl.BlockSpec((1, N, C), lambda b: (b, 0, 0)),
        ),
        compiler_params=pltpu.CompilerParams(dimension_semantics=("parallel",)),
    )(*inputs)


# -----------------------------------------------------------------------------
# Fused head: predictor + separable bilinear upsample + sigmoid + final conv
# -----------------------------------------------------------------------------

def _head_kernel(feats_ref, img_ref, w1_ref, b1_ref, w2_ref, b2_ref, w3_ref, b3_ref,
                 e1_ref, r_ref, wf_ref, bf_ref, o_ref, *, p, img, n_cls, c_in):
    fb = feats_ref[0]                                     # (N, p*p) f32

    # predictor: three 1x1 convs (BN2d folded); channels on rows, spatial p*p on lanes
    h = jnp.dot(w1_ref[...], fb.astype(_MATMUL_DTYPE),
                preferred_element_type=jnp.float32) + b1_ref[...]
    h = jnp.maximum(h, 0.0)
    h = jnp.dot(w2_ref[...], h.astype(_MATMUL_DTYPE),
                preferred_element_type=jnp.float32) + b2_ref[...]
    h = jnp.maximum(h, 0.0)
    h = jnp.dot(w3_ref[...], h.astype(_MATMUL_DTYPE),
                preferred_element_type=jnp.float32) + b3_ref[...]          # (n_cls, p*p)

    # Separable form of the composed bilinear x2 chain (replaces the dense Kronecker
    # matrix):  stage 1 contracts the column index via kron(I_p, R^T); stage 2 is p
    # rank-1 row updates per class (pure VPU broadcast-MACs).
    a_flat = jnp.dot(h, e1_ref[...], preferred_element_type=jnp.float32)   # (n_cls, p*img)
    r = r_ref[...]                                                         # (img, p)

    sig_up = []
    for c in range(n_cls):
        acc = jnp.zeros((img, img), jnp.float32)
        for a in range(p):
            acc = acc + r[:, a:a + 1] * a_flat[c:c + 1, a * img:(a + 1) * img]
        sig_up.append(jax.nn.sigmoid(acc))

    # final 1x1 conv over cat([sigmoid(upsampled), raw image]) + sigmoid, in vregs
    wf = wf_ref[...]                                      # (n_cls, n_cls + c_in)
    bf = bf_ref[...]                                      # (n_cls, 1)
    imgs = img_ref[0]                                     # (c_in, img, img)
    outs = []
    for o in range(n_cls):
        y = jnp.zeros((img, img), jnp.float32)
        for c in range(n_cls):
            y = y + wf[o:o + 1, c:c + 1] * sig_up[c]
        for ci in range(c_in):
            y = y + wf[o:o + 1, n_cls + ci:n_cls + ci + 1] * imgs[ci]
        outs.append(jax.nn.sigmoid(y + bf[o:o + 1, 0:1]))
    o_ref[0] = jnp.stack(outs, axis=0)


def head_pallas(feats, x_img, hd, *, p, img):
    B, N, PP = feats.shape
    n_cls = hd["w3"].shape[0]
    c_in = x_img.shape[1]

    inputs = [feats, x_img,
              hd["w1"].astype(_MATMUL_DTYPE), hd["b1"],
              hd["w2"].astype(_MATMUL_DTYPE), hd["b2"],
              hd["w3"].astype(_MATMUL_DTYPE), hd["b3"],
              hd["e1"], hd["r"], hd["wf"], hd["bf"]]
    in_specs = [pl.BlockSpec((1, N, PP), lambda b: (b, 0, 0)),
                pl.BlockSpec((1, c_in, img, img), lambda b: (b, 0, 0, 0))]
    for a in inputs[2:]:
        in_specs.append(pl.BlockSpec(a.shape, lambda b, nd=a.ndim: (0,) * nd))

    kernel = functools.partial(_head_kernel, p=p, img=img, n_cls=n_cls, c_in=c_in)
    return pl.pallas_call(
        kernel,
        out_shape=jax.ShapeDtypeStruct((B, n_cls, img, img), jnp.float32),
        grid_spec=pltpu.PrefetchScalarGridSpec(
            num_scalar_prefetch=0,
            grid=(B,),
            in_specs=in_specs,
            out_specs=pl.BlockSpec((1, n_cls, img, img), lambda b: (b, 0, 0, 0)),
        ),
        compiler_params=pltpu.CompilerParams(dimension_semantics=("parallel",)),
    )(feats, x_img, *inputs[2:])


# -----------------------------------------------------------------------------
# Host-side glue / constant construction
# -----------------------------------------------------------------------------

def patchify(x, p):
    """(B, C, H, W) -> (B*N, C*p*p), matching SimplePatchifier + view(B*N, -1)."""
    B, C, H, W = x.shape
    x = x.reshape(B, C, H // p, p, W // p, p)
    x = x.transpose(0, 2, 4, 1, 3, 5)                     # (B, H/p, W/p, C, p, p)
    return x.reshape(B * (H // p) * (W // p), C * p * p)


def _bilinear_matrix(in_size, out_size):
    """1-D matrix matching F.interpolate(mode='bilinear', align_corners=False)."""
    R = np.zeros((out_size, in_size), np.float64)
    for o in range(out_size):
        src = max((o + 0.5) * (in_size / out_size) - 0.5, 0.0)
        i0 = min(int(np.floor(src)), in_size - 1)
        i1 = min(i0 + 1, in_size - 1)
        frac = src - i0
        R[o, i0] += 1.0 - frac
        R[o, i1] += frac
    return R


def _upsample_matrix(p, img_size):
    """Composition of the repeated x2 bilinear levels: (img_size, p)."""
    size, R = p, np.eye(p, dtype=np.float64)
    for i in range(int(math.log2(img_size / p))):
        ts = p << 1 << i
        R = _bilinear_matrix(size, ts) @ R
        size = ts
    return R.astype(np.float32)


# -----------------------------------------------------------------------------
# Model forward
# -----------------------------------------------------------------------------

def vigseg_forward(params, x_img, cfg):
    p = cfg["patch_size"]
    k = cfg["num_edges"]
    img = cfg["img_size"]
    B = x_img.shape[0]
    N, of = params["pose_embedding"].shape

    # ---- backbone (VGNN) ----
    patches = patchify(x_img, p)                                      # layout glue only
    feats = patch_embed_pallas(patches, params["pose_embedding"],
                               params["patch_embedding"])             # (B*N, of)
    feats = feats.reshape(B, N, of)
    for blk in params["blocks"]:
        feats = vig_block_pallas(feats, blk, k)                       # 1 call / block

    # ---- fused head ----
    return head_pallas(feats, x_img, params["head"], p=p, img=img)    # (B, n_cls, img, img)


# -----------------------------------------------------------------------------
# Deterministic parameter init (synthetic; BN folded to the linear weights, eval)
# -----------------------------------------------------------------------------

def _lin_init(key, fan_in, fan_out):
    kw, kb = jax.random.split(key)
    lim = 1.0 / math.sqrt(fan_in)
    w = jax.random.uniform(kw, (fan_in, fan_out), jnp.float32, -lim, lim)
    b = jax.random.uniform(kb, (fan_out,), jnp.float32, -lim, lim)
    return w, b


def _bn_init(key, feat, eps=1e-5):
    k1, k2, k3, k4 = jax.random.split(key, 4)
    gamma = 1.0 + 0.1 * jax.random.normal(k1, (feat,), jnp.float32)
    beta = 0.1 * jax.random.normal(k2, (feat,), jnp.float32)
    mean = 0.1 * jax.random.normal(k3, (feat,), jnp.float32)
    var = 0.5 + jnp.abs(jax.random.normal(k4, (feat,), jnp.float32)) * 0.5
    scale = gamma / jnp.sqrt(var + eps)
    shift = beta - mean * scale
    return scale, shift


def _folded_lin_bn(key, fan_in, fan_out):
    k1, k2 = jax.random.split(key)
    w, b = _lin_init(k1, fan_in, fan_out)
    sc, sh = _bn_init(k2, fan_out)
    return w * sc[None, :], b * sc + sh


def _two_layer_params(key, in_f, hidden):
    k1, k2 = jax.random.split(key)
    return (_folded_lin_bn(k1, in_f, hidden), _lin_init(k2, hidden, in_f))


def _fc_params(key, c):
    # multi_head_fc (Conv1d, head_num=1): torch consumes the interleaved
    # stack([h, agg], -1) vector; the kernel uses concat([h, agg]), so permute the
    # weight rows once here (free, bit-equivalent).
    w_int, b = _lin_init(key, 2 * c, c)
    w_cat = jnp.concatenate([w_int[0::2], w_int[1::2]], axis=0)
    return w_cat, b


def init_params(key, cfg):
    p = cfg["patch_size"]
    of = p * p
    in_features = cfg["num_channels"] * p * p
    img = cfg["img_size"]
    N = (img // p) ** 2
    n_cls = cfg["n_classes"]
    c_in = cfg["num_channels"]

    keys = list(jax.random.split(key, 128))
    it = iter(keys)
    nxt = lambda: next(it)

    # patch embedding: 6 x (Linear + BN), GELU after the first 5 (BN folded)
    dims = [in_features, of // 2, of // 4, of // 8, of // 4, of // 2, of]
    pe = [_folded_lin_bn(nxt(), a, b) for a, b in zip(dims[:-1], dims[1:])]

    pose = jax.random.uniform(nxt(), (N, of), jnp.float32)

    blocks = []
    for _ in range(cfg["num_vig_blocks"]):
        blocks.append(dict(
            in1=_two_layer_params(nxt(), of, of),
            out1=_two_layer_params(nxt(), of, of),
            in2=_two_layer_params(nxt(), of, 4 * of),
            out2=_two_layer_params(nxt(), of, 4 * of),
            # TODO(synk): multi_head_fc grouped Conv1d implemented for head_num=1 only.
            fc=_fc_params(nxt(), of),
        ))

    # head: predictor 1x1 convs (BN2d folded; torch hard-codes 1024 input channels,
    # parameterised here by the actual patch count N), separable upsample, final conv.
    w1, b1 = _lin_init(nxt(), N, 256)
    sc1, sh1 = _bn_init(nxt(), 256)
    w2, b2 = _lin_init(nxt(), 256, 64)
    sc2, sh2 = _bn_init(nxt(), 64)
    w3, b3 = _lin_init(nxt(), 64, n_cls)
    # TODO(synk): torch's final Conv2d(n_classes*2, n_classes) only type-checks when
    # num_channels == n_classes; generalised here to fan-in (n_classes + num_channels).
    wf, bf = _lin_init(nxt(), n_cls + c_in, n_cls)

    R = _upsample_matrix(p, img)                           # (img, p)
    E1 = np.kron(np.eye(p, dtype=np.float32), R.T)         # (p*p, p*img) column-upsample

    head = dict(
        w1=(w1 * sc1[None, :]).T, b1=(b1 * sc1 + sh1).reshape(-1, 1),
        w2=(w2 * sc2[None, :]).T, b2=(b2 * sc2 + sh2).reshape(-1, 1),
        w3=w3.T, b3=b3.reshape(-1, 1),
        e1=jnp.asarray(E1, jnp.float32),
        r=jnp.asarray(R, jnp.float32),
        wf=wf.T, bf=bf.reshape(-1, 1),
    )
    return dict(patch_embedding=pe, pose_embedding=pose, blocks=blocks, head=head)


# -----------------------------------------------------------------------------

if __name__ == "__main__":
    cfg = dict(num_channels=1, img_size=32, patch_size=8,
               num_vig_blocks=2, num_edges=4, head_num=1, n_classes=1)

    key = jax.random.PRNGKey(0)
    pkey, xkey = jax.random.split(key)
    params = init_params(pkey, cfg)
    x = jax.random.normal(
        xkey, (2, cfg["num_channels"], cfg["img_size"], cfg["img_size"]), jnp.float32)

    fwd = jax.jit(functools.partial(vigseg_forward, cfg=cfg))
    out = fwd(params, x)
    jax.block_until_ready(out)

    assert out.shape == (2, cfg["n_classes"], cfg["img_size"], cfg["img_size"]), out.shape
    assert bool(jnp.all(jnp.isfinite(out)))
    print("KERNEL_OK")
</pallas_src>

<mosaic_0001>
module attributes {stable_mosaic.version = 11 : i64} {
  func.func @_embed_kernel(%arg0: i32, %arg1: memref<16x64xf32, #tpu.memory_space<vmem>>, %arg2: memref<16x64xf32, #tpu.memory_space<vmem>>, %arg3: memref<64x32xbf16, #tpu.memory_space<vmem>>, %arg4: memref<1x32xf32, #tpu.memory_space<vmem>>, %arg5: memref<32x16xbf16, #tpu.memory_space<vmem>>, %arg6: memref<1x16xf32, #tpu.memory_space<vmem>>, %arg7: memref<16x8xbf16, #tpu.memory_space<vmem>>, %arg8: memref<1x8xf32, #tpu.memory_space<vmem>>, %arg9: memref<8x16xbf16, #tpu.memory_space<vmem>>, %arg10: memref<1x16xf32, #tpu.memory_space<vmem>>, %arg11: memref<16x32xbf16, #tpu.memory_space<vmem>>, %arg12: memref<1x32xf32, #tpu.memory_space<vmem>>, %arg13: memref<32x64xbf16, #tpu.memory_space<vmem>>, %arg14: memref<1x64xf32, #tpu.memory_space<vmem>>, %arg15: memref<16x64xf32, #tpu.memory_space<vmem>>) attributes {dimension_semantics = [#tpu.dimension_semantics<parallel>], iteration_bounds = array<i64: 2>, scalar_prefetch = 0 : i64, scratch_operands = 0 : i64, tpu.core_type = #tpu.core_type<tc>, window_params = [{transform_indices = @transform_0, window_bounds = array<i64: 16, 64>}, {pipeline_mode = #tpu.pipeline_mode<synchronous>, transform_indices = @transform_1, window_bounds = array<i64: 16, 64>}, {pipeline_mode = #tpu.pipeline_mode<synchronous>, transform_indices = @transform_2, window_bounds = array<i64: 64, 32>}, {pipeline_mode = #tpu.pipeline_mode<synchronous>, transform_indices = @transform_3, window_bounds = array<i64: 1, 32>}, {pipeline_mode = #tpu.pipeline_mode<synchronous>, transform_indices = @transform_4, window_bounds = array<i64: 32, 16>}, {pipeline_mode = #tpu.pipeline_mode<synchronous>, transform_indices = @transform_5, window_bounds = array<i64: 1, 16>}, {pipeline_mode = #tpu.pipeline_mode<synchronous>, transform_indices = @transform_6, window_bounds = array<i64: 16, 8>}, {pipeline_mode = #tpu.pipeline_mode<synchronous>, transform_indices = @transform_7, window_bounds = array<i64: 1, 8>}, {pipeline_mode = #tpu.pipeline_mode<synchronous>, transform_indices = @transform_8, window_bounds = array<i64: 8, 16>}, {pipeline_mode = #tpu.pipeline_mode<synchronous>, transform_indices = @transform_9, window_bounds = array<i64: 1, 16>}, {pipeline_mode = #tpu.pipeline_mode<synchronous>, transform_indices = @transform_10, window_bounds = array<i64: 16, 32>}, {pipeline_mode = #tpu.pipeline_mode<synchronous>, transform_indices = @transform_11, window_bounds = array<i64: 1, 32>}, {pipeline_mode = #tpu.pipeline_mode<synchronous>, transform_indices = @transform_12, window_bounds = array<i64: 32, 64>}, {pipeline_mode = #tpu.pipeline_mode<synchronous>, transform_indices = @transform_13, window_bounds = array<i64: 1, 64>}, {transform_indices = @transform_14, window_bounds = array<i64: 16, 64>}]} {
    %c0 = arith.constant 0 : index
    %c0_0 = arith.constant 0 : index
    %0 = vector.load %arg1[%c0, %c0_0] : memref<16x64xf32, #tpu.memory_space<vmem>>, vector<16x64xf32>
    %c0_1 = arith.constant 0 : index
    %c0_2 = arith.constant 0 : index
    %1 = vector.load %arg3[%c0_1, %c0_2] : memref<64x32xbf16, #tpu.memory_space<vmem>>, vector<64x32xbf16>
    %c0_3 = arith.constant 0 : index
    %c0_4 = arith.constant 0 : index
    %2 = vector.load %arg4[%c0_3, %c0_4] : memref<1x32xf32, #tpu.memory_space<vmem>>, vector<1x32xf32>
    %3 = arith.truncf %0 : vector<16x64xf32> to vector<16x64xbf16>
    %cst = arith.constant dense<0.000000e+00> : vector<16x32xf32>
    %4 = tpu.matmul %3, %1, %cst {dimension_numbers = #tpu.dot_dimension_numbers<[1], [0], [0], [1], [0, 0, 1, 1], [], []>} : vector<16x64xbf16>, vector<64x32xbf16>, vector<16x32xf32> -> vector<16x32xf32>
    %5 = vector.broadcast %2 : vector<1x32xf32> to vector<16x32xf32>
    %6 = arith.addf %4, %5 : vector<16x32xf32>
    %cst_5 = arith.constant 5.000000e-01 : f32
    %7 = vector.broadcast %cst_5 : f32 to vector<16x32xf32>
    %8 = arith.mulf %7, %6 : vector<16x32xf32>
    %cst_6 = arith.constant 4.471500e-02 : f32
    %9 = vector.broadcast %cst_6 : f32 to vector<16x32xf32>
    %10 = arith.mulf %9, %6 : vector<16x32xf32>
    %11 = arith.mulf %10, %6 : vector<16x32xf32>
    %12 = arith.mulf %11, %6 : vector<16x32xf32>
    %13 = arith.addf %6, %12 : vector<16x32xf32>
    %cst_7 = arith.constant 0.797884583 : f32
    %14 = vector.broadcast %cst_7 : f32 to vector<16x32xf32>
    %15 = arith.mulf %14, %13 : vector<16x32xf32>
    %16 = math.tanh %15 : vector<16x32xf32>
    %cst_8 = arith.constant 1.000000e+00 : f32
    %17 = vector.broadcast %cst_8 : f32 to vector<16x32xf32>
    %18 = arith.addf %17, %16 : vector<16x32xf32>
    %19 = arith.mulf %8, %18 : vector<16x32xf32>
    %c0_9 = arith.constant 0 : index
    %c0_10 = arith.constant 0 : index
    %20 = vector.load %arg5[%c0_9, %c0_10] : memref<32x16xbf16, #tpu.memory_space<vmem>>, vector<32x16xbf16>
    %c0_11 = arith.constant 0 : index
    %c0_12 = arith.constant 0 : index
    %21 = vector.load %arg6[%c0_11, %c0_12] : memref<1x16xf32, #tpu.memory_space<vmem>>, vector<1x16xf32>
    %22 = arith.truncf %19 : vector<16x32xf32> to vector<16x32xbf16>
    %cst_13 = arith.constant dense<0.000000e+00> : vector<16x16xf32>
    %23 = tpu.matmul %22, %20, %cst_13 {dimension_numbers = #tpu.dot_dimension_numbers<[1], [0], [0], [1], [0, 0, 1, 1], [], []>} : vector<16x32xbf16>, vector<32x16xbf16>, vector<16x16xf32> -> vector<16x16xf32>
    %24 = vector.broadcast %21 : vector<1x16xf32> to vector<16x16xf32>
    %25 = arith.addf %23, %24 : vector<16x16xf32>
    %cst_14 = arith.constant 5.000000e-01 : f32
    %26 = vector.broadcast %cst_14 : f32 to vector<16x16xf32>
    %27 = arith.mulf %26, %25 : vector<16x16xf32>
    %cst_15 = arith.constant 4.471500e-02 : f32
    %28 = vector.broadcast %cst_15 : f32 to vector<16x16xf32>
    %29 = arith.mulf %28, %25 : vector<16x16xf32>
    %30 = arith.mulf %29, %25 : vector<16x16xf32>
    %31 = arith.mulf %30, %25 : vector<16x16xf32>
    %32 = arith.addf %25, %31 : vector<16x16xf32>
    %cst_16 = arith.constant 0.797884583 : f32
    %33 = vector.broadcast %cst_16 : f32 to vector<16x16xf32>
    %34 = arith.mulf %33, %32 : vector<16x16xf32>
    %35 = math.tanh %34 : vector<16x16xf32>
    %cst_17 = arith.constant 1.000000e+00 : f32
    %36 = vector.broadcast %cst_17 : f32 to vector<16x16xf32>
    %37 = arith.addf %36, %35 : vector<16x16xf32>
    %38 = arith.mulf %27, %37 : vector<16x16xf32>
    %c0_18 = arith.constant 0 : index
    %c0_19 = arith.constant 0 : index
    %39 = vector.load %arg7[%c0_18, %c0_19] : memref<16x8xbf16, #tpu.memory_space<vmem>>, vector<16x8xbf16>
    %c0_20 = arith.constant 0 : index
    %c0_21 = arith.constant 0 : index
    %40 = vector.load %arg8[%c0_20, %c0_21] : memref<1x8xf32, #tpu.memory_space<vmem>>, vector<1x8xf32>
    %41 = arith.truncf %38 : vector<16x16xf32> to vector<16x16xbf16>
    %cst_22 = arith.constant dense<0.000000e+00> : vector<16x8xf32>
    %42 = tpu.matmul %41, %39, %cst_22 {dimension_numbers = #tpu.dot_dimension_numbers<[1], [0], [0], [1], [0, 0, 1, 1], [], []>} : vector<16x16xbf16>, vector<16x8xbf16>, vector<16x8xf32> -> vector<16x8xf32>
    %43 = vector.broadcast %40 : vector<1x8xf32> to vector<16x8xf32>
    %44 = arith.addf %42, %43 : vector<16x8xf32>
    %cst_23 = arith.constant 5.000000e-01 : f32
    %45 = vector.broadcast %cst_23 : f32 to vector<16x8xf32>
    %46 = arith.mulf %45, %44 : vector<16x8xf32>
    %cst_24 = arith.constant 4.471500e-02 : f32
    %47 = vector.broadcast %cst_24 : f32 to vector<16x8xf32>
    %48 = arith.mulf %47, %44 : vector<16x8xf32>
    %49 = arith.mulf %48, %44 : vector<16x8xf32>
    %50 = arith.mulf %49, %44 : vector<16x8xf32>
    %51 = arith.addf %44, %50 : vector<16x8xf32>
    %cst_25 = arith.constant 0.797884583 : f32
    %52 = vector.broadcast %cst_25 : f32 to vector<16x8xf32>
    %53 = arith.mulf %52, %51 : vector<16x8xf32>
    %54 = math.tanh %53 : vector<16x8xf32>
    %cst_26 = arith.constant 1.000000e+00 : f32
    %55 = vector.broadcast %cst_26 : f32 to vector<16x8xf32>
    %56 = arith.addf %55, %54 : vector<16x8xf32>
    %57 = arith.mulf %46, %56 : vector<16x8xf32>
    %c0_27 = arith.constant 0 : index
    %c0_28 = arith.constant 0 : index
    %58 = vector.load %arg9[%c0_27, %c0_28] : memref<8x16xbf16, #tpu.memory_space<vmem>>, vector<8x16xbf16>
    %c0_29 = arith.constant 0 : index
    %c0_30 = arith.constant 0 : index
    %59 = vector.load %arg10[%c0_29, %c0_30] : memref<1x16xf32, #tpu.memory_space<vmem>>, vector<1x16xf32>
    %60 = arith.truncf %57 : vector<16x8xf32> to vector<16x8xbf16>
    %cst_31 = arith.constant dense<0.000000e+00> : vector<16x16xf32>
    %61 = tpu.matmul %60, %58, %cst_31 {dimension_numbers = #tpu.dot_dimension_numbers<[1], [0], [0], [1], [0, 0, 1, 1], [], []>} : vector<16x8xbf16>, vector<8x16xbf16>, vector<16x16xf32> -> vector<16x16xf32>
    %62 = vector.broadcast %59 : vector<1x16xf32> to vector<16x16xf32>
    %63 = arith.addf %61, %62 : vector<16x16xf32>
    %cst_32 = arith.constant 5.000000e-01 : f32
    %64 = vector.broadcast %cst_32 : f32 to vector<16x16xf32>
    %65 = arith.mulf %64, %63 : vector<16x16xf32>
    %cst_33 = arith.constant 4.471500e-02 : f32
    %66 = vector.broadcast %cst_33 : f32 to vector<16x16xf32>
    %67 = arith.mulf %66, %63 : vector<16x16xf32>
    %68 = arith.mulf %67, %63 : vector<16x16xf32>
    %69 = arith.mulf %68, %63 : vector<16x16xf32>
    %70 = arith.addf %63, %69 : vector<16x16xf32>
    %cst_34 = arith.constant 0.797884583 : f32
    %71 = vector.broadcast %cst_34 : f32 to vector<16x16xf32>
    %72 = arith.mulf %71, %70 : vector<16x16xf32>
    %73 = math.tanh %72 : vector<16x16xf32>
    %cst_35 = arith.constant 1.000000e+00 : f32
    %74 = vector.broadcast %cst_35 : f32 to vector<16x16xf32>
    %75 = arith.addf %74, %73 : vector<16x16xf32>
    %76 = arith.mulf %65, %75 : vector<16x16xf32>
    %c0_36 = arith.constant 0 : index
    %c0_37 = arith.constant 0 : index
    %77 = vector.load %arg11[%c0_36, %c0_37] : memref<16x32xbf16, #tpu.memory_space<vmem>>, vector<16x32xbf16>
    %c0_38 = arith.constant 0 : index
    %c0_39 = arith.constant 0 : index
    %78 = vector.load %arg12[%c0_38, %c0_39] : memref<1x32xf32, #tpu.memory_space<vmem>>, vector<1x32xf32>
    %79 = arith.truncf %76 : vector<16x16xf32> to vector<16x16xbf16>
    %cst_40 = arith.constant dense<0.000000e+00> : vector<16x32xf32>
    %80 = tpu.matmul %79, %77, %cst_40 {dimension_numbers = #tpu.dot_dimension_numbers<[1], [0], [0], [1], [0, 0, 1, 1], [], []>} : vector<16x16xbf16>, vector<16x32xbf16>, vector<16x32xf32> -> vector<16x32xf32>
    %81 = vector.broadcast %78 : vector<1x32xf32> to vector<16x32xf32>
    %82 = arith.addf %80, %81 : vector<16x32xf32>
    %cst_41 = arith.constant 5.000000e-01 : f32
    %83 = vector.broadcast %cst_41 : f32 to vector<16x32xf32>
    %84 = arith.mulf %83, %82 : vector<16x32xf32>
    %cst_42 = arith.constant 4.471500e-02 : f32
    %85 = vector.broadcast %cst_42 : f32 to vector<16x32xf32>
    %86 = arith.mulf %85, %82 : vector<16x32xf32>
    %87 = arith.mulf %86, %82 : vector<16x32xf32>
    %88 = arith.mulf %87, %82 : vector<16x32xf32>
    %89 = arith.addf %82, %88 : vector<16x32xf32>
    %cst_43 = arith.constant 0.797884583 : f32
    %90 = vector.broadcast %cst_43 : f32 to vector<16x32xf32>
    %91 = arith.mulf %90, %89 : vector<16x32xf32>
    %92 = math.tanh %91 : vector<16x32xf32>
    %cst_44 = arith.constant 1.000000e+00 : f32
    %93 = vector.broadcast %cst_44 : f32 to vector<16x32xf32>
    %94 = arith.addf %93, %92 : vector<16x32xf32>
    %95 = arith.mulf %84, %94 : vector<16x32xf32>
    %c0_45 = arith.constant 0 : index
    %c0_46 = arith.constant 0 : index
    %96 = vector.load %arg13[%c0_45, %c0_46] : memref<32x64xbf16, #tpu.memory_space<vmem>>, vector<32x64xbf16>
    %c0_47 = arith.constant 0 : index
    %c0_48 = arith.constant 0 : index
    %97 = vector.load %arg14[%c0_47, %c0_48] : memref<1x64xf32, #tpu.memory_space<vmem>>, vector<1x64xf32>
    %98 = arith.truncf %95 : vector<16x32xf32> to vector<16x32xbf16>
    %cst_49 = arith.constant dense<0.000000e+00> : vector<16x64xf32>
    %99 = tpu.matmul %98, %96, %cst_49 {dimension_numbers = #tpu.dot_dimension_numbers<[1], [0], [0], [1], [0, 0, 1, 1], [], []>} : vector<16x32xbf16>, vector<32x64xbf16>, vector<16x64xf32> -> vector<16x64xf32>
    %100 = vector.broadcast %97 : vector<1x64xf32> to vector<16x64xf32>
    %101 = arith.addf %99, %100 : vector<16x64xf32>
    %c0_50 = arith.constant 0 : index
    %c0_51 = arith.constant 0 : index
    %102 = vector.load %arg2[%c0_50, %c0_51] : memref<16x64xf32, #tpu.memory_space<vmem>>, vector<16x64xf32>
    %103 = arith.addf %101, %102 : vector<16x64xf32>
    %c0_52 = arith.constant 0 : index
    %c0_53 = arith.constant 0 : index
    %104 = vector.load %arg15[%c0_52, %c0_53] : memref<16x64xf32, #tpu.memory_space<vmem>>, vector<16x64xf32>
    tpu.vector_store %arg15[%c0_52, %c0_53], %103 {strides = array<i32>} : memref<16x64xf32, #tpu.memory_space<vmem>>, vector<16x64xf32>,
    return
  }
  func.func @transform_0(%arg0: i32) -> (i32, i32) {
    %c0_i32 = arith.constant 0 : i32
    %c0_i32_0 = arith.constant 0 : i32
    return %arg0, %c0_i32 : i32, i32
  }
  func.func @transform_1(%arg0: i32) -> (i32, i32) {
    %c0_i32 = arith.constant 0 : i32
    %c0_i32_0 = arith.constant 0 : i32
    %c0_i32_1 = arith.constant 0 : i32
    return %c0_i32, %c0_i32_0 : i32, i32
  }
  func.func @transform_2(%arg0: i32) -> (i32, i32) {
    %c0_i32 = arith.constant 0 : i32
    %c0_i32_0 = arith.constant 0 : i32
    %c0_i32_1 = arith.constant 0 : i32
    return %c0_i32, %c0_i32_0 : i32, i32
  }
  func.func @transform_3(%arg0: i32) -> (i32, i32) {
    %c0_i32 = arith.constant 0 : i32
    %c0_i32_0 = arith.constant 0 : i32
    %c0_i32_1 = arith.constant 0 : i32
    return %c0_i32, %c0_i32_0 : i32, i32
  }
  func.func @transform_4(%arg0: i32) -> (i32, i32) {
    %c0_i32 = arith.constant 0 : i32
    %c0_i32_0 = arith.constant 0 : i32
    %c0_i32_1 = arith.constant 0 : i32
    return %c0_i32, %c0_i32_0 : i32, i32
  }
  func.func @transform_5(%arg0: i32) -> (i32, i32) {
    %c0_i32 = arith.constant 0 : i32
    %c0_i32_0 = arith.constant 0 : i32
    %c0_i32_1 = arith.constant 0 : i32
    return %c0_i32, %c0_i32_0 : i32, i32
  }
  func.func @transform_6(%arg0: i32) -> (i32, i32) {
    %c0_i32 = arith.constant 0 : i32
    %c0_i32_0 = arith.constant 0 : i32
    %c0_i32_1 = arith.constant 0 : i32
    return %c0_i32, %c0_i32_0 : i32, i32
  }
  func.func @transform_7(%arg0: i32) -> (i32, i32) {
    %c0_i32 = arith.constant 0 : i32
    %c0_i32_0 = arith.constant 0 : i32
    %c0_i32_1 = arith.constant 0 : i32
    return %c0_i32, %c0_i32_0 : i32, i32
  }
  func.func @transform_8(%arg0: i32) -> (i32, i32) {
    %c0_i32 = arith.constant 0 : i32
    %c0_i32_0 = arith.constant 0 : i32
    %c0_i32_1 = arith.constant 0 : i32
    return %c0_i32, %c0_i32_0 : i32, i32
  }
  func.func @transform_9(%arg0: i32) -> (i32, i32) {
    %c0_i32 = arith.constant 0 : i32
    %c0_i32_0 = arith.constant 0 : i32
    %c0_i32_1 = arith.constant 0 : i32
    return %c0_i32, %c0_i32_0 : i32, i32
  }
  func.func @transform_10(%arg0: i32) -> (i32, i32) {
    %c0_i32 = arith.constant 0 : i32
    %c0_i32_0 = arith.constant 0 : i32
    %c0_i32_1 = arith.constant 0 : i32
    return %c0_i32, %c0_i32_0 : i32, i32
  }
  func.func @transform_11(%arg0: i32) -> (i32, i32) {
    %c0_i32 = arith.constant 0 : i32
    %c0_i32_0 = arith.constant 0 : i32
    %c0_i32_1 = arith.constant 0 : i32
    return %c0_i32, %c0_i32_0 : i32, i32
  }
  func.func @transform_12(%arg0: i32) -> (i32, i32) {
    %c0_i32 = arith.constant 0 : i32
    %c0_i32_0 = arith.constant 0 : i32
    %c0_i32_1 = arith.constant 0 : i32
    return %c0_i32, %c0_i32_0 : i32, i32
  }
  func.func @transform_13(%arg0: i32) -> (i32, i32) {
    %c0_i32 = arith.constant 0 : i32
    %c0_i32_0 = arith.constant 0 : i32
    %c0_i32_1 = arith.constant 0 : i32
    return %c0_i32, %c0_i32_0 : i32, i32
  }
  func.func @transform_14(%arg0: i32) -> (i32, i32) {
    %c0_i32 = arith.constant 0 : i32
    %c0_i32_0 = arith.constant 0 : i32
    return %arg0, %c0_i32 : i32, i32
  }
}

module attributes {stable_mosaic.version = 11 : i64} {
  func.func @_vig_block_kernel(%arg0: i32, %arg1: memref<1x16x64xf32, #tpu.memory_space<vmem>>, %arg2: memref<64x64xbf16, #tpu.memory_space<vmem>>, %arg3: memref<1x64xf32, #tpu.memory_space<vmem>>, %arg4: memref<64x64xbf16, #tpu.memory_space<vmem>>, %arg5: memref<1x64xf32, #tpu.memory_space<vmem>>, %arg6: memref<128x64xbf16, #tpu.memory_space<vmem>>, %arg7: memref<1x64xf32, #tpu.memory_space<vmem>>, %arg8: memref<64x64xbf16, #tpu.memory_space<vmem>>, %arg9: memref<1x64xf32, #tpu.memory_space<vmem>>, %arg10: memref<64x64xbf16, #tpu.memory_space<vmem>>, %arg11: memref<1x64xf32, #tpu.memory_space<vmem>>, %arg12: memref<64x256xbf16, #tpu.memory_space<vmem>>, %arg13: memref<1x256xf32, #tpu.memory_space<vmem>>, %arg14: memref<256x64xbf16, #tpu.memory_space<vmem>>, %arg15: memref<1x64xf32, #tpu.memory_space<vmem>>, %arg16: memref<64x256xbf16, #tpu.memory_space<vmem>>, %arg17: memref<1x256xf32, #tpu.memory_space<vmem>>, %arg18: memref<256x64xbf16, #tpu.memory_space<vmem>>, %arg19: memref<1x64xf32, #tpu.memory_space<vmem>>, %arg20: memref<1x16x64xf32, #tpu.memory_space<vmem>>) attributes {dimension_semantics = [#tpu.dimension_semantics<parallel>], iteration_bounds = array<i64: 2>, scalar_prefetch = 0 : i64, scratch_operands = 0 : i64, tpu.core_type = #tpu.core_type<tc>, window_params = [{transform_indices = @transform_0, window_bounds = array<i64: 1, 16, 64>}, {pipeline_mode = #tpu.pipeline_mode<synchronous>, transform_indices = @transform_1, window_bounds = array<i64: 64, 64>}, {pipeline_mode = #tpu.pipeline_mode<synchronous>, transform_indices = @transform_2, window_bounds = array<i64: 1, 64>}, {pipeline_mode = #tpu.pipeline_mode<synchronous>, transform_indices = @transform_3, window_bounds = array<i64: 64, 64>}, {pipeline_mode = #tpu.pipeline_mode<synchronous>, transform_indices = @transform_4, window_bounds = array<i64: 1, 64>}, {pipeline_mode = #tpu.pipeline_mode<synchronous>, transform_indices = @transform_5, window_bounds = array<i64: 128, 64>}, {pipeline_mode = #tpu.pipeline_mode<synchronous>, transform_indices = @transform_6, window_bounds = array<i64: 1, 64>}, {pipeline_mode = #tpu.pipeline_mode<synchronous>, transform_indices = @transform_7, window_bounds = array<i64: 64, 64>}, {pipeline_mode = #tpu.pipeline_mode<synchronous>, transform_indices = @transform_8, window_bounds = array<i64: 1, 64>}, {pipeline_mode = #tpu.pipeline_mode<synchronous>, transform_indices = @transform_9, window_bounds = array<i64: 64, 64>}, {pipeline_mode = #tpu.pipeline_mode<synchronous>, transform_indices = @transform_10, window_bounds = array<i64: 1, 64>}, {pipeline_mode = #tpu.pipeline_mode<synchronous>, transform_indices = @transform_11, window_bounds = array<i64: 64, 256>}, {pipeline_mode = #tpu.pipeline_mode<synchronous>, transform_indices = @transform_12, window_bounds = array<i64: 1, 256>}, {pipeline_mode = #tpu.pipeline_mode<synchronous>, transform_indices = @transform_13, window_bounds = array<i64: 256, 64>}, {pipeline_mode = #tpu.pipeline_mode<synchronous>, transform_indices = @transform_14, window_bounds = array<i64: 1, 64>}, {pipeline_mode = #tpu.pipeline_mode<synchronous>, transform_indices = @transform_15, window_bounds = array<i64: 64, 256>}, {pipeline_mode = #tpu.pipeline_mode<synchronous>, transform_indices = @transform_16, window_bounds = array<i64: 1, 256>}, {pipeline_mode = #tpu.pipeline_mode<synchronous>, transform_indices = @transform_17, window_bounds = array<i64: 256, 64>}, {pipeline_mode = #tpu.pipeline_mode<synchronous>, transform_indices = @transform_18, window_bounds = array<i64: 1, 64>}, {transform_indices = @transform_19, window_bounds = array<i64: 1, 16, 64>}]} {
    %c0 = arith.constant 0 : index
    %c0_0 = arith.constant 0 : index
    %c0_1 = arith.constant 0 : index
    %0 = vector.load %arg1[%c0, %c0_0, %c0_1] : memref<1x16x64xf32, #tpu.memory_space<vmem>>, vector<1x16x64xf32>
    %1 = vector.shape_cast %0 : vector<1x16x64xf32> to vector<16x64xf32>
    %2 = arith.truncf %1 : vector<16x64xf32> to vector<16x64xbf16>
    %c0_2 = arith.constant 0 : index
    %c0_3 = arith.constant 0 : index
    %3 = vector.load %arg2[%c0_2, %c0_3] : memref<64x64xbf16, #tpu.memory_space<vmem>>, vector<64x64xbf16>
    %cst = arith.constant dense<0.000000e+00> : vector<16x64xf32>
    %4 = tpu.matmul %2, %3, %cst {dimension_numbers = #tpu.dot_dimension_numbers<[1], [0], [0], [1], [0, 0, 1, 1], [], []>} : vector<16x64xbf16>, vector<64x64xbf16>, vector<16x64xf32> -> vector<16x64xf32>
    %c0_4 = arith.constant 0 : index
    %c0_5 = arith.constant 0 : index
    %5 = vector.load %arg3[%c0_4, %c0_5] : memref<1x64xf32, #tpu.memory_space<vmem>>, vector<1x64xf32>
    %6 = vector.broadcast %5 : vector<1x64xf32> to vector<16x64xf32>
    %7 = arith.addf %4, %6 : vector<16x64xf32>
    %cst_6 = arith.constant 5.000000e-01 : f32
    %8 = vector.broadcast %cst_6 : f32 to vector<16x64xf32>
    %9 = arith.mulf %8, %7 : vector<16x64xf32>
    %cst_7 = arith.constant 4.471500e-02 : f32
    %10 = vector.broadcast %cst_7 : f32 to vector<16x64xf32>
    %11 = arith.mulf %10, %7 : vector<16x64xf32>
    %12 = arith.mulf %11, %7 : vector<16x64xf32>
    %13 = arith.mulf %12, %7 : vector<16x64xf32>
    %14 = arith.addf %7, %13 : vector<16x64xf32>
    %cst_8 = arith.constant 0.797884583 : f32
    %15 = vector.broadcast %cst_8 : f32 to vector<16x64xf32>
    %16 = arith.mulf %15, %14 : vector<16x64xf32>
    %17 = math.tanh %16 : vector<16x64xf32>
    %cst_9 = arith.constant 1.000000e+00 : f32
    %18 = vector.broadcast %cst_9 : f32 to vector<16x64xf32>
    %19 = arith.addf %18, %17 : vector<16x64xf32>
    %20 = arith.mulf %9, %19 : vector<16x64xf32>
    %21 = arith.truncf %20 : vector<16x64xf32> to vector<16x64xbf16>
    %c0_10 = arith.constant 0 : index
    %c0_11 = arith.constant 0 : index
    %22 = vector.load %arg4[%c0_10, %c0_11] : memref<64x64xbf16, #tpu.memory_space<vmem>>, vector<64x64xbf16>
    %cst_12 = arith.constant dense<0.000000e+00> : vector<16x64xf32>
    %23 = tpu.matmul %21, %22, %cst_12 {dimension_numbers = #tpu.dot_dimension_numbers<[1], [0], [0], [1], [0, 0, 1, 1], [], []>} : vector<16x64xbf16>, vector<64x64xbf16>, vector<16x64xf32> -> vector<16x64xf32>
    %c0_13 = arith.constant 0 : index
    %c0_14 = arith.constant 0 : index
    %24 = vector.load %arg5[%c0_13, %c0_14] : memref<1x64xf32, #tpu.memory_space<vmem>>, vector<1x64xf32>
    %25 = vector.broadcast %24 : vector<1x64xf32> to vector<16x64xf32>
    %26 = arith.addf %23, %25 : vector<16x64xf32>
    %27 = arith.addf %26, %1 : vector<16x64xf32>
    %cst_15 = arith.constant dense<0.000000e+00> : vector<16x16xf32>
    %28 = tpu.matmul %1, %1, %cst_15 {dimension_numbers = #tpu.dot_dimension_numbers<[1], [1], [0], [0], [0, 0, 1, 0], [], []>} : vector<16x64xf32>, vector<16x64xf32>, vector<16x16xf32> -> vector<16x16xf32>
    %29 = tpu.iota {dimensions = array<i32: 1>} : vector<16x16xi32>
    %30 = arith.sitofp %29 : vector<16x16xi32> to vector<16x16xf32>
    %cst_16 = arith.constant 0xFF800000 : f32
    %31 = vector.broadcast %cst_16 : f32 to vector<16x64xf32>
    %cst_17 = arith.constant dense<0xFF800000> : vector<16xf32>
    %32 = vector.multi_reduction <maximumf>, %28, %cst_17 [1] : vector<16x16xf32> to vector<16xf32>
    %33 = vector.shape_cast %32 : vector<16xf32> to vector<16x1xf32>
    %34 = vector.broadcast %33 : vector<16x1xf32> to vector<16x16xf32>
    %35 = arith.cmpf oge, %28, %34 : vector<16x16xf32>
    %cst_18 = arith.constant 1.600000e+01 : f32
    %36 = vector.broadcast %cst_18 : f32 to vector<16x16xf32>
    %37 = arith.select %35, %30, %36 : vector<16x16xi1>, vector<16x16xf32>
    %cst_19 = arith.constant dense<0x7F800000> : vector<16xf32>
    %38 = vector.multi_reduction <minimumf>, %37, %cst_19 [1] : vector<16x16xf32> to vector<16xf32>
    %39 = vector.shape_cast %38 : vector<16xf32> to vector<16x1xf32>
    %40 = vector.broadcast %39 : vector<16x1xf32> to vector<16x16xf32>
    %41 = arith.cmpf oeq, %30, %40 : vector<16x16xf32>
    %42 = arith.extui %41 : vector<16x16xi1> to vector<16x16xi32>
    %43 = arith.sitofp %42 : vector<16x16xi32> to vector<16x16xf32>
    %cst_20 = arith.constant dense<0.000000e+00> : vector<16x64xf32>
    %44 = tpu.matmul %43, %27, %cst_20 {dimension_numbers = #tpu.dot_dimension_numbers<[1], [0], [0], [1], [0, 0, 1, 1], [], []>} : vector<16x16xf32>, vector<16x64xf32>, vector<16x64xf32> -> vector<16x64xf32>
    %45 = arith.maximumf %31, %44 : vector<16x64xf32>
    %cst_21 = arith.constant 0xFF800000 : f32
    %46 = vector.broadcast %cst_21 : f32 to vector<16x16xf32>
    %47 = arith.select %41, %46, %28 : vector<16x16xi1>, vector<16x16xf32>
    %cst_22 = arith.constant dense<0xFF800000> : vector<16xf32>
    %48 = vector.multi_reduction <maximumf>, %47, %cst_22 [1] : vector<16x16xf32> to vector<16xf32>
    %49 = vector.shape_cast %48 : vector<16xf32> to vector<16x1xf32>
    %50 = vector.broadcast %49 : vector<16x1xf32> to vector<16x16xf32>
    %51 = arith.cmpf oge, %47, %50 : vector<16x16xf32>
    %cst_23 = arith.constant 1.600000e+01 : f32
    %52 = vector.broadcast %cst_23 : f32 to vector<16x16xf32>
    %53 = arith.select %51, %30, %52 : vector<16x16xi1>, vector<16x16xf32>
    %cst_24 = arith.constant dense<0x7F800000> : vector<16xf32>
    %54 = vector.multi_reduction <minimumf>, %53, %cst_24 [1] : vector<16x16xf32> to vector<16xf32>
    %55 = vector.shape_cast %54 : vector<16xf32> to vector<16x1xf32>
    %56 = vector.broadcast %55 : vector<16x1xf32> to vector<16x16xf32>
    %57 = arith.cmpf oeq, %30, %56 : vector<16x16xf32>
    %58 = arith.extui %57 : vector<16x16xi1> to vector<16x16xi32>
    %59 = arith.sitofp %58 : vector<16x16xi32> to vector<16x16xf32>
    %cst_25 = arith.constant dense<0.000000e+00> : vector<16x64xf32>
    %60 = tpu.matmul %59, %27, %cst_25 {dimension_numbers = #tpu.dot_dimension_numbers<[1], [0], [0], [1], [0, 0, 1, 1], [], []>} : vector<16x16xf32>, vector<16x64xf32>, vector<16x64xf32> -> vector<16x64xf32>
    %61 = arith.maximumf %45, %60 : vector<16x64xf32>
    %cst_26 = arith.constant 0xFF800000 : f32
    %62 = vector.broadcast %cst_26 : f32 to vector<16x16xf32>
    %63 = arith.select %57, %62, %47 : vector<16x16xi1>, vector<16x16xf32>
    %cst_27 = arith.constant dense<0xFF800000> : vector<16xf32>
    %64 = vector.multi_reduction <maximumf>, %63, %cst_27 [1] : vector<16x16xf32> to vector<16xf32>
    %65 = vector.shape_cast %64 : vector<16xf32> to vector<16x1xf32>
    %66 = vector.broadcast %65 : vector<16x1xf32> to vector<16x16xf32>
    %67 = arith.cmpf oge, %63, %66 : vector<16x16xf32>
    %cst_28 = arith.constant 1.600000e+01 : f32
    %68 = vector.broadcast %cst_28 : f32 to vector<16x16xf32>
    %69 = arith.select %67, %30, %68 : vector<16x16xi1>, vector<16x16xf32>
    %cst_29 = arith.constant dense<0x7F800000> : vector<16xf32>
    %70 = vector.multi_reduction <minimumf>, %69, %cst_29 [1] : vector<16x16xf32> to vector<16xf32>
    %71 = vector.shape_cast %70 : vector<16xf32> to vector<16x1xf32>
    %72 = vector.broadcast %71 : vector<16x1xf32> to vector<16x16xf32>
    %73 = arith.cmpf oeq, %30, %72 : vector<16x16xf32>
    %74 = arith.extui %73 : vector<16x16xi1> to vector<16x16xi32>
    %75 = arith.sitofp %74 : vector<16x16xi32> to vector<16x16xf32>
    %cst_30 = arith.constant dense<0.000000e+00> : vector<16x64xf32>
    %76 = tpu.matmul %75, %27, %cst_30 {dimension_numbers = #tpu.dot_dimension_numbers<[1], [0], [0], [1], [0, 0, 1, 1], [], []>} : vector<16x16xf32>, vector<16x64xf32>, vector<16x64xf32> -> vector<16x64xf32>
    %77 = arith.maximumf %61, %76 : vector<16x64xf32>
    %cst_31 = arith.constant 0xFF800000 : f32
    %78 = vector.broadcast %cst_31 : f32 to vector<16x16xf32>
    %79 = arith.select %73, %78, %63 : vector<16x16xi1>, vector<16x16xf32>
    %cst_32 = arith.constant dense<0xFF800000> : vector<16xf32>
    %80 = vector.multi_reduction <maximumf>, %79, %cst_32 [1] : vector<16x16xf32> to vector<16xf32>
    %81 = vector.shape_cast %80 : vector<16xf32> to vector<16x1xf32>
    %82 = vector.broadcast %81 : vector<16x1xf32> to vector<16x16xf32>
    %83 = arith.cmpf oge, %79, %82 : vector<16x16xf32>
    %cst_33 = arith.constant 1.600000e+01 : f32
    %84 = vector.broadcast %cst_33 : f32 to vector<16x16xf32>
    %85 = arith.select %83, %30, %84 : vector<16x16xi1>, vector<16x16xf32>
    %cst_34 = arith.constant dense<0x7F800000> : vector<16xf32>
    %86 = vector.multi_reduction <minimumf>, %85, %cst_34 [1] : vector<16x16xf32> to vector<16xf32>
    %87 = vector.shape_cast %86 : vector<16xf32> to vector<16x1xf32>
    %88 = vector.broadcast %87 : vector<16x1xf32> to vector<16x16xf32>
    %89 = arith.cmpf oeq, %30, %88 : vector<16x16xf32>
    %90 = arith.extui %89 : vector<16x16xi1> to vector<16x16xi32>
    %91 = arith.sitofp %90 : vector<16x16xi32> to vector<16x16xf32>
    %cst_35 = arith.constant dense<0.000000e+00> : vector<16x64xf32>
    %92 = tpu.matmul %91, %27, %cst_35 {dimension_numbers = #tpu.dot_dimension_numbers<[1], [0], [0], [1], [0, 0, 1, 1], [], []>} : vector<16x16xf32>, vector<16x64xf32>, vector<16x64xf32> -> vector<16x64xf32>
    %93 = arith.maximumf %77, %92 : vector<16x64xf32>
    %94 = arith.subf %93, %27 : vector<16x64xf32>
    %95 = tpu.concatenate %27, %94 in 1 : vector<16x64xf32>, vector<16x64xf32> -> vector<16x128xf32>
    %96 = arith.truncf %95 : vector<16x128xf32> to vector<16x128xbf16>
    %c0_36 = arith.constant 0 : index
    %c0_37 = arith.constant 0 : index
    %97 = vector.load %arg6[%c0_36, %c0_37] : memref<128x64xbf16, #tpu.memory_space<vmem>>, vector<128x64xbf16>
    %cst_38 = arith.constant dense<0.000000e+00> : vector<16x64xf32>
    %98 = tpu.matmul %96, %97, %cst_38 {dimension_numbers = #tpu.dot_dimension_numbers<[1], [0], [0], [1], [0, 0, 1, 1], [], []>} : vector<16x128xbf16>, vector<128x64xbf16>, vector<16x64xf32> -> vector<16x64xf32>
    %c0_39 = arith.constant 0 : index
    %c0_40 = arith.constant 0 : index
    %99 = vector.load %arg7[%c0_39, %c0_40] : memref<1x64xf32, #tpu.memory_space<vmem>>, vector<1x64xf32>
    %100 = vector.broadcast %99 : vector<1x64xf32> to vector<16x64xf32>
    %101 = arith.addf %98, %100 : vector<16x64xf32>
    %cst_41 = arith.constant 5.000000e-01 : f32
    %102 = vector.broadcast %cst_41 : f32 to vector<16x64xf32>
    %103 = arith.mulf %102, %101 : vector<16x64xf32>
    %cst_42 = arith.constant 4.471500e-02 : f32
    %104 = vector.broadcast %cst_42 : f32 to vector<16x64xf32>
    %105 = arith.mulf %104, %101 : vector<16x64xf32>
    %106 = arith.mulf %105, %101 : vector<16x64xf32>
    %107 = arith.mulf %106, %101 : vector<16x64xf32>
    %108 = arith.addf %101, %107 : vector<16x64xf32>
    %cst_43 = arith.constant 0.797884583 : f32
    %109 = vector.broadcast %cst_43 : f32 to vector<16x64xf32>
    %110 = arith.mulf %109, %108 : vector<16x64xf32>
    %111 = math.tanh %110 : vector<16x64xf32>
    %cst_44 = arith.constant 1.000000e+00 : f32
    %112 = vector.broadcast %cst_44 : f32 to vector<16x64xf32>
    %113 = arith.addf %112, %111 : vector<16x64xf32>
    %114 = arith.mulf %103, %113 : vector<16x64xf32>
    %115 = arith.truncf %114 : vector<16x64xf32> to vector<16x64xbf16>
    %c0_45 = arith.constant 0 : index
    %c0_46 = arith.constant 0 : index
    %116 = vector.load %arg8[%c0_45, %c0_46] : memref<64x64xbf16, #tpu.memory_space<vmem>>, vector<64x64xbf16>
    %cst_47 = arith.constant dense<0.000000e+00> : vector<16x64xf32>
    %117 = tpu.matmul %115, %116, %cst_47 {dimension_numbers = #tpu.dot_dimension_numbers<[1], [0], [0], [1], [0, 0, 1, 1], [], []>} : vector<16x64xbf16>, vector<64x64xbf16>, vector<16x64xf32> -> vector<16x64xf32>
    %c0_48 = arith.constant 0 : index
    %c0_49 = arith.constant 0 : index
    %118 = vector.load %arg9[%c0_48, %c0_49] : memref<1x64xf32, #tpu.memory_space<vmem>>, vector<1x64xf32>
    %119 = vector.broadcast %118 : vector<1x64xf32> to vector<16x64xf32>
    %120 = arith.addf %117, %119 : vector<16x64xf32>
    %cst_50 = arith.constant 5.000000e-01 : f32
    %121 = vector.broadcast %cst_50 : f32 to vector<16x64xf32>
    %122 = arith.mulf %121, %120 : vector<16x64xf32>
    %cst_51 = arith.constant 4.471500e-02 : f32
    %123 = vector.broadcast %cst_51 : f32 to vector<16x64xf32>
    %124 = arith.mulf %123, %120 : vector<16x64xf32>
    %125 = arith.mulf %124, %120 : vector<16x64xf32>
    %126 = arith.mulf %125, %120 : vector<16x64xf32>
    %127 = arith.addf %120, %126 : vector<16x64xf32>
    %cst_52 = arith.constant 0.797884583 : f32
    %128 = vector.broadcast %cst_52 : f32 to vector<16x64xf32>
    %129 = arith.mulf %128, %127 : vector<16x64xf32>
    %130 = math.tanh %129 : vector<16x64xf32>
    %cst_53 = arith.constant 1.000000e+00 : f32
    %131 = vector.broadcast %cst_53 : f32 to vector<16x64xf32>
    %132 = arith.addf %131, %130 : vector<16x64xf32>
    %133 = arith.mulf %122, %132 : vector<16x64xf32>
    %134 = arith.truncf %133 : vector<16x64xf32> to vector<16x64xbf16>
    %c0_54 = arith.constant 0 : index
    %c0_55 = arith.constant 0 : index
    %135 = vector.load %arg10[%c0_54, %c0_55] : memref<64x64xbf16, #tpu.memory_space<vmem>>, vector<64x64xbf16>
    %cst_56 = arith.constant dense<0.000000e+00> : vector<16x64xf32>
    %136 = tpu.matmul %134, %135, %cst_56 {dimension_numbers = #tpu.dot_dimension_numbers<[1], [0], [0], [1], [0, 0, 1, 1], [], []>} : vector<16x64xbf16>, vector<64x64xbf16>, vector<16x64xf32> -> vector<16x64xf32>
    %c0_57 = arith.constant 0 : index
    %c0_58 = arith.constant 0 : index
    %137 = vector.load %arg11[%c0_57, %c0_58] : memref<1x64xf32, #tpu.memory_space<vmem>>, vector<1x64xf32>
    %138 = vector.broadcast %137 : vector<1x64xf32> to vector<16x64xf32>
    %139 = arith.addf %136, %138 : vector<16x64xf32>
    %140 = arith.addf %139, %114 : vector<16x64xf32>
    %141 = arith.addf %140, %1 : vector<16x64xf32>
    %142 = arith.truncf %141 : vector<16x64xf32> to vector<16x64xbf16>
    %c0_59 = arith.constant 0 : index
    %c0_60 = arith.constant 0 : index
    %143 = vector.load %arg12[%c0_59, %c0_60] : memref<64x256xbf16, #tpu.memory_space<vmem>>, vector<64x256xbf16>
    %cst_61 = arith.constant dense<0.000000e+00> : vector<16x256xf32>
    %144 = tpu.matmul %142, %143, %cst_61 {dimension_numbers = #tpu.dot_dimension_numbers<[1], [0], [0], [1], [0, 0, 1, 1], [], []>} : vector<16x64xbf16>, vector<64x256xbf16>, vector<16x256xf32> -> vector<16x256xf32>
    %c0_62 = arith.constant 0 : index
    %c0_63 = arith.constant 0 : index
    %145 = vector.load %arg13[%c0_62, %c0_63] : memref<1x256xf32, #tpu.memory_space<vmem>>, vector<1x256xf32>
    %146 = vector.broadcast %145 : vector<1x256xf32> to vector<16x256xf32>
    %147 = arith.addf %144, %146 : vector<16x256xf32>
    %cst_64 = arith.constant 5.000000e-01 : f32
    %148 = vector.broadcast %cst_64 : f32 to vector<16x256xf32>
    %149 = arith.mulf %148, %147 : vector<16x256xf32>
    %cst_65 = arith.constant 4.471500e-02 : f32
    %150 = vector.broadcast %cst_65 : f32 to vector<16x256xf32>
    %151 = arith.mulf %150, %147 : vector<16x256xf32>
    %152 = arith.mulf %151, %147 : vector<16x256xf32>
    %153 = arith.mulf %152, %147 : vector<16x256xf32>
    %154 = arith.addf %147, %153 : vector<16x256xf32>
    %cst_66 = arith.constant 0.797884583 : f32
    %155 = vector.broadcast %cst_66 : f32 to vector<16x256xf32>
    %156 = arith.mulf %155, %154 : vector<16x256xf32>
    %157 = math.tanh %156 : vector<16x256xf32>
    %cst_67 = arith.constant 1.000000e+00 : f32
    %158 = vector.broadcast %cst_67 : f32 to vector<16x256xf32>
    %159 = arith.addf %158, %157 : vector<16x256xf32>
    %160 = arith.mulf %149, %159 : vector<16x256xf32>
    %161 = arith.truncf %160 : vector<16x256xf32> to vector<16x256xbf16>
    %c0_68 = arith.constant 0 : index
    %c0_69 = arith.constant 0 : index
    %162 = vector.load %arg14[%c0_68, %c0_69] : memref<256x64xbf16, #tpu.memory_space<vmem>>, vector<256x64xbf16>
    %cst_70 = arith.constant dense<0.000000e+00> : vector<16x64xf32>
    %163 = tpu.matmul %161, %162, %cst_70 {dimension_numbers = #tpu.dot_dimension_numbers<[1], [0], [0], [1], [0, 0, 1, 1], [], []>} : vector<16x256xbf16>, vector<256x64xbf16>, vector<16x64xf32> -> vector<16x64xf32>
    %c0_71 = arith.constant 0 : index
    %c0_72 = arith.constant 0 : index
    %164 = vector.load %arg15[%c0_71, %c0_72] : memref<1x64xf32, #tpu.memory_space<vmem>>, vector<1x64xf32>
    %165 = vector.broadcast %164 : vector<1x64xf32> to vector<16x64xf32>
    %166 = arith.addf %163, %165 : vector<16x64xf32>
    %167 = arith.addf %166, %141 : vector<16x64xf32>
    %cst_73 = arith.constant 5.000000e-01 : f32
    %168 = vector.broadcast %cst_73 : f32 to vector<16x64xf32>
    %169 = arith.mulf %168, %167 : vector<16x64xf32>
    %cst_74 = arith.constant 4.471500e-02 : f32
    %170 = vector.broadcast %cst_74 : f32 to vector<16x64xf32>
    %171 = arith.mulf %170, %167 : vector<16x64xf32>
    %172 = arith.mulf %171, %167 : vector<16x64xf32>
    %173 = arith.mulf %172, %167 : vector<16x64xf32>
    %174 = arith.addf %167, %173 : vector<16x64xf32>
    %cst_75 = arith.constant 0.797884583 : f32
    %175 = vector.broadcast %cst_75 : f32 to vector<16x64xf32>
    %176 = arith.mulf %175, %174 : vector<16x64xf32>
    %177 = math.tanh %176 : vector<16x64xf32>
    %cst_76 = arith.constant 1.000000e+00 : f32
    %178 = vector.broadcast %cst_76 : f32 to vector<16x64xf32>
    %179 = arith.addf %178, %177 : vector<16x64xf32>
    %180 = arith.mulf %169, %179 : vector<16x64xf32>
    %181 = arith.truncf %180 : vector<16x64xf32> to vector<16x64xbf16>
    %c0_77 = arith.constant 0 : index
    %c0_78 = arith.constant 0 : index
    %182 = vector.load %arg16[%c0_77, %c0_78] : memref<64x256xbf16, #tpu.memory_space<vmem>>, vector<64x256xbf16>
    %cst_79 = arith.constant dense<0.000000e+00> : vector<16x256xf32>
    %183 = tpu.matmul %181, %182, %cst_79 {dimension_numbers = #tpu.dot_dimension_numbers<[1], [0], [0], [1], [0, 0, 1, 1], [], []>} : vector<16x64xbf16>, vector<64x256xbf16>, vector<16x256xf32> -> vector<16x256xf32>
    %c0_80 = arith.constant 0 : index
    %c0_81 = arith.constant 0 : index
    %184 = vector.load %arg17[%c0_80, %c0_81] : memref<1x256xf32, #tpu.memory_space<vmem>>, vector<1x256xf32>
    %185 = vector.broadcast %184 : vector<1x256xf32> to vector<16x256xf32>
    %186 = arith.addf %183, %185 : vector<16x256xf32>
    %cst_82 = arith.constant 5.000000e-01 : f32
    %187 = vector.broadcast %cst_82 : f32 to vector<16x256xf32>
    %188 = arith.mulf %187, %186 : vector<16x256xf32>
    %cst_83 = arith.constant 4.471500e-02 : f32
    %189 = vector.broadcast %cst_83 : f32 to vector<16x256xf32>
    %190 = arith.mulf %189, %186 : vector<16x256xf32>
    %191 = arith.mulf %190, %186 : vector<16x256xf32>
    %192 = arith.mulf %191, %186 : vector<16x256xf32>
    %193 = arith.addf %186, %192 : vector<16x256xf32>
    %cst_84 = arith.constant 0.797884583 : f32
    %194 = vector.broadcast %cst_84 : f32 to vector<16x256xf32>
    %195 = arith.mulf %194, %193 : vector<16x256xf32>
    %196 = math.tanh %195 : vector<16x256xf32>
    %cst_85 = arith.constant 1.000000e+00 : f32
    %197 = vector.broadcast %cst_85 : f32 to vector<16x256xf32>
    %198 = arith.addf %197, %196 : vector<16x256xf32>
    %199 = arith.mulf %188, %198 : vector<16x256xf32>
    %200 = arith.truncf %199 : vector<16x256xf32> to vector<16x256xbf16>
    %c0_86 = arith.constant 0 : index
    %c0_87 = arith.constant 0 : index
    %201 = vector.load %arg18[%c0_86, %c0_87] : memref<256x64xbf16, #tpu.memory_space<vmem>>, vector<256x64xbf16>
    %cst_88 = arith.constant dense<0.000000e+00> : vector<16x64xf32>
    %202 = tpu.matmul %200, %201, %cst_88 {dimension_numbers = #tpu.dot_dimension_numbers<[1], [0], [0], [1], [0, 0, 1, 1], [], []>} : vector<16x256xbf16>, vector<256x64xbf16>, vector<16x64xf32> -> vector<16x64xf32>
    %c0_89 = arith.constant 0 : index
    %c0_90 = arith.constant 0 : index
    %203 = vector.load %arg19[%c0_89, %c0_90] : memref<1x64xf32, #tpu.memory_space<vmem>>, vector<1x64xf32>
    %204 = vector.broadcast %203 : vector<1x64xf32> to vector<16x64xf32>
    %205 = arith.addf %202, %204 : vector<16x64xf32>
    %206 = arith.addf %205, %180 : vector<16x64xf32>
    %207 = arith.addf %206, %141 : vector<16x64xf32>
    %c0_91 = arith.constant 0 : index
    %c0_92 = arith.constant 0 : index
    %c0_93 = arith.constant 0 : index
    %208 = vector.load %arg20[%c0_91, %c0_92, %c0_93] : memref<1x16x64xf32, #tpu.memory_space<vmem>>, vector<1x16x64xf32>
    %209 = vector.shape_cast %208 : vector<1x16x64xf32> to vector<16x64xf32>
    %210 = vector.shape_cast %207 : vector<16x64xf32> to vector<1x16x64xf32>
    tpu.vector_store %arg20[%c0_91, %c0_92, %c0_93], %210 {strides = array<i32>} : memref<1x16x64xf32, #tpu.memory_space<vmem>>, vector<1x16x64xf32>,
    return
  }
  func.func @transform_0(%arg0: i32) -> (i32, i32, i32) {
    %c0_i32 = arith.constant 0 : i32
    %c0_i32_0 = arith.constant 0 : i32
    %c0_i32_1 = arith.constant 0 : i32
    return %arg0, %c0_i32, %c0_i32_0 : i32, i32, i32
  }
  func.func @transform_1(%arg0: i32) -> (i32, i32) {
    %c0_i32 = arith.constant 0 : i32
    %c0_i32_0 = arith.constant 0 : i32
    %c0_i32_1 = arith.constant 0 : i32
    return %c0_i32, %c0_i32_0 : i32, i32
  }
  func.func @transform_2(%arg0: i32) -> (i32, i32) {
    %c0_i32 = arith.constant 0 : i32
    %c0_i32_0 = arith.constant 0 : i32
    %c0_i32_1 = arith.constant 0 : i32
    return %c0_i32, %c0_i32_0 : i32, i32
  }
  func.func @transform_3(%arg0: i32) -> (i32, i32) {
    %c0_i32 = arith.constant 0 : i32
    %c0_i32_0 = arith.constant 0 : i32
    %c0_i32_1 = arith.constant 0 : i32
    return %c0_i32, %c0_i32_0 : i32, i32
  }
  func.func @transform_4(%arg0: i32) -> (i32, i32) {
    %c0_i32 = arith.constant 0 : i32
    %c0_i32_0 = arith.constant 0 : i32
    %c0_i32_1 = arith.constant 0 : i32
    return %c0_i32, %c0_i32_0 : i32, i32
  }
  func.func @transform_5(%arg0: i32) -> (i32, i32) {
    %c0_i32 = arith.constant 0 : i32
    %c0_i32_0 = arith.constant 0 : i32
    %c0_i32_1 = arith.constant 0 : i32
    return %c0_i32, %c0_i32_0 : i32, i32
  }
  func.func @transform_6(%arg0: i32) -> (i32, i32) {
    %c0_i32 = arith.constant 0 : i32
    %c0_i32_0 = arith.constant 0 : i32
    %c0_i32_1 = arith.constant 0 : i32
    return %c0_i32, %c0_i32_0 : i32, i32
  }
  func.func @transform_7(%arg0: i32) -> (i32, i32) {
    %c0_i32 = arith.constant 0 : i32
    %c0_i32_0 = arith.constant 0 : i32
    %c0_i32_1 = arith.constant 0 : i32
    return %c0_i32, %c0_i32_0 : i32, i32
  }
  func.func @transform_8(%arg0: i32) -> (i32, i32) {
    %c0_i32 = arith.constant 0 : i32
    %c0_i32_0 = arith.constant 0 : i32
    %c0_i32_1 = arith.constant 0 : i32
    return %c0_i32, %c0_i32_0 : i32, i32
  }
  func.func @transform_9(%arg0: i32) -> (i32, i32) {
    %c0_i32 = arith.constant 0 : i32
    %c0_i32_0 = arith.constant 0 : i32
    %c0_i32_1 = arith.constant 0 : i32
    return %c0_i32, %c0_i32_0 : i32, i32
  }
  func.func @transform_10(%arg0: i32) -> (i32, i32) {
    %c0_i32 = arith.constant 0 : i32
    %c0_i32_0 = arith.constant 0 : i32
    %c0_i32_1 = arith.constant 0 : i32
    return %c0_i32, %c0_i32_0 : i32, i32
  }
  func.func @transform_11(%arg0: i32) -> (i32, i32) {
    %c0_i32 = arith.constant 0 : i32
    %c0_i32_0 = arith.constant 0 : i32
    %c0_i32_1 = arith.constant 0 : i32
    return %c0_i32, %c0_i32_0 : i32, i32
  }
  func.func @transform_12(%arg0: i32) -> (i32, i32) {
    %c0_i32 = arith.constant 0 : i32
    %c0_i32_0 = arith.constant 0 : i32
    %c0_i32_1 = arith.constant 0 : i32
    return %c0_i32, %c0_i32_0 : i32, i32
  }
  func.func @transform_13(%arg0: i32) -> (i32, i32) {
    %c0_i32 = arith.constant 0 : i32
    %c0_i32_0 = arith.constant 0 : i32
    %c0_i32_1 = arith.constant 0 : i32
    return %c0_i32, %c0_i32_0 : i32, i32
  }
  func.func @transform_14(%arg0: i32) -> (i32, i32) {
    %c0_i32 = arith.constant 0 : i32
    %c0_i32_0 = arith.constant 0 : i32
    %c0_i32_1 = arith.constant 0 : i32
    return %c0_i32, %c0_i32_0 : i32, i32
  }
  func.func @transform_15(%arg0: i32) -> (i32, i32) {
    %c0_i32 = arith.constant 0 : i32
    %c0_i32_0 = arith.constant 0 : i32
    %c0_i32_1 = arith.constant 0 : i32
    return %c0_i32, %c0_i32_0 : i32, i32
  }
  func.func @transform_16(%arg0: i32) -> (i32, i32) {
    %c0_i32 = arith.constant 0 : i32
    %c0_i32_0 = arith.constant 0 : i32
    %c0_i32_1 = arith.constant 0 : i32
    return %c0_i32, %c0_i32_0 : i32, i32
  }
  func.func @transform_17(%arg0: i32) -> (i32, i32) {
    %c0_i32 = arith.constant 0 : i32
    %c0_i32_0 = arith.constant 0 : i32
    %c0_i32_1 = arith.constant 0 : i32
    return %c0_i32, %c0_i32_0 : i32, i32
  }
  func.func @transform_18(%arg0: i32) -> (i32, i32) {
    %c0_i32 = arith.constant 0 : i32
    %c0_i32_0 = arith.constant 0 : i32
    %c0_i32_1 = arith.constant 0 : i32
    return %c0_i32, %c0_i32_0 : i32, i32
  }
  func.func @transform_19(%arg0: i32) -> (i32, i32, i32) {
    %c0_i32 = arith.constant 0 : i32
    %c0_i32_0 = arith.constant 0 : i32
    %c0_i32_1 = arith.constant 0 : i32
    return %arg0, %c0_i32, %c0_i32_0 : i32, i32, i32
  }
}

module attributes {stable_mosaic.version = 11 : i64} {
  func.func @_head_kernel(%arg0: i32, %arg1: memref<1x16x64xf32, #tpu.memory_space<vmem>>, %arg2: memref<1x1x32x32xf32, #tpu.memory_space<vmem>>, %arg3: memref<256x16xbf16, #tpu.memory_space<vmem>>, %arg4: memref<256x1xf32, #tpu.memory_space<vmem>>, %arg5: memref<64x256xbf16, #tpu.memory_space<vmem>>, %arg6: memref<64x1xf32, #tpu.memory_space<vmem>>, %arg7: memref<1x64xbf16, #tpu.memory_space<vmem>>, %arg8: memref<1x1xf32, #tpu.memory_space<vmem>>, %arg9: memref<64x256xf32, #tpu.memory_space<vmem>>, %arg10: memref<32x8xf32, #tpu.memory_space<vmem>>, %arg11: memref<1x2xf32, #tpu.memory_space<vmem>>, %arg12: memref<1x1xf32, #tpu.memory_space<vmem>>, %arg13: memref<1x1x32x32xf32, #tpu.memory_space<vmem>>) attributes {dimension_semantics = [#tpu.dimension_semantics<parallel>], iteration_bounds = array<i64: 2>, scalar_prefetch = 0 : i64, scratch_operands = 0 : i64, tpu.core_type = #tpu.core_type<tc>, window_params = [{transform_indices = @transform_0, window_bounds = array<i64: 1, 16, 64>}, {transform_indices = @transform_1, window_bounds = array<i64: 1, 1, 32, 32>}, {pipeline_mode = #tpu.pipeline_mode<synchronous>, transform_indices = @transform_2, window_bounds = array<i64: 256, 16>}, {pipeline_mode = #tpu.pipeline_mode<synchronous>, transform_indices = @transform_3, window_bounds = array<i64: 256, 1>}, {pipeline_mode = #tpu.pipeline_mode<synchronous>, transform_indices = @transform_4, window_bounds = array<i64: 64, 256>}, {pipeline_mode = #tpu.pipeline_mode<synchronous>, transform_indices = @transform_5, window_bounds = array<i64: 64, 1>}, {pipeline_mode = #tpu.pipeline_mode<synchronous>, transform_indices = @transform_6, window_bounds = array<i64: 1, 64>}, {pipeline_mode = #tpu.pipeline_mode<synchronous>, transform_indices = @transform_7, window_bounds = array<i64: 1, 1>}, {pipeline_mode = #tpu.pipeline_mode<synchronous>, transform_indices = @transform_8, window_bounds = array<i64: 64, 256>}, {pipeline_mode = #tpu.pipeline_mode<synchronous>, transform_indices = @transform_9, window_bounds = array<i64: 32, 8>}, {pipeline_mode = #tpu.pipeline_mode<synchronous>, transform_indices = @transform_10, window_bounds = array<i64: 1, 2>}, {pipeline_mode = #tpu.pipeline_mode<synchronous>, transform_indices = @transform_11, window_bounds = array<i64: 1, 1>}, {transform_indices = @transform_12, window_bounds = array<i64: 1, 1, 32, 32>}]} {
    %c0 = arith.constant 0 : index
    %c0_0 = arith.constant 0 : index
    %c0_1 = arith.constant 0 : index
    %0 = vector.load %arg1[%c0, %c0_0, %c0_1] : memref<1x16x64xf32, #tpu.memory_space<vmem>>, vector<1x16x64xf32>
    %1 = vector.shape_cast %0 : vector<1x16x64xf32> to vector<16x64xf32>
    %c0_2 = arith.constant 0 : index
    %c0_3 = arith.constant 0 : index
    %2 = vector.load %arg3[%c0_2, %c0_3] : memref<256x16xbf16, #tpu.memory_space<vmem>>, vector<256x16xbf16>
    %3 = arith.truncf %1 : vector<16x64xf32> to vector<16x64xbf16>
    %cst = arith.constant dense<0.000000e+00> : vector<256x64xf32>
    %4 = tpu.matmul %2, %3, %cst {dimension_numbers = #tpu.dot_dimension_numbers<[1], [0], [0], [1], [0, 0, 1, 1], [], []>} : vector<256x16xbf16>, vector<16x64xbf16>, vector<256x64xf32> -> vector<256x64xf32>
    %c0_4 = arith.constant 0 : index
    %c0_5 = arith.constant 0 : index
    %5 = vector.load %arg4[%c0_4, %c0_5] : memref<256x1xf32, #tpu.memory_space<vmem>>, vector<256x1xf32>
    %6 = vector.broadcast %5 : vector<256x1xf32> to vector<256x64xf32>
    %7 = arith.addf %4, %6 : vector<256x64xf32>
    %cst_6 = arith.constant 0.000000e+00 : f32
    %8 = vector.broadcast %cst_6 : f32 to vector<256x64xf32>
    %9 = arith.maximumf %7, %8 : vector<256x64xf32>
    %c0_7 = arith.constant 0 : index
    %c0_8 = arith.constant 0 : index
    %10 = vector.load %arg5[%c0_7, %c0_8] : memref<64x256xbf16, #tpu.memory_space<vmem>>, vector<64x256xbf16>
    %11 = arith.truncf %9 : vector<256x64xf32> to vector<256x64xbf16>
    %cst_9 = arith.constant dense<0.000000e+00> : vector<64x64xf32>
    %12 = tpu.matmul %10, %11, %cst_9 {dimension_numbers = #tpu.dot_dimension_numbers<[1], [0], [0], [1], [0, 0, 1, 1], [], []>} : vector<64x256xbf16>, vector<256x64xbf16>, vector<64x64xf32> -> vector<64x64xf32>
    %c0_10 = arith.constant 0 : index
    %c0_11 = arith.constant 0 : index
    %13 = vector.load %arg6[%c0_10, %c0_11] : memref<64x1xf32, #tpu.memory_space<vmem>>, vector<64x1xf32>
    %14 = vector.broadcast %13 : vector<64x1xf32> to vector<64x64xf32>
    %15 = arith.addf %12, %14 : vector<64x64xf32>
    %cst_12 = arith.constant 0.000000e+00 : f32
    %16 = vector.broadcast %cst_12 : f32 to vector<64x64xf32>
    %17 = arith.maximumf %15, %16 : vector<64x64xf32>
    %c0_13 = arith.constant 0 : index
    %c0_14 = arith.constant 0 : index
    %18 = vector.load %arg7[%c0_13, %c0_14] : memref<1x64xbf16, #tpu.memory_space<vmem>>, vector<1x64xbf16>
    %19 = arith.truncf %17 : vector<64x64xf32> to vector<64x64xbf16>
    %cst_15 = arith.constant dense<0.000000e+00> : vector<1x64xf32>
    %20 = tpu.matmul %18, %19, %cst_15 {dimension_numbers = #tpu.dot_dimension_numbers<[1], [0], [0], [1], [0, 0, 1, 1], [], []>} : vector<1x64xbf16>, vector<64x64xbf16>, vector<1x64xf32> -> vector<1x64xf32>
    %c0_16 = arith.constant 0 : index
    %c0_17 = arith.constant 0 : index
    %21 = vector.load %arg8[%c0_16, %c0_17] : memref<1x1xf32, #tpu.memory_space<vmem>>, vector<1x1xf32>
    %22 = vector.broadcast %21 : vector<1x1xf32> to vector<1x64xf32>
    %23 = arith.addf %20, %22 : vector<1x64xf32>
    %c0_18 = arith.constant 0 : index
    %c0_19 = arith.constant 0 : index
    %24 = vector.load %arg9[%c0_18, %c0_19] : memref<64x256xf32, #tpu.memory_space<vmem>>, vector<64x256xf32>
    %cst_20 = arith.constant dense<0.000000e+00> : vector<1x256xf32>
    %25 = tpu.matmul %23, %24, %cst_20 {dimension_numbers = #tpu.dot_dimension_numbers<[1], [0], [0], [1], [0, 0, 1, 1], [], []>} : vector<1x64xf32>, vector<64x256xf32>, vector<1x256xf32> -> vector<1x256xf32>
    %c0_21 = arith.constant 0 : index
    %c0_22 = arith.constant 0 : index
    %26 = vector.load %arg10[%c0_21, %c0_22] : memref<32x8xf32, #tpu.memory_space<vmem>>, vector<32x8xf32>
    %cst_23 = arith.constant 0.000000e+00 : f32
    %27 = vector.broadcast %cst_23 : f32 to vector<32x32xf32>
    %28 = vector.extract_strided_slice %26 {offsets = [0, 0], sizes = [32, 1], strides = [1, 1]} : vector<32x8xf32> to vector<32x1xf32>
    %29 = vector.extract_strided_slice %25 {offsets = [0, 0], sizes = [1, 32], strides = [1, 1]} : vector<1x256xf32> to vector<1x32xf32>
    %30 = vector.broadcast %28 : vector<32x1xf32> to vector<32x32xf32>
    %31 = vector.broadcast %29 : vector<1x32xf32> to vector<32x32xf32>
    %32 = arith.mulf %30, %31 : vector<32x32xf32>
    %33 = arith.addf %27, %32 : vector<32x32xf32>
    %34 = vector.extract_strided_slice %26 {offsets = [0, 1], sizes = [32, 1], strides = [1, 1]} : vector<32x8xf32> to vector<32x1xf32>
    %35 = vector.extract_strided_slice %25 {offsets = [0, 32], sizes = [1, 32], strides = [1, 1]} : vector<1x256xf32> to vector<1x32xf32>
    %36 = vector.broadcast %34 : vector<32x1xf32> to vector<32x32xf32>
    %37 = vector.broadcast %35 : vector<1x32xf32> to vector<32x32xf32>
    %38 = arith.mulf %36, %37 : vector<32x32xf32>
    %39 = arith.addf %33, %38 : vector<32x32xf32>
    %40 = vector.extract_strided_slice %26 {offsets = [0, 2], sizes = [32, 1], strides = [1, 1]} : vector<32x8xf32> to vector<32x1xf32>
    %41 = vector.extract_strided_slice %25 {offsets = [0, 64], sizes = [1, 32], strides = [1, 1]} : vector<1x256xf32> to vector<1x32xf32>
    %42 = vector.broadcast %40 : vector<32x1xf32> to vector<32x32xf32>
    %43 = vector.broadcast %41 : vector<1x32xf32> to vector<32x32xf32>
    %44 = arith.mulf %42, %43 : vector<32x32xf32>
    %45 = arith.addf %39, %44 : vector<32x32xf32>
    %46 = vector.extract_strided_slice %26 {offsets = [0, 3], sizes = [32, 1], strides = [1, 1]} : vector<32x8xf32> to vector<32x1xf32>
    %47 = vector.extract_strided_slice %25 {offsets = [0, 96], sizes = [1, 32], strides = [1, 1]} : vector<1x256xf32> to vector<1x32xf32>
    %48 = vector.broadcast %46 : vector<32x1xf32> to vector<32x32xf32>
    %49 = vector.broadcast %47 : vector<1x32xf32> to vector<32x32xf32>
    %50 = arith.mulf %48, %49 : vector<32x32xf32>
    %51 = arith.addf %45, %50 : vector<32x32xf32>
    %52 = vector.extract_strided_slice %26 {offsets = [0, 4], sizes = [32, 1], strides = [1, 1]} : vector<32x8xf32> to vector<32x1xf32>
    %53 = vector.extract_strided_slice %25 {offsets = [0, 128], sizes = [1, 32], strides = [1, 1]} : vector<1x256xf32> to vector<1x32xf32>
    %54 = vector.broadcast %52 : vector<32x1xf32> to vector<32x32xf32>
    %55 = vector.broadcast %53 : vector<1x32xf32> to vector<32x32xf32>
    %56 = arith.mulf %54, %55 : vector<32x32xf32>
    %57 = arith.addf %51, %56 : vector<32x32xf32>
    %58 = vector.extract_strided_slice %26 {offsets = [0, 5], sizes = [32, 1], strides = [1, 1]} : vector<32x8xf32> to vector<32x1xf32>
    %59 = vector.extract_strided_slice %25 {offsets = [0, 160], sizes = [1, 32], strides = [1, 1]} : vector<1x256xf32> to vector<1x32xf32>
    %60 = vector.broadcast %58 : vector<32x1xf32> to vector<32x32xf32>
    %61 = vector.broadcast %59 : vector<1x32xf32> to vector<32x32xf32>
    %62 = arith.mulf %60, %61 : vector<32x32xf32>
    %63 = arith.addf %57, %62 : vector<32x32xf32>
    %64 = vector.extract_strided_slice %26 {offsets = [0, 6], sizes = [32, 1], strides = [1, 1]} : vector<32x8xf32> to vector<32x1xf32>
    %65 = vector.extract_strided_slice %25 {offsets = [0, 192], sizes = [1, 32], strides = [1, 1]} : vector<1x256xf32> to vector<1x32xf32>
    %66 = vector.broadcast %64 : vector<32x1xf32> to vector<32x32xf32>
    %67 = vector.broadcast %65 : vector<1x32xf32> to vector<32x32xf32>
    %68 = arith.mulf %66, %67 : vector<32x32xf32>
    %69 = arith.addf %63, %68 : vector<32x32xf32>
    %70 = vector.extract_strided_slice %26 {offsets = [0, 7], sizes = [32, 1], strides = [1, 1]} : vector<32x8xf32> to vector<32x1xf32>
    %71 = vector.extract_strided_slice %25 {offsets = [0, 224], sizes = [1, 32], strides = [1, 1]} : vector<1x256xf32> to vector<1x32xf32>
    %72 = vector.broadcast %70 : vector<32x1xf32> to vector<32x32xf32>
    %73 = vector.broadcast %71 : vector<1x32xf32> to vector<32x32xf32>
    %74 = arith.mulf %72, %73 : vector<32x32xf32>
    %75 = arith.addf %69, %74 : vector<32x32xf32>
    %76 = arith.negf %75 : vector<32x32xf32>
    %77 = math.exp %76 : vector<32x32xf32>
    %cst_24 = arith.constant 1.000000e+00 : f32
    %78 = vector.broadcast %cst_24 : f32 to vector<32x32xf32>
    %79 = arith.addf %78, %77 : vector<32x32xf32>
    %80 = arith.divf %78, %79 : vector<32x32xf32>
    %c0_25 = arith.constant 0 : index
    %c0_26 = arith.constant 0 : index
    %81 = vector.load %arg11[%c0_25, %c0_26] : memref<1x2xf32, #tpu.memory_space<vmem>>, vector<1x2xf32>
    %c0_27 = arith.constant 0 : index
    %c0_28 = arith.constant 0 : index
    %82 = vector.load %arg12[%c0_27, %c0_28] : memref<1x1xf32, #tpu.memory_space<vmem>>, vector<1x1xf32>
    %c0_29 = arith.constant 0 : index
    %c0_30 = arith.constant 0 : index
    %c0_31 = arith.constant 0 : index
    %c0_32 = arith.constant 0 : index
    %83 = vector.load %arg2[%c0_29, %c0_30, %c0_31, %c0_32] : memref<1x1x32x32xf32, #tpu.memory_space<vmem>>, vector<1x1x32x32xf32>
    %84 = vector.shape_cast %83 : vector<1x1x32x32xf32> to vector<1x32x32xf32>
    %cst_33 = arith.constant 0.000000e+00 : f32
    %85 = vector.broadcast %cst_33 : f32 to vector<32x32xf32>
    %86 = vector.extract_strided_slice %81 {offsets = [0, 0], sizes = [1, 1], strides = [1, 1]} : vector<1x2xf32> to vector<1x1xf32>
    %87 = vector.broadcast %86 : vector<1x1xf32> to vector<32x32xf32>
    %88 = arith.mulf %87, %80 : vector<32x32xf32>
    %89 = arith.addf %85, %88 : vector<32x32xf32>
    %90 = vector.extract_strided_slice %81 {offsets = [0, 1], sizes = [1, 1], strides = [1, 1]} : vector<1x2xf32> to vector<1x1xf32>
    %91 = vector.shape_cast %84 : vector<1x32x32xf32> to vector<32x32xf32>
    %92 = vector.broadcast %90 : vector<1x1xf32> to vector<32x32xf32>
    %93 = arith.mulf %92, %91 : vector<32x32xf32>
    %94 = arith.addf %89, %93 : vector<32x32xf32>
    %95 = vector.broadcast %82 : vector<1x1xf32> to vector<32x32xf32>
    %96 = arith.addf %94, %95 : vector<32x32xf32>
    %97 = arith.negf %96 : vector<32x32xf32>
    %98 = math.exp %97 : vector<32x32xf32>
    %cst_34 = arith.constant 1.000000e+00 : f32
    %99 = vector.broadcast %cst_34 : f32 to vector<32x32xf32>
    %100 = arith.addf %99, %98 : vector<32x32xf32>
    %101 = arith.divf %99, %100 : vector<32x32xf32>
    %102 = vector.shape_cast %101 : vector<32x32xf32> to vector<1x32x32xf32>
    %c0_35 = arith.constant 0 : index
    %c0_36 = arith.constant 0 : index
    %c0_37 = arith.constant 0 : index
    %c0_38 = arith.constant 0 : index
    %103 = vector.load %arg13[%c0_35, %c0_36, %c0_37, %c0_38] : memref<1x1x32x32xf32, #tpu.memory_space<vmem>>, vector<1x1x32x32xf32>
    %104 = vector.shape_cast %103 : vector<1x1x32x32xf32> to vector<1x32x32xf32>
    %105 = vector.shape_cast %102 : vector<1x32x32xf32> to vector<1x1x32x32xf32>
    tpu.vector_store %arg13[%c0_35, %c0_36, %c0_37, %c0_38], %105 {strides = array<i32>} : memref<1x1x32x32xf32, #tpu.memory_space<vmem>>, vector<1x1x32x32xf32>,
    return
  }
  func.func @transform_0(%arg0: i32) -> (i32, i32, i32) {
    %c0_i32 = arith.constant 0 : i32
    %c0_i32_0 = arith.constant 0 : i32
    %c0_i32_1 = arith.constant 0 : i32
    return %arg0, %c0_i32, %c0_i32_0 : i32, i32, i32
  }
  func.func @transform_1(%arg0: i32) -> (i32, i32, i32, i32) {
    %c0_i32 = arith.constant 0 : i32
    %c0_i32_0 = arith.constant 0 : i32
    %c0_i32_1 = arith.constant 0 : i32
    %c0_i32_2 = arith.constant 0 : i32
    return %arg0, %c0_i32, %c0_i32_0, %c0_i32_1 : i32, i32, i32, i32
  }
  func.func @transform_2(%arg0: i32) -> (i32, i32) {
    %c0_i32 = arith.constant 0 : i32
    %c0_i32_0 = arith.constant 0 : i32
    %c0_i32_1 = arith.constant 0 : i32
    return %c0_i32, %c0_i32_0 : i32, i32
  }
  func.func @transform_3(%arg0: i32) -> (i32, i32) {
    %c0_i32 = arith.constant 0 : i32
    %c0_i32_0 = arith.constant 0 : i32
    %c0_i32_1 = arith.constant 0 : i32
    return %c0_i32, %c0_i32_0 : i32, i32
  }
  func.func @transform_4(%arg0: i32) -> (i32, i32) {
    %c0_i32 = arith.constant 0 : i32
    %c0_i32_0 = arith.constant 0 : i32
    %c0_i32_1 = arith.constant 0 : i32
    return %c0_i32, %c0_i32_0 : i32, i32
  }
  func.func @transform_5(%arg0: i32) -> (i32, i32) {
    %c0_i32 = arith.constant 0 : i32
    %c0_i32_0 = arith.constant 0 : i32
    %c0_i32_1 = arith.constant 0 : i32
    return %c0_i32, %c0_i32_0 : i32, i32
  }
  func.func @transform_6(%arg0: i32) -> (i32, i32) {
    %c0_i32 = arith.constant 0 : i32
    %c0_i32_0 = arith.constant 0 : i32
    %c0_i32_1 = arith.constant 0 : i32
    return %c0_i32, %c0_i32_0 : i32, i32
  }
  func.func @transform_7(%arg0: i32) -> (i32, i32) {
    %c0_i32 = arith.constant 0 : i32
    %c0_i32_0 = arith.constant 0 : i32
    %c0_i32_1 = arith.constant 0 : i32
    return %c0_i32, %c0_i32_0 : i32, i32
  }
  func.func @transform_8(%arg0: i32) -> (i32, i32) {
    %c0_i32 = arith.constant 0 : i32
    %c0_i32_0 = arith.constant 0 : i32
    %c0_i32_1 = arith.constant 0 : i32
    return %c0_i32, %c0_i32_0 : i32, i32
  }
  func.func @transform_9(%arg0: i32) -> (i32, i32) {
    %c0_i32 = arith.constant 0 : i32
    %c0_i32_0 = arith.constant 0 : i32
    %c0_i32_1 = arith.constant 0 : i32
    return %c0_i32, %c0_i32_0 : i32, i32
  }
  func.func @transform_10(%arg0: i32) -> (i32, i32) {
    %c0_i32 = arith.constant 0 : i32
    %c0_i32_0 = arith.constant 0 : i32
    %c0_i32_1 = arith.constant 0 : i32
    return %c0_i32, %c0_i32_0 : i32, i32
  }
  func.func @transform_11(%arg0: i32) -> (i32, i32) {
    %c0_i32 = arith.constant 0 : i32
    %c0_i32_0 = arith.constant 0 : i32
    %c0_i32_1 = arith.constant 0 : i32
    return %c0_i32, %c0_i32_0 : i32, i32
  }
  func.func @transform_12(%arg0: i32) -> (i32, i32, i32, i32) {
    %c0_i32 = arith.constant 0 : i32
    %c0_i32_0 = arith.constant 0 : i32
    %c0_i32_1 = arith.constant 0 : i32
    %c0_i32_2 = arith.constant 0 : i32
    return %arg0, %c0_i32, %c0_i32_0, %c0_i32_1 : i32, i32, i32, i32
  }
}

</mosaic_0001>

<bundles_post_ra>
// kernel: vigseg_forward.4
= control target key start
LH: loop header
LB: loop body
LE: loop exit
PB: predicated region body
PF: predicated region fallthrough
CT: control target
= control target key end

     0   :  { %s1031_s29 = smov 0   ;;  %s1119_s0 = inlined_call_operand.vmem [shape: f32[32,64], index: 0, kind: input, shape index: {}]   ;;  %s1120_s1 = inlined_call_operand.vmem [shape: f32[16,64], index: 1, kind: input, shape index: {}]   ;;  %s1121_s2 = inlined_call_operand.vmem [shape: bf16[64,32], index: 2, kind: input, shape index: {}]   ;;  %s1122_s3 = inlined_call_operand.vmem [shape: f32[1,32], index: 3, kind: input, shape index: {}]   ;;  %s1123_s4 = inlined_call_operand.vmem [shape: bf16[32,16], index: 4, kind: input, shape index: {}]   ;;  %s1124_s5 = inlined_call_operand.vmem [shape: f32[1,16], index: 5, kind: input, shape index: {}]   ;;  %s1125_s6 = inlined_call_operand.vmem [shape: bf16[16,8], index: 6, kind: input, shape index: {}]   ;;  %s1126_s7 = inlined_call_operand.vmem [shape: f32[1,8], index: 7, kind: input, shape index: {}]   ;;  %s1127_s8 = inlined_call_operand.vmem [shape: bf16[8,16], index: 8, kind: input, shape index: {}]   ;;  %s1128_s9 = inlined_call_operand.vmem [shape: f32[1,16], index: 9, kind: input, shape index: {}]   ;;  %s1129_s10 = inlined_call_operand.vmem [shape: bf16[16,32], index: 10, kind: input, shape index: {}]   ;;  %s1130_s11 = inlined_call_operand.vmem [shape: f32[1,32], index: 11, kind: input, shape index: {}]   ;;  %s1131_s12 = inlined_call_operand.vmem [shape: bf16[32,64], index: 12, kind: input, shape index: {}]   ;;  %s1132_s13 = inlined_call_operand.vmem [shape: f32[1,64], index: 13, kind: input, shape index: {}]   ;;  %s1133_s14 = inlined_call_operand.vmem [shape: f32[32,64], index: 14, kind: output, shape index: {}]  }
   0x1 LB: > { %s847_s30 = sadd.s32 4294967295, %s954_s29   ;;  %p851_p0 = scmp.ge.s32.totalorder %s954_s29, 1  ;;  %s954_s29 = sphi %s1031_s29, %s24_s29  }
   0x2   : > { %p413_p1 = scmp.lt.s32.totalorder %s954_s29, 3 }
   0x4   : > { %p414_p2 = pnand %p851_p0, %p413_p1 }
   0x5   : > { %s852_s17 = sshll.u32 (!%p414_p2), %s847_s30, 1 }
   0x6   : > { %417 = sbr.rel (%p414_p2) target bundleno = 985 (0x3d9), region = 76  ;;  %p460_p3 = scmp.lt.s32.totalorder (!%p414_p2), %s852_s17, 3 }
   0xb   : > { %v907_v0 = vld [vmem:[%s1121_s2 + $0x18] sm:$0xff]  ;;  %v906_v1 = vld [vmem:[%s1121_s2 + $0x10] sm:$0xff]  ;;  %s1135_s17 = smov (!%p460_p3, %s852_s17), 3  ;;  %v905_v2 = vld [vmem:[%s1121_s2 + $0x8] sm:$0xff]  ;;  %vm511_vm0 = vcmask 523264   ;;  %vm568_vm1 = vcmask 261120  }
   0xc   : > { %519 = vmatpush.bf16.msra.mxu0 %v907_v0  ;;  %s853_s20 = sshll.u32 %s1135_s17, 3  ;;  %v904_v3 = vld [vmem:[%s1121_s2] sm:$0xff]  ;;  %v909_v7 = vld [vmem:[%s1123_s4 + $0x8] sm:$0xff]  ;;  %vm617_vm2 = vcmask 130048   ;;  %vm663_vm3 = vcmask 1043456   ;;  %vm659_vm4 = vcmask 64512  }
   0xd   : > { %s463_s25 = scalar_lea.vmem %s1119_s0, %s853_s20  ;;  %578 = vmatpush.bf16.msra.mxu1 %v909_v7  ;;  %v908_v8 = vld [vmem:[%s1123_s4] sm:$0xff]  ;;  %s469_s18 = scalar_lea.vmem %s1133_s14, %s853_s20 }
   0xe   : > { %v472_v4 = vld [vmem:[%s463_s25] sm:$0xff]  ;;  %v473_v5 = vld [vmem:[%s463_s25 + $0x8] sm:$0xff] }
   0xf   : > { %v483_v6 = vpack.c.bf16 %v473_v5, %v472_v4  ;;  %v922_v9 = vld [vmem:[%s1122_s3] ss:$0 sm:$0xff] }
  0x10   : > { %520 = vmatpush.bf16.msra.mxu0 %v906_v1  ;;  %v910_v33 = vld [vmem:[%s1125_s6] sm:$0xff] }
  0x11   : > { %579 = vmatpush.bf16.msra.mxu1 %v908_v8  ;;  %628 = vmatpush.bf16.msra.mxu2 %v910_v33  ;;  %v923_v34 = vld [vmem:[%s1124_s5] ss:$0 sm:$0xff] }
  0x12   : > { %v653_v58 = vld [vmem:[%s1127_s8] sm:$0xf] }
  0x13   : > { %v665_v59 = vsel %vm663_vm3, %v653_v58, 0  ;;  %v924_v60 = vld [vmem:[%s1126_s7] ss:$0 sm:$0xff] }
  0x14   : > { %521 = vmatpush.bf16.msra.mxu0 %v905_v2  ;;  %674 = vmatpush.bf16.msra.mxu3 %v665_v59 }
  0x18   : > { %522 = vmatpush.bf16.msra.mxu0 %v904_v3 }
  0x1b   : > { %872 = vmatmul.msk.bf16.vlgmr.msra.gmra.mxu0 %vm511_vm0, %v483_v6 }
  0x98   : > { %v524_v10 = vpop.f32.mrf.mxu0 }
  0x99   : > { %v525_v11 = vadd.f32 %v922_v9, %v524_v10 }
  0x9b   : > { %v531_v12 = vmul.f32 0.044715, %v525_v11  ;;  %v529_v27 = vmul.f32 0.5, %v525_v11 }
  0x9d   : > { %v533_v13 = vmul.f32 %v531_v12, %v525_v11 }
  0x9f   : > { %v535_v14 = vmul.f32 %v533_v13, %v525_v11 }
  0xa0   : > { %v526_v15 = vpop.f32.mrf.mxu0 }
  0xa1   : > { %v527_v16 = vadd.f32 %v922_v9, %v526_v15  ;;  %v537_v17 = vadd.f32 %v535_v14, %v525_v11 }
  0xa3   : > { %v532_v18 = vmul.f32 0.044715, %v527_v16  ;;  %v539_v20 = vmul.f32 0.7978846, %v537_v17  ;;  %v530_v28 = vmul.f32 0.5, %v527_v16 }
  0xa5   : > { %v534_v19 = vmul.f32 %v532_v18, %v527_v16  ;;  %928 = vtanh.f32 %v539_v20  ;;  %v911_v20 = vld [vmem:[%s1129_s10] sm:$0xff] }
  0xa6   : > { %722 = vmatpush.bf16.msrb.mxu2 %v911_v20 }
  0xa7   : > { %v536_v21 = vmul.f32 %v534_v19, %v527_v16 }
  0xa9   : > { %v538_v22 = vadd.f32 %v536_v21, %v527_v16  ;;  %v925_v21 = vld [vmem:[%s1128_s9] ss:$0 sm:$0xff] }
  0xab   : > { %v540_v23 = vmul.f32 0.7978846, %v538_v22  ;;  %v929_v24 = vpop.eup %928 }
  0xac   : > { %v543_v25 = vadd.f32 1.0, %v929_v24 }
  0xad   : > { %930 = vtanh.f32 %v540_v23 }
  0xae   : > { %v545_v30 = vmul.f32 %v543_v25, %v529_v27 }
  0xb3   : > { %v931_v26 = vpop.eup %930 }
  0xb4   : > { %v544_v29 = vadd.f32 1.0, %v931_v26 }
  0xb6   : > { %v546_v31 = vmul.f32 %v544_v29, %v530_v28 }
  0xb8   : > { %v552_v32 = vpack.c.bf16 %v546_v31, %v545_v30 }
  0xba   : > { %881 = vmatmul.msk.bf16.vlgmr.msra.gmra.mxu1 %vm568_vm1, %v552_v32 }
 0x137   : > { %v581_v35 = vpop.f32.mrf.mxu1 }
 0x138   : > { %v582_v36 = vadd.f32 %v923_v34, %v581_v35 }
 0x13a   : > { %v588_v37 = vmul.f32 0.044715, %v582_v36  ;;  %v586_v52 = vmul.f32 0.5, %v582_v36 }
 0x13c   : > { %v590_v38 = vmul.f32 %v588_v37, %v582_v36 }
 0x13e   : > { %v592_v39 = vmul.f32 %v590_v38, %v582_v36 }
 0x13f   : > { %v583_v40 = vpop.f32.mrf.mxu1 }
 0x140   : > { %v584_v41 = vadd.f32 %v923_v34, %v583_v40  ;;  %v594_v42 = vadd.f32 %v592_v39, %v582_v36 }
 0x142   : > { %v589_v43 = vmul.f32 0.044715, %v584_v41  ;;  %v596_v45 = vmul.f32 0.7978846, %v594_v42  ;;  %v587_v53 = vmul.f32 0.5, %v584_v41 }
 0x144   : > { %v591_v44 = vmul.f32 %v589_v43, %v584_v41  ;;  %932 = vtanh.f32 %v596_v45  ;;  %v913_v45 = vld [vmem:[%s1131_s12 + $0x8] sm:$0xff] }
 0x145   : > { %777 = vmatpush.bf16.msrb.mxu3 %v913_v45 }
 0x146   : > { %v593_v46 = vmul.f32 %v591_v44, %v584_v41 }
 0x148   : > { %v595_v47 = vadd.f32 %v593_v46, %v584_v41  ;;  %v912_v46 = vld [vmem:[%s1131_s12] sm:$0xff] }
 0x149   : > { %778 = vmatpush.bf16.msrb.mxu3 %v912_v46 }
 0x14a   : > { %v597_v48 = vmul.f32 0.7978846, %v595_v47  ;;  %v933_v49 = vpop.eup %932  ;;  %v926_v47 = vld [vmem:[%s1130_s11] ss:$0 sm:$0xff] }
 0x14b   : > { %v600_v50 = vadd.f32 1.0, %v933_v49 }
 0x14c   : > { %934 = vtanh.f32 %v597_v48 }
 0x14d   : > { %v602_v55 = vmul.f32 %v600_v50, %v586_v52 }
 0x152   : > { %v935_v51 = vpop.eup %934 }
 0x153   : > { %v601_v54 = vadd.f32 1.0, %v935_v51 }
 0x155   : > { %v603_v56 = vmul.f32 %v601_v54, %v587_v53 }
 0x157   : > { %v607_v57 = vpack.c.bf16 %v603_v56, %v602_v55 }
 0x159   : > { %886 = vmatmul.msk.bf16.vlgmr.msra.gmra.mxu2 %vm617_vm2, %v607_v57 }
 0x1dc   : > { %v630_v61 = vpop.f32.mrf.mxu2 }
 0x1dd   : > { %v631_v62 = vadd.f32 %v924_v60, %v630_v61 }
 0x1df   : > { %v637_v63 = vmul.f32 0.044715, %v631_v62  ;;  %v635_v14 = vmul.f32 0.5, %v631_v62 }
 0x1e1   : > { %v639_v0 = vmul.f32 %v637_v63, %v631_v62 }
 0x1e3   : > { %v641_v1 = vmul.f32 %v639_v0, %v631_v62 }
 0x1e4   : > { %v632_v2 = vpop.f32.mrf.mxu2 }
 0x1e5   : > { %v633_v3 = vadd.f32 %v924_v60, %v632_v2  ;;  %v643_v4 = vadd.f32 %v641_v1, %v631_v62 }
 0x1e7   : > { %v638_v5 = vmul.f32 0.044715, %v633_v3  ;;  %v645_v7 = vmul.f32 0.7978846, %v643_v4  ;;  %v636_v15 = vmul.f32 0.5, %v633_v3 }
 0x1e9   : > { %v640_v6 = vmul.f32 %v638_v5, %v633_v3  ;;  %936 = vtanh.f32 %v645_v7  ;;  %v927_v7 = vld [vmem:[%s1132_s13] ss:$0 sm:$0xff] }
 0x1eb   : > { %v642_v8 = vmul.f32 %v640_v6, %v633_v3 }
 0x1ed   : > { %v644_v9 = vadd.f32 %v642_v8, %v633_v3 }
 0x1ef   : > { %v646_v10 = vmul.f32 0.7978846, %v644_v9  ;;  %v937_v11 = vpop.eup %936  ;;  %v785_v9 = vld [vmem:[%s1120_s1] sm:$0xff] }
 0x1f0   : > { %v649_v12 = vadd.f32 1.0, %v937_v11 }
 0x1f1   : > { %938 = vtanh.f32 %v646_v10 }
 0x1f2   : > { %v651_v17 = vmul.f32 %v649_v12, %v635_v14 }
 0x1f7   : > { %v939_v13 = vpop.eup %938 }
 0x1f8   : > { %v650_v16 = vadd.f32 1.0, %v939_v13  ;;  %v786_v13 = vld [vmem:[%s1120_s1 + $0x8] sm:$0xff] }
 0x1fa   : > { %v652_v18 = vmul.f32 %v650_v16, %v636_v15 }
 0x1fc   : > { %v655_v19 = vpack.c.bf16 %v652_v18, %v651_v17 }
 0x1fe   : > { %887 = vmatmul.msk.bf16.vlgmr.msra.gmra.mxu3 %vm659_vm4, %v655_v19 }
 0x281   : > { %v676_v22 = vpop.f32.mrf.mxu3 }
 0x282   : > { %v677_v23 = vadd.f32 %v925_v21, %v676_v22 }
 0x284   : > { %v683_v24 = vmul.f32 0.044715, %v677_v23  ;;  %v681_v39 = vmul.f32 0.5, %v677_v23 }
 0x286   : > { %v685_v25 = vmul.f32 %v683_v24, %v677_v23 }
 0x288   : > { %v687_v26 = vmul.f32 %v685_v25, %v677_v23 }
 0x289   : > { %v678_v27 = vpop.f32.mrf.mxu3 }
 0x28a   : > { %v689_v28 = vadd.f32 %v687_v26, %v677_v23  ;;  %v679_v29 = vadd.f32 %v925_v21, %v678_v27 }
 0x28c   : > { %v684_v30 = vmul.f32 0.044715, %v679_v29  ;;  %v691_v31 = vmul.f32 0.7978846, %v689_v28  ;;  %v682_v40 = vmul.f32 0.5, %v679_v29 }
 0x28e   : > { %v686_v32 = vmul.f32 %v684_v30, %v679_v29  ;;  %940 = vtanh.f32 %v691_v31 }
 0x290   : > { %v688_v33 = vmul.f32 %v686_v32, %v679_v29 }
 0x292   : > { %v690_v34 = vadd.f32 %v688_v33, %v679_v29 }
 0x294   : > { %v692_v35 = vmul.f32 0.7978846, %v690_v34  ;;  %v941_v36 = vpop.eup %940 }
 0x295   : > { %v695_v37 = vadd.f32 1.0, %v941_v36 }
 0x296   : > { %942 = vtanh.f32 %v692_v35 }
 0x297   : > { %v697_v42 = vmul.f32 %v695_v37, %v681_v39 }
 0x29c   : > { %v943_v38 = vpop.eup %942 }
 0x29d   : > { %v696_v41 = vadd.f32 1.0, %v943_v38 }
 0x29f   : > { %v698_v43 = vmul.f32 %v696_v41, %v682_v40 }
 0x2a1   : > { %v702_v44 = vpack.c.bf16 %v698_v43, %v697_v42 }
 0x2a3   : > { %892 = vmatmul.msk.bf16.vlgmr.msrb.gmra.mxu2 %vm617_vm2, %v702_v44 }
 0x326   : > { %v724_v48 = vpop.f32.mrf.mxu2 }
 0x327   : > { %v725_v49 = vadd.f32 %v926_v47, %v724_v48 }
 0x329   : > { %v731_v50 = vmul.f32 0.044715, %v725_v49  ;;  %v729_v1 = vmul.f32 0.5, %v725_v49 }
 0x32b   : > { %v733_v51 = vmul.f32 %v731_v50, %v725_v49 }
 0x32d   : > { %v735_v52 = vmul.f32 %v733_v51, %v725_v49 }
 0x32e   : > { %v726_v53 = vpop.f32.mrf.mxu2 }
 0x32f   : > { %v737_v54 = vadd.f32 %v735_v52, %v725_v49  ;;  %v727_v55 = vadd.f32 %v926_v47, %v726_v53 }
 0x331   : > { %v732_v56 = vmul.f32 0.044715, %v727_v55  ;;  %v739_v57 = vmul.f32 0.7978846, %v737_v54  ;;  %v730_v2 = vmul.f32 0.5, %v727_v55 }
 0x333   : > { %v734_v58 = vmul.f32 %v732_v56, %v727_v55  ;;  %944 = vtanh.f32 %v739_v57 }
 0x335   : > { %v736_v59 = vmul.f32 %v734_v58, %v727_v55 }
 0x337   : > { %v738_v60 = vadd.f32 %v736_v59, %v727_v55 }
 0x339   : > { %v740_v61 = vmul.f32 0.7978846, %v738_v60  ;;  %v945_v62 = vpop.eup %944 }
 0x33a   : > { %v743_v63 = vadd.f32 1.0, %v945_v62 }
 0x33b   : > { %946 = vtanh.f32 %v740_v61 }
 0x33c   : > { %v745_v4 = vmul.f32 %v743_v63, %v729_v1 }
 0x341   : > { %v947_v0 = vpop.eup %946 }
 0x342   : > { %v744_v3 = vadd.f32 1.0, %v947_v0 }
 0x344   : > { %v746_v5 = vmul.f32 %v744_v3, %v730_v2 }
 0x346   : > { %v752_v6 = vpack.c.bf16 %v746_v5, %v745_v4 }
 0x348   : > { %901 = vmatmul.msk.bf16.vlgmr.msrb.gmra.mxu3 %vm568_vm1, %v752_v6 }
 0x3cb   : > { %v780_v8 = vpop.f32.mrf.mxu3 }
 0x3cc   : > { %v781_v10 = vadd.f32 %v927_v7, %v780_v8 }
 0x3ce   : > { %v787_v11 = vadd.f32 %v785_v9, %v781_v10 }
 0x3d0   : > { %789 = vst.msk [vmem:[%s469_s18] sm:$0xff] %vm511_vm0, %v787_v11 }
 0x3d3   : > { %v782_v12 = vpop.f32.mrf.mxu3 }
 0x3d4   : > { %v783_v14 = vadd.f32 %v927_v7, %v782_v12 }
 0x3d6   : > { %v788_v15 = vadd.f32 %v786_v13, %v783_v14 }
 0x3d8   : > { %790 = vst.msk [vmem:[%s469_s18 + $0x8] sm:$0xff] %vm511_vm0, %v788_v15 }
 0x3d9 PF: > { %s24_s29 = sadd.s32 1, %s954_s29  }
 0x3da   : > { %p21_p4 = scmp.ge.s32.totalorder %s24_s29, 4  }
 0x3dc   :  { %23 = sbr.rel (!%p21_p4) target bundleno = 1 (0x1), region = 106 }

// kernel: vigseg_forward.7
= control target key start
LH: loop header
LB: loop body
LE: loop exit
PB: predicated region body
PF: predicated region fallthrough
CT: control target
= control target key end

     0   :  { %s2872_s0 = inlined_call_operand.vmem [shape: f32[2,16,64], index: 0, kind: input, shape index: {}]   ;;  %s2873_s1 = inlined_call_operand.vmem [shape: f32[2,1,32,32], index: 1, kind: input, shape index: {}]   ;;  %s2874_s2 = inlined_call_operand.vmem [shape: bf16[256,16], index: 2, kind: input, shape index: {}]   ;;  %s2875_s3 = inlined_call_operand.vmem [shape: f32[256,1], index: 3, kind: input, shape index: {}]   ;;  %s2876_s4 = inlined_call_operand.vmem [shape: bf16[64,256], index: 4, kind: input, shape index: {}]   ;;  %s2877_s5 = inlined_call_operand.vmem [shape: f32[64,1], index: 5, kind: input, shape index: {}]   ;;  %s2878_s6 = inlined_call_operand.vmem [shape: bf16[1,64], index: 6, kind: input, shape index: {}]   ;;  %s2879_s7 = inlined_call_operand.<no memory space> [shape: f32[1,1], index: 7, kind: input, shape index: {}]   ;;  %s2880_s8 = inlined_call_operand.vmem [shape: f32[64,256], index: 8, kind: input, shape index: {}]   ;;  %s2881_s9 = inlined_call_operand.vmem [shape: f32[32,8], index: 9, kind: input, shape index: {}]   ;;  %s2882_s10 = inlined_call_operand.vmem [shape: f32[1,2], index: 10, kind: input, shape index: {}]   ;;  %s2883_s12 = inlined_call_operand.hbm [shape: f32[2,1,32,32], index: 12, kind: output, shape index: {}]   ;;  %s2884_s11 = inlined_call_operand.<no memory space> [shape: f32[1,1], index: 11, kind: input, shape index: {}]  }
   0x1   :  { %v17_v0 = vstv %s2879_s7  ;;  %v19_v1 = vstv %s2884_s11 }
   0x2   :  { %18 = vst [vmem:[#allocation2] sm:$0x1] %v17_v0 }
   0x3   :  { %20 = vst [vmem:[#allocation3] sm:$0x1] %v19_v1 }
   0x4   :  { %21 = vsyncpa [#allocation5], 0 }
   0x5   :  { %23 = vsyncpa [#allocation5 + $0x1], 0  ;;  %s2194_s25 = smov 0   ;;  %s2196_s26 = smov 0  }
   0x6   :  { %s2198_s27 = smov 0   ;;  %s2200_s28 = smov 0  }
   0x7 LB: > { %2886 = sst [smem:[#allocation7_spill]] %s2104_s27  ;;  %s2215_s7 = sadd.s32 4294967295, %s2108_s28   ;;  %s2108_s28 = sphi %s2200_s28, %s2894_s28   ;;  %s2104_s27 = sphi %s2198_s27, %s2891_s27   ;;  %s2100_s26 = sphi %s2196_s26, %s2893_s26   ;;  %s2096_s25 = sphi %s2194_s25, %s2892_s25  }
   0x8   : > { %s1767_s11 = sadd.s32 4294967294, %s2108_s28   ;;  %s2219_s29 = sadd.s32 1, %s2108_s28  }
   0x9   : > { %s298_s30 = sadd.s32 1, %s2104_s27  ;;  %s295_s13 = ssub.s32 %s2108_s28, %s2219_s29 }
   0xa   : > { %p308_p0 = scmp.ne.s32.totalorder %s2104_s27, %s2100_s26  ;;  %p296_p1 = scmp.eq.s32.totalorder %s295_s13, 0 }
   0xb   : > { %p309_p2 = scmp.eq.s32.totalorder %s2215_s7, 1  ;;  %p314_p3 = scmp.ne.s32.totalorder %s2100_s26, %s2096_s25 }
   0xc   : > { %p315_p4 = scmp.eq.s32.totalorder %s1767_s11, 1  ;;  %p1770_p7 = scmp.ge.s32.totalorder %s2108_s28, 1 }
   0xd   : > { %s2230_s14 = scalar_select %p296_p1, %s2104_s27, %s298_s30  }
   0xe   : > { %p2232_p5 = por %p309_p2, %p308_p0  ;;  %p2236_p6 = por %p315_p4, %p314_p3 }
   0xf   : > { %2887 = sst [smem:[#allocation8_spill]] %s2230_s14  ;;  %p379_p8 = scmp.lt.s32.totalorder %s2108_s28, 3 }
  0x11   : > { %p380_p9 = pnand %p1770_p7, %p379_p8 }
  0x12   : > { %p426_p10 = scmp.lt.s32.totalorder (!%p380_p9), %s2215_s7, 1  ;;  %s2118_s27 = smov (!%p380_p9), 96  }
  0x13   : > { %383 = sbr.rel (%p380_p9) target bundleno = 1031 (0x407), region = 68  ;;  %s2119_s14 = smov (!%p380_p9), 64  }
  0x14   : > { %s2120_s17 = smov (!%p380_p9), 32  }
  0x18   : > { %v502_v2 = vld [vmem:[%s2875_s3 + $0xf0] sm:$0xff]  ;;  %v500_v3 = vld [vmem:[%s2875_s3 + $0xe0] sm:$0xff]  ;;  %v2110_v5 = vmov 0   ;;  %s2256_s23 = scalar_select %p426_p10, %s2215_s7, 1  ;;  %v503_v8 = vld [vmem:[%s2875_s3 + $0xf8] sm:$0xff]  ;;  %vm744_vm0 = vcmask 130048  }
  0x19   : > { %v486_v4 = vld [vmem:[%s2875_s3 + $0x70] sm:$0xff]  ;;  %1987 = vset.pattern.permute.xlu2 %v2110_v5  ;;  %1986 = vset.pattern.permute.xlu1 %v2110_v5  ;;  %v501_v10 = vld [vmem:[%s2875_s3 + $0xe8] sm:$0xff]  ;;  %v487_v11 = vld [vmem:[%s2875_s3 + $0x78] sm:$0xff]  ;;  %vm1104_vm1 = vcmask 523264  }
  0x1a   : > { %1985 = vset.pattern.permute.xlu0 %v2110_v5  ;;  %646 = vperm.xlu2 %1987, %v500_v3   ;;  %s1904_s24 = sshll.u32 %s2256_s23, 4  ;;  %v1906_v12 = vld [vmem:[%s2874_s2] sm:$0xff]  ;;  %v1917_v13 = vld [vmem:[%s2874_s2 + $0x58] sm:$0xff]  ;;  %v498_v15 = vld [vmem:[%s2875_s3 + $0xd0] sm:$0xff]  ;;  %s1905_s20 = sshll.u32 %s2256_s23, 5 }
  0x1b   : > { %656 = vperm.xlu0 %1985, %v502_v2   ;;  %576 = vperm.xlu1 %1986, %v486_v4   ;;  %s430_s13 = scalar_lea.vmem %s2872_s0, %s1904_s24  ;;  %v1914_v14 = vld [vmem:[%s2874_s2 + $0x40] sm:$0xff]  ;;  %v485_v16 = vld [vmem:[%s2875_s3 + $0x68] sm:$0xff]  ;;  %v499_v18 = vld [vmem:[%s2875_s3 + $0xd8] sm:$0xff]  ;;  %s2788_s24 = scalar_lea.vmem %s2873_s1, %s1905_s20 }
  0x1c   : > { %v437_v6 = vld [vmem:[%s430_s13] sm:$0xff]  ;;  %v438_v7 = vld [vmem:[%s430_s13 + $0x8] sm:$0xff]  ;;  %v483_v19 = vld [vmem:[%s2875_s3 + $0x58] sm:$0xff]  ;;  %s423_s23 = sand.u32 1, %s2100_s26   ;;  %s1930_s13 = sshll.u32 %s2215_s7, 5 }
  0x1d   : > { %v471_v9 = vpack.c.bf16 %v438_v7, %v437_v6  ;;  %v484_v17 = vld [vmem:[%s2875_s3 + $0x60] sm:$0xff]  ;;  %v482_v20 = vld [vmem:[%s2875_s3 + $0x50] sm:$0xff]  ;;  %v1907_v21 = vld [vmem:[%s2874_s2 + $0x8] sm:$0xff]  ;;  %s1771_s11 = sshll.u32 %s423_s23, 5  ;;  %s1689_s7 = scalar_lea.hbm %s2883_s12, %s1930_s13 }
  0x1e   : > { %v1918_v22 = vld [vmem:[%s2874_s2 + $0x60] sm:$0xff]  ;;  %v1915_v23 = vld [vmem:[%s2874_s2 + $0x48] sm:$0xff]  ;;  %v494_v27 = vld [vmem:[%s2875_s3 + $0xb0] sm:$0xff]  ;;  %s2824_s30 = scalar_lea.vmem [#allocation4], %s1771_s11  ;;  %s1692_s18 = sshll.u32 %s1689_s7, 4  ;;  %s1693_s18 = int_to_ptr.hbm [resolvable:$true] %s1692_s18 }
  0x1f   : > { %800 = vmatpush.bf16.msra.mxu0 %v471_v9  ;;  %1932 = vmatpush.bf16.msra.mxu3 %v471_v9  ;;  %v480_v24 = vld [vmem:[%s2875_s3 + $0x40] sm:$0xff]  ;;  %v497_v26 = vld [vmem:[%s2875_s3 + $0xc8] sm:$0xff]  ;;  %v495_v28 = vld [vmem:[%s2875_s3 + $0xb8] sm:$0xff]  ;;  %s1678_s19 = scalar_lea.sflag [#allocation5], %s423_s23  ;;  %s2060_s20 = sshra.s32 %s1693_s18, 4  ;;  %s2061_s20 = int_to_ptr.hbm [resolvable:$true] %s2060_s20 }
  0x20   : > { %1931 = vmatpush.bf16.msra.mxu1 %v471_v9  ;;  %v496_v25 = vld [vmem:[%s2875_s3 + $0xc0] sm:$0xff]  ;;  %v481_v29 = vld [vmem:[%s2875_s3 + $0x48] sm:$0xff]  ;;  %v1908_v30 = vld [vmem:[%s2874_s2 + $0x10] sm:$0xff]  ;;  %s2062_s21 = scalar_lea.hbm %s2061_s20, 32  ;;  %s2066_s11 = scalar_lea.hbm %s2883_s12, 64 }
  0x21   : > { %v1919_v31 = vld [vmem:[%s2874_s2 + $0x68] sm:$0xff]  ;;  %v1916_v32 = vld [vmem:[%s2874_s2 + $0x50] sm:$0xff]  ;;  %v492_v33 = vld [vmem:[%s2875_s3 + $0xa0] sm:$0xff]  ;;  %p2063_p11 = scmp.ne.s32.totalorder %s2061_s20, %s2062_s21  ;;  %p2067_p0 = scmp.lt.s32.totalorder %s2061_s20, %s2883_s12 }
  0x22   : > { %651 = vperm.xlu2 %1987, %v501_v10   ;;  %1840 = vmatmul.msk.bf16.vlgmr.msra.gmra.mxu0 %vm744_vm0, %v1906_v12  ;;  %v479_v34 = vld [vmem:[%s2875_s3 + $0x38] sm:$0xff]  ;;  %v478_v35 = vld [vmem:[%s2875_s3 + $0x30] sm:$0xff]  ;;  %v493_v36 = vld [vmem:[%s2875_s3 + $0xa8] sm:$0xff]  ;;  %p2068_p1 = scmp.lt.s32.totalorder %s2066_s11, %s2062_s21 }
  0x23   : > { %661 = vperm.xlu0 %1985, %v503_v8   ;;  %581 = vperm.xlu1 %1986, %v487_v11   ;;  %v477_v37 = vld [vmem:[%s2875_s3 + $0x28] sm:$0xff]  ;;  %v476_v38 = vld [vmem:[%s2875_s3 + $0x20] sm:$0xff]  ;;  %v1909_v39 = vld [vmem:[%s2874_s2 + $0x18] sm:$0xff]  ;;  %p2064_p12 = pnand %p2063_p11, %p2232_p5 }
  0x24   : > { %1851 = vmatmul.msk.bf16.vlgmr.msra.gmra.mxu3 %vm744_vm0, %v1917_v13  ;;  %1848 = vmatmul.msk.bf16.vlgmr.msra.gmra.mxu1 %vm744_vm0, %v1914_v14  ;;  %v1920_v40 = vld [vmem:[%s2874_s2 + $0x70] sm:$0xff]  ;;  %v491_v43 = vld [vmem:[%s2875_s3 + $0x98] sm:$0xff]  ;;  %v488_v44 = vld [vmem:[%s2875_s3 + $0x80] sm:$0xff]  ;;  %p2069_p2 = por %p2068_p1, %p2067_p0 }
  0x25   : > { %v474_v41 = vld [vmem:[%s2875_s3 + $0x10] sm:$0xff]  ;;  %v489_v45 = vld [vmem:[%s2875_s3 + $0x88] sm:$0xff]  ;;  %v475_v46 = vld [vmem:[%s2875_s3 + $0x18] sm:$0xff]  ;;  %p2065_p13 = pneg %p2064_p12 }
  0x26   : > { %v490_v42 = vld [vmem:[%s2875_s3 + $0x90] sm:$0xff]  ;;  %v1910_v47 = vld [vmem:[%s2874_s2 + $0x20] sm:$0xff]  ;;  %v1921_v48 = vld [vmem:[%s2874_s2 + $0x78] sm:$0xff] }
  0x27   : > { %v944_v49 = vld [vmem:[%s2877_s5 + $0x30] sm:$0xff]  ;;  %v473_v50 = vld [vmem:[%s2875_s3 + $0x8] sm:$0xff]  ;;  %v472_v51 = vld [vmem:[%s2875_s3] sm:$0xff]  ;;  %p2070_p3 = pnand %p2069_p2, %p2065_p13 }
  0x28   : > { %v943_v52 = vld [vmem:[%s2877_s5 + $0x28] sm:$0xff]  ;;  %v942_v53 = vld [vmem:[%s2877_s5 + $0x20] sm:$0xff]  ;;  %v945_v54 = vld [vmem:[%s2877_s5 + $0x38] sm:$0xff] }
  0x29   : > { %v1911_v55 = vld [vmem:[%s2874_s2 + $0x28] sm:$0xff]  ;;  %v938_v56 = vld [vmem:[%s2877_s5] sm:$0xff]  ;;  %v941_v57 = vld [vmem:[%s2877_s5 + $0x18] sm:$0xff] }
  0x2a   : > { %636 = vperm.xlu2 %1987, %v498_v15   ;;  %v940_v58 = vld [vmem:[%s2877_s5 + $0x10] sm:$0xff]  ;;  %v2431_v60 = vld [vmem:[%s2881_s9] sm:$0xff]  ;;  %v939_v62 = vld [vmem:[%s2877_s5 + $0x8] sm:$0xff] }
  0x2b   : > { %571 = vperm.xlu1 %1986, %v485_v16   ;;  %566 = vperm.xlu0 %1985, %v484_v17   ;;  %v1097_v61 = vld [vmem:[#allocation2] sm:$0x1]  ;;  %v1912_v63 = vld [vmem:[%s2874_s2 + $0x30] sm:$0xff]  ;;  %v2444_v0 = vld [vmem:[%s2881_s9 + $0x18] sm:$0xff] }
  0x2c   : > { %v2451_v2 = vld [vmem:[%s2881_s9 + $0x10] sm:$0xff]  ;;  %v2456_v3 = vld [vmem:[%s2881_s9 + $0x8] sm:$0xff]  ;;  %v1913_v7 = vld [vmem:[%s2874_s2 + $0x38] sm:$0xff] }
  0x32   : > { %561 = vperm.xlu2 %1987, %v483_v19   ;;  %1841 = vmatmul.msk.bf16.gmra.mxu0 %vm744_vm0, %v1907_v21 }
  0x33   : > { %641 = vperm.xlu0 %1985, %v499_v18   ;;  %556 = vperm.xlu1 %1986, %v482_v20  }
  0x34   : > { %1852 = vmatmul.msk.bf16.gmra.mxu3 %vm744_vm0, %v1918_v22  ;;  %1849 = vmatmul.msk.bf16.gmra.mxu1 %vm744_vm0, %v1915_v23 }
  0x3a   : > { %546 = vperm.xlu2 %1987, %v480_v24  }
  0x3b   : > { %626 = vperm.xlu0 %1985, %v496_v25   ;;  %631 = vperm.xlu1 %1986, %v497_v26  }
  0x42   : > { %621 = vperm.xlu2 %1987, %v495_v28   ;;  %1842 = vmatmul.msk.bf16.gmra.mxu0 %vm744_vm0, %v1908_v30 }
  0x43   : > { %616 = vperm.xlu1 %1986, %v494_v27   ;;  %551 = vperm.xlu0 %1985, %v481_v29  }
  0x44   : > { %1853 = vmatmul.msk.bf16.gmra.mxu3 %vm744_vm0, %v1919_v31  ;;  %1850 = vmatmul.msk.bf16.gmra.mxu1 %vm744_vm0, %v1916_v32 }
  0x4a   : > { %606 = vperm.xlu2 %1987, %v492_v33  }
  0x4b   : > { %541 = vperm.xlu1 %1986, %v479_v34   ;;  %536 = vperm.xlu0 %1985, %v478_v35  }
  0x52   : > { %531 = vperm.xlu2 %1987, %v477_v37   ;;  %1843 = vmatmul.msk.bf16.gmra.mxu0 %vm744_vm0, %v1909_v39 }
  0x53   : > { %611 = vperm.xlu0 %1985, %v493_v36   ;;  %526 = vperm.xlu1 %1986, %v476_v38  }
  0x54   : > { %1854 = vmatmul.msk.bf16.gmra.mxu3 %vm744_vm0, %v1920_v40 }
  0x5a   : > { %516 = vperm.xlu2 %1987, %v474_v41  }
  0x5b   : > { %596 = vperm.xlu0 %1985, %v490_v42   ;;  %601 = vperm.xlu1 %1986, %v491_v43  }
  0x62   : > { %591 = vperm.xlu2 %1987, %v489_v45   ;;  %1844 = vmatmul.msk.bf16.gmra.mxu0 %vm744_vm0, %v1910_v47 }
  0x63   : > { %586 = vperm.xlu1 %1986, %v488_v44   ;;  %521 = vperm.xlu0 %1985, %v475_v46  }
  0x64   : > { %1855 = vmatmul.msk.bf16.gmra.mxu3 %vm744_vm0, %v1921_v48 }
  0x6a   : > { %978 = vperm.xlu2 %1987, %v944_v49  }
  0x6b   : > { %511 = vperm.xlu1 %1986, %v473_v50   ;;  %506 = vperm.xlu0 %1985, %v472_v51  }
  0x72   : > { %973 = vperm.xlu2 %1987, %v943_v52   ;;  %1845 = vmatmul.msk.bf16.gmra.mxu0 %vm744_vm0, %v1911_v55 }
  0x73   : > { %968 = vperm.xlu1 %1986, %v942_v53   ;;  %983 = vperm.xlu0 %1985, %v945_v54  }
  0x74   : > { %v2426_v59 = vpop.permute.xlu2 %646 }
  0x7a   : > { %948 = vperm.xlu2 %1987, %v938_v56  }
  0x7b   : > { %963 = vperm.xlu1 %1986, %v941_v57   ;;  %958 = vperm.xlu0 %1985, %v940_v58  }
  0x7c   : > { %v2446_v1 = vpop.permute.xlu2 %651 }
  0x82   : > { %1186 = vperm.xlu2 %1987, %v2431_v60   ;;  %1846 = vmatmul.msk.bf16.gmra.mxu0 %vm744_vm0, %v1912_v63 }
  0x83   : > { %1100 = vperm.xlu1 %1986, %v1097_v61   ;;  %953 = vperm.xlu0 %1985, %v939_v62  }
  0x84   : > { %v2468_v8 = vpop.permute.xlu2 %636 }
  0x8a   : > { %1201 = vperm.xlu2 %1987, %v2444_v0  }
  0x8b   : > { %1196 = vperm.xlu1 %1986, %v2451_v2   ;;  %1191 = vperm.xlu0 %1985, %v2456_v3  }
  0x8c   : > { %v2475_v11 = vpop.permute.xlu2 %561 }
  0x8d   : > { %v2461_v4 = vpop.permute.xlu0 %656  ;;  %v2463_v6 = vpop.permute.xlu1 %576 }
  0x92   : > { %1847 = vmatmul.msk.bf16.gmra.mxu0 %vm744_vm0, %v1913_v7 }
  0x94   : > { %v547_v17 = vpop.permute.xlu2 %546 }
  0x95   : > { %v2471_v9 = vpop.permute.xlu0 %661  ;;  %v2473_v10 = vpop.permute.xlu1 %581 }
  0x9c   : > { %v622_v23 = vpop.permute.xlu2 %621 }
  0x9d   : > { %v2477_v12 = vpop.permute.xlu1 %571  ;;  %v2479_v13 = vpop.permute.xlu0 %566 }
  0x9f   : > { %v802_v14 = vpop.f32.mrf.mxu0 }
  0xa1   : > { %v2501_v45 = vpop.f32.mrf.mxu1 }
  0xa4   : > { %v2495_v34 = vpop.permute.xlu2 %606 }
  0xa5   : > { %v2481_v15 = vpop.permute.xlu0 %641  ;;  %v2483_v16 = vpop.permute.xlu1 %556 }
  0xa7   : > { %v857_v18 = vpop.f32.mrf.mxu3  ;;  %v804_v19 = vpop.f32.mrf.mxu0 }
  0xa9   : > { %v2509_v56 = vpop.f32.mrf.mxu1 }
  0xac   : > { %v532_v41 = vpop.permute.xlu2 %531 }
  0xad   : > { %v2485_v20 = vpop.permute.xlu0 %626  ;;  %v2487_v21 = vpop.permute.xlu1 %631 }
  0xaf   : > { %v859_v22 = vpop.f32.mrf.mxu3  ;;  %v807_v24 = vpop.f32.mrf.mxu0 }
  0xb0   : > { %v860_v25 = vadd.f32 %v859_v22, %v622_v23 }
  0xb2   : > { %v905_v28 = vmax.f32 %v860_v25, 0.0 }
  0xb4   : > { %v517_v53 = vpop.permute.xlu2 %516 }
  0xb5   : > { %v617_v26 = vpop.permute.xlu1 %616  ;;  %v2489_v27 = vpop.permute.xlu0 %551  ;;  %v808_v55 = vadd.f32 %v807_v24, %v517_v53 }
  0xb6   : > { %v858_v29 = vadd.f32 %v857_v18, %v617_v26 }
  0xb7   : > { %v2491_v30 = vpop.f32.mrf.mxu3  ;;  %v809_v32 = vpop.f32.mrf.mxu0  ;;  %v884_v63 = vmax.f32 %v808_v55, 0.0 }
  0xb8   : > { %v904_v31 = vmax.f32 %v858_v29, 0.0 }
  0xba   : > { %v2493_v33 = vpack.c.bf16 %v905_v28, %v904_v31 }
  0xbd   : > { %v542_v35 = vpop.permute.xlu1 %541  ;;  %v537_v36 = vpop.permute.xlu0 %536 }
  0xbf   : > { %v2497_v37 = vpop.f32.mrf.mxu3  ;;  %v812_v38 = vpop.f32.mrf.mxu0 }
  0xc5   : > { %v2499_v39 = vpop.permute.xlu0 %611  ;;  %v527_v40 = vpop.permute.xlu1 %526 }
  0xc6   : > { %v813_v43 = vadd.f32 %v812_v38, %v527_v40 }
  0xc7   : > { %v867_v42 = vpop.f32.mrf.mxu3  ;;  %v814_v44 = vpop.f32.mrf.mxu0 }
  0xc8   : > { %v815_v46 = vadd.f32 %v814_v44, %v532_v41  ;;  %v886_v47 = vmax.f32 %v813_v43, 0.0  ;;  %v847_v41 = vpop.f32.mrf.mxu1 }
  0xca   : > { %v887_v48 = vmax.f32 %v815_v46, 0.0 }
  0xcc   : > { %v2507_v51 = vpack.c.bf16 %v887_v48, %v886_v47 }
  0xcd   : > { %v2503_v49 = vpop.permute.xlu0 %596  ;;  %v2505_v50 = vpop.permute.xlu1 %601 }
  0xcf   : > { %v869_v52 = vpop.f32.mrf.mxu3  ;;  %v817_v54 = vpop.f32.mrf.mxu0 }
  0xd0   : > { %v818_v7 = vadd.f32 %v817_v54, %v537_v36  ;;  %v849_v48 = vpop.f32.mrf.mxu1 }
  0xd2   : > { %v888_v26 = vmax.f32 %v818_v7, 0.0 }
  0xd5   : > { %v2511_v57 = vpop.permute.xlu1 %586  ;;  %v522_v58 = vpop.permute.xlu0 %521 }
  0xd6   : > { %v810_v61 = vadd.f32 %v809_v32, %v522_v58 }
  0xd7   : > { %v872_v62 = vpop.f32.mrf.mxu3  ;;  %v819_v22 = vpop.f32.mrf.mxu0 }
  0xd8   : > { %v885_v18 = vmax.f32 %v810_v61, 0.0  ;;  %v820_v23 = vadd.f32 %v819_v22, %v542_v35  ;;  %v870_v22 = vadd.f32 %v869_v52, %v2481_v15 }
  0xda   : > { %v2513_v25 = vpack.c.bf16 %v885_v18, %v884_v63  ;;  %v889_v28 = vmax.f32 %v820_v23, 0.0  ;;  %v852_v18 = vpop.f32.mrf.mxu1 }
  0xdc   : > { %v2515_v40 = vpack.c.bf16 %v889_v28, %v888_v26 }
  0xdd   : > { %v512_v29 = vpop.permute.xlu1 %511  ;;  %v507_v31 = vpop.permute.xlu0 %506 }
  0xde   : > { %v805_v38 = vadd.f32 %v804_v19, %v512_v29  ;;  %v803_v24 = vadd.f32 %v802_v14, %v507_v31  ;;  %v873_v14 = vadd.f32 %v872_v62, %v2426_v59  ;;  %v865_v59 = vadd.f32 %v2497_v37, %v2487_v21 }
  0xdf   : > { %v874_v43 = vpop.f32.mrf.mxu3  ;;  %v822_v46 = vpop.f32.mrf.mxu0 }
  0xe0   : > { %v883_v44 = vmax.f32 %v805_v38, 0.0  ;;  %v882_v32 = vmax.f32 %v803_v24, 0.0  ;;  %v2517_v47 = vadd.f32 %v822_v46, %v547_v17  ;;  %v875_v19 = vadd.f32 %v874_v43, %v2446_v1 }
  0xe1   : > { %v868_v17 = vadd.f32 %v867_v42, %v2468_v8  ;;  %v910_v23 = vmax.f32 %v873_v14, 0.0  ;;  %v907_v42 = vmax.f32 %v865_v59, 0.0 }
  0xe2   : > { %v2519_v36 = vpack.c.bf16 %v883_v44, %v882_v32  ;;  %v911_v26 = vmax.f32 %v875_v19, 0.0  ;;  %v854_v43 = vpop.f32.mrf.mxu1 }
  0xe3   : > { %v908_v1 = vmax.f32 %v868_v17, 0.0  ;;  %v855_v21 = vadd.f32 %v854_v43, %v2499_v39  ;;  %v1929_v43 = vld [vmem:[%s2876_s4 + $0x34] sm:$0xf0] }
  0xe4   : > { %v936_v29 = vpack.c.bf16 %v911_v26, %v910_v23 }
  0xe5   : > { %v903_v46 = vmax.f32 %v855_v21, 0.0 }
  0xe7   : > { %v877_v35 = vpop.f32.mrf.mxu3  ;;  %v2521_v53 = vpop.f32.mrf.mxu0 }
  0xe8   : > { %v878_v54 = vadd.f32 %v877_v35, %v2461_v4  ;;  %v863_v4 = vadd.f32 %v2491_v30, %v2485_v20  ;;  %v853_v30 = vadd.f32 %v852_v18, %v2495_v34  ;;  %v592_v35 = vpop.permute.xlu2 %591  ;;  %v843_v34 = vadd.f32 %v2501_v45, %v2511_v57 }
  0xea   : > { %v912_v63 = vmax.f32 %v878_v54, 0.0  ;;  %v906_v15 = vmax.f32 %v863_v4, 0.0  ;;  %v902_v32 = vmax.f32 %v853_v30, 0.0  ;;  %v845_v54 = vadd.f32 %v2509_v56, %v592_v35  ;;  %v1868_v4 = vld [vmem:[%s2876_s4 + $0x18] sm:$0xf0] }
  0xec   : > { %v934_v37 = vpack.c.bf16 %v907_v42, %v906_v15  ;;  %v932_v39 = vpack.c.bf16 %v903_v46, %v902_v32  ;;  %v1925_v15 = vld [vmem:[%s2876_s4 + $0x14] sm:$0xf0]  ;;  %v1874_v42 = vld [vmem:[%s2876_s4 + $0x20] sm:$0xf] }
  0xef   : > { %v879_v55 = vpop.f32.mrf.mxu3  ;;  %v827_v61 = vpop.f32.mrf.mxu0 }
  0xf0   : > { %v880_v58 = vadd.f32 %v879_v55, %v2471_v9  ;;  %v909_v9 = vmax.f32 %v870_v22, 0.0  ;;  %v828_v62 = vadd.f32 %v827_v61, %v2483_v16  ;;  %v848_v16 = vadd.f32 %v847_v41, %v2503_v49  ;;  %v1922_v41 = vld [vmem:[%s2876_s4 + $0x4] sm:$0xf]  ;;  %v979_v30 = vpop.permute.xlu2 %978 }
  0xf1   : > { %v898_v61 = vmax.f32 %v843_v34, 0.0 }
  0xf2   : > { %v913_v7 = vmax.f32 %v880_v58, 0.0  ;;  %v892_v52 = vmax.f32 %v828_v62, 0.0  ;;  %v935_v24 = vpack.c.bf16 %v909_v9, %v908_v1  ;;  %v900_v55 = vmax.f32 %v848_v16, 0.0  ;;  %v1926_v62 = vld [vmem:[%s2876_s4 + $0x24] sm:$0xf] }
  0xf3   : > { %v899_v58 = vmax.f32 %v845_v54, 0.0  ;;  %v890_v1 = vmax.f32 %v2517_v47, 0.0  ;;  %v1858_v47 = vld [vmem:[%s2876_s4] sm:$0xf] }
  0xf4   : > { %v937_v28 = vpack.c.bf16 %v913_v7, %v912_v63 }
  0xf6   : > { %1055 = vmatpush.bf16.msra.mxu2 %v937_v28  ;;  %v1924_v28 = vld [vmem:[%s2876_s4 + $0x14] sm:$0xf] }
  0xf7   : > { %v829_v31 = vpop.f32.mrf.mxu0  ;;  %v1871_v59 = vor.u32 %v1924_v28, %v1868_v4 }
  0xf8   : > { %v830_v8 = vadd.f32 %v829_v31, %v2475_v11  ;;  %v850_v11 = vadd.f32 %v849_v48, %v2505_v50  ;;  %v930_v50 = vpack.c.bf16 %v899_v58, %v898_v61 }
  0xfa   : > { %1056 = vmatpush.bf16.msra.mxu2 %v936_v29  ;;  %v893_v38 = vmax.f32 %v830_v8, 0.0  ;;  %v901_v14 = vmax.f32 %v850_v11, 0.0  ;;  %v1876_v29 = vld [vmem:[%s2876_s4 + $0x28] sm:$0xf0]  ;;  %v1866_v8 = vld [vmem:[%s2876_s4 + $0x10] sm:$0xf] }
  0xfc   : > { %v927_v20 = vpack.c.bf16 %v893_v38, %v892_v52  ;;  %v931_v49 = vpack.c.bf16 %v901_v14, %v900_v55  ;;  %v1927_v52 = vld [vmem:[%s2876_s4 + $0x24] sm:$0xf0] }
  0xfd   : > { %v1875_v38 = vor.u32 %v1927_v52, %v1874_v42 }
  0xfe   : > { %1057 = vmatpush.bf16.msra.mxu2 %v935_v24  ;;  %v1882_v24 = vld [vmem:[%s2876_s4 + $0x30] sm:$0xf] }
  0xff   : > { %v832_v44 = vpop.f32.mrf.mxu0 }
 0x100   : > { %v833_v17 = vadd.f32 %v832_v44, %v2479_v13 }
 0x102   : > { %1058 = vmatpush.bf16.msra.mxu2 %v934_v37  ;;  %v974_v37 = vpop.permute.xlu2 %973 }
 0x106   : > { %1059 = vmatpush.bf16.msra.mxu2 %v2493_v33  ;;  %v1860_v33 = vld [vmem:[%s2876_s4 + $0x8] sm:$0xf0] }
 0x107   : > { %v834_v19 = vpop.f32.mrf.mxu0  ;;  %v1863_v48 = vor.u32 %v1922_v41, %v1860_v33 }
 0x108   : > { %v835_v63 = vadd.f32 %v834_v19, %v2477_v12 }
 0x10a   : > { %1060 = vmatpush.bf16.msra.mxu2 %v932_v39  ;;  %v895_v23 = vmax.f32 %v835_v63, 0.0  ;;  %v949_v16 = vpop.permute.xlu2 %948 }
 0x10e   : > { %1061 = vmatpush.bf16.msra.mxu2 %v931_v49  ;;  %v984_v49 = vpop.permute.xlu0 %983 }
 0x10f   : > { %v837_v56 = vpop.f32.mrf.mxu0 }
 0x110   : > { %v838_v45 = vadd.f32 %v837_v56, %v2463_v6  ;;  %v894_v6 = vmax.f32 %v833_v17, 0.0  ;;  %v2111_v56 = vmov 1  }
 0x111   : > { %1989 = vset.pattern.permute.xlu1 %v2111_v56  ;;  %1988 = vset.pattern.permute.xlu0 %v2111_v56 }
 0x112   : > { %1062 = vmatpush.bf16.msra.mxu2 %v930_v50  ;;  %v896_v18 = vmax.f32 %v838_v45, 0.0  ;;  %v928_v12 = vpack.c.bf16 %v895_v23, %v894_v6  ;;  %v969_v50 = vpop.permute.xlu1 %968  ;;  %1218 = vperm.xlu1 %1989, %v2456_v3  }
 0x113   : > { %1214 = vperm.xlu0 %1988, %v2431_v60   ;;  %1990 = vset.pattern.permute.xlu2 %v2111_v56 }
 0x114   : > { %1222 = vperm.xlu2 %1990, %v2451_v2  }
 0x115   : > { %1063 = vmatmul.bf16.vlgmr.msra.gmra.mxu2 %v1863_v48 }
 0x116   : > { %v959_v48 = vpop.permute.xlu0 %958 }
 0x117   : > { %v839_v57 = vpop.f32.mrf.mxu0 }
 0x118   : > { %v840_v7 = vadd.f32 %v839_v57, %v2473_v10  ;;  %v825_v10 = vadd.f32 %v2521_v53, %v2489_v27  ;;  %v1879_v27 = vor.u32 %v1926_v62, %v1876_v29  ;;  %v1923_v53 = vld [vmem:[%s2876_s4 + $0x4] sm:$0xf0] }
 0x119   : > { %v1859_v31 = vor.u32 %v1923_v53, %v1858_v47 }
 0x11a   : > { %v897_v22 = vmax.f32 %v840_v7, 0.0  ;;  %v891_v13 = vmax.f32 %v825_v10, 0.0  ;;  %1226 = vperm.xlu1 %1989, %v2444_v0  }
 0x11c   : > { %v929_v26 = vpack.c.bf16 %v897_v22, %v896_v18  ;;  %v926_v9 = vpack.c.bf16 %v891_v13, %v890_v1  ;;  %v964_v22 = vpop.permute.xlu1 %963 }
 0x11e   : > { %1026 = vmatpush.bf16.msrb.mxu1 %v929_v26  ;;  %v2112_v26 = vmov 2   ;;  %v954_v1 = vpop.permute.xlu0 %953 }
 0x11f   : > { %1991 = vset.pattern.permute.xlu0 %v2112_v26  ;;  %1993 = vset.pattern.permute.xlu2 %v2112_v26 }
 0x120   : > { %1254 = vperm.xlu0 %1991, %v2431_v60   ;;  %1262 = vperm.xlu2 %1993, %v2451_v2  }
 0x122   : > { %1027 = vmatpush.bf16.msrb.mxu1 %v928_v12  ;;  %1992 = vset.pattern.permute.xlu1 %v2112_v26 }
 0x123   : > { %1258 = vperm.xlu1 %1992, %v2456_v3  }
 0x125   : > { %1068 = vmatmul.bf16.gmra.mxu2 %v1871_v59 }
 0x126   : > { %1028 = vmatpush.bf16.msrb.mxu1 %v927_v20  ;;  %v1883_v20 = vor.u32 %v1929_v43, %v1882_v24  ;;  %v1092_v24 = vld [vmem:[%s2878_s6] sm:$0x1] }
 0x127   : > { %v1133_v43 = vld [vmem:[%s2880_s8 + $0x60] sm:$0xff] }
 0x12a   : > { %1029 = vmatpush.bf16.msrb.mxu1 %v926_v9 }
 0x12b   : > { %1266 = vperm.xlu1 %1992, %v2444_v0  }
 0x12e   : > { %1030 = vmatpush.bf16.msrb.mxu1 %v2515_v40  ;;  %v1928_v40 = vld [vmem:[%s2876_s4 + $0x34] sm:$0xf] }
 0x132   : > { %1031 = vmatpush.bf16.msrb.mxu1 %v2507_v51  ;;  %v1884_v51 = vld [vmem:[%s2876_s4 + $0x38] sm:$0xf0] }
 0x135   : > { %1073 = vmatmul.bf16.gmra.mxu2 %v1879_v27 }
 0x136   : > { %1032 = vmatpush.bf16.msrb.mxu1 %v2513_v25  ;;  %v1887_v25 = vor.u32 %v1928_v40, %v1884_v51 }
 0x13a   : > { %1033 = vmatpush.bf16.msrb.mxu1 %v2519_v36  ;;  %v1867_v36 = vor.u32 %v1925_v15, %v1866_v8 }
 0x13d   : > { %1034 = vmatmul.bf16.vlgmr.msrb.gmra.mxu1 %v1859_v31 }
 0x145   : > { %1078 = vmatmul.bf16.gmra.mxu2 %v1887_v25  ;;  %v2113_v25 = vmov 3  }
 0x146   : > { %1994 = vset.pattern.permute.xlu0 %v2113_v25  ;;  %1996 = vset.pattern.permute.xlu2 %v2113_v25 }
 0x147   : > { %1294 = vperm.xlu0 %1994, %v2431_v60   ;;  %1302 = vperm.xlu2 %1996, %v2451_v2  }
 0x148   : > { %1995 = vset.pattern.permute.xlu1 %v2113_v25 }
 0x149   : > { %1298 = vperm.xlu1 %1995, %v2456_v3  }
 0x14d   : > { %1039 = vmatmul.bf16.gmra.mxu1 %v1867_v36 }
 0x151   : > { %1306 = vperm.xlu1 %1995, %v2444_v0  }
 0x15d   : > { %1044 = vmatmul.bf16.gmra.mxu1 %v1875_v38  ;;  %v1135_v38 = vld [vmem:[%s2880_s8 + $0x70] sm:$0xff] }
 0x16d   : > { %1049 = vmatmul.bf16.gmra.mxu1 %v1883_v20  ;;  %v2114_v20 = vmov 5  }
 0x16e   : > { %1998 = vset.pattern.permute.xlu2 %v2114_v20  ;;  %1997 = vset.pattern.permute.xlu1 %v2114_v20 }
 0x16f   : > { %1363 = vperm.xlu2 %1998, %v2456_v3   ;;  %1359 = vperm.xlu1 %1997, %v2431_v60  }
 0x177   : > { %1371 = vperm.xlu2 %1998, %v2444_v0   ;;  %1367 = vperm.xlu1 %1997, %v2451_v2  }
 0x198   : > { %v1064_v21 = vpop.f32.mrf.mxu2 }
 0x1a0   : > { %v1066_v44 = vpop.f32.mrf.mxu2 }
 0x1a8   : > { %v1069_v54 = vpop.f32.mrf.mxu2 }
 0x1b0   : > { %v1071_v34 = vpop.f32.mrf.mxu2 }
 0x1b8   : > { %v1074_v39 = vpop.f32.mrf.mxu2 }
 0x1ba   : > { %v1035_v11 = vpop.f32.mrf.mxu1 }
 0x1bb   : > { %v1036_v32 = vadd.f32 %v1035_v11, %v949_v16  ;;  %v1123_v16 = vld [vmem:[%s2880_s8 + $0x10] sm:$0xff]  ;;  %v1121_v11 = vld [vmem:[%s2880_s8] sm:$0xff] }
 0x1bd   : > { %v2602_v46 = vadd.f32 %v1064_v21, %v1036_v32  ;;  %v1129_v21 = vld [vmem:[%s2880_s8 + $0x40] sm:$0xff]  ;;  %v1136_v32 = vld [vmem:[%s2880_s8 + $0x78] sm:$0xff] }
 0x1bf   : > { %v1084_v42 = vmax.f32 %v2602_v46, 0.0  ;;  %v1134_v46 = vld [vmem:[%s2880_s8 + $0x68] sm:$0xff] }
 0x1c0   : > { %v1076_v58 = vpop.f32.mrf.mxu2 }
 0x1c2   : > { %v1037_v35 = vpop.f32.mrf.mxu1 }
 0x1c3   : > { %v1038_v9 = vadd.f32 %v1037_v35, %v954_v1  ;;  %v1132_v35 = vld [vmem:[%s2880_s8 + $0x58] sm:$0xff] }
 0x1c5   : > { %v1067_v31 = vadd.f32 %v1066_v44, %v1038_v9  ;;  %v1125_v44 = vld [vmem:[%s2880_s8 + $0x20] sm:$0xff] }
 0x1c7   : > { %v1085_v15 = vmax.f32 %v1067_v31, 0.0 }
 0x1c8   : > { %v1079_v41 = vpop.f32.mrf.mxu2 }
 0x1c9   : > { %v1093_v52 = vpack.c.bf16 %v1085_v15, %v1084_v42 }
 0x1ca   : > { %v1040_v55 = vpop.f32.mrf.mxu1 }
 0x1cb   : > { %v1041_v59 = vadd.f32 %v1040_v55, %v959_v48  ;;  %v2115_v55 = vmov 6  }
 0x1cc   : > { %2000 = vset.pattern.permute.xlu1 %v2115_v55  ;;  %1999 = vset.pattern.permute.xlu0 %v2115_v55 }
 0x1cd   : > { %v1070_v47 = vadd.f32 %v1069_v54, %v1041_v59  ;;  %v1130_v54 = vld [vmem:[%s2880_s8 + $0x48] sm:$0xff]  ;;  %1403 = vperm.xlu1 %2000, %v2456_v3   ;;  %1399 = vperm.xlu0 %1999, %v2431_v60  }
 0x1ce   : > { %2001 = vset.pattern.permute.xlu2 %v2115_v55  ;;  %v2012_v55 = vld [vmem:[%s2882_s10] ss:$0 sm:$0xff] }
 0x1cf   : > { %v1086_v8 = vmax.f32 %v1070_v47, 0.0  ;;  %1407 = vperm.xlu2 %2001, %v2451_v2  }
 0x1d0   : > { %v1081_v23 = vpop.f32.mrf.mxu2 }
 0x1d2   : > { %v1042_v14 = vpop.f32.mrf.mxu1 }
 0x1d3   : > { %v1043_v28 = vadd.f32 %v1042_v14, %v964_v22  ;;  %v1126_v14 = vld [vmem:[%s2880_s8 + $0x28] sm:$0xff] }
 0x1d5   : > { %v1072_v62 = vadd.f32 %v1071_v34, %v1043_v28  ;;  %v1128_v34 = vld [vmem:[%s2880_s8 + $0x38] sm:$0xff]  ;;  %1411 = vperm.xlu1 %2000, %v2444_v0   ;;  %v2705_v28 = vpop.permute.xlu0 %1191 }
 0x1d7   : > { %v1087_v40 = vmax.f32 %v1072_v62, 0.0 }
 0x1d9   : > { %v1094_v36 = vpack.c.bf16 %v1087_v40, %v1086_v8 }
 0x1da   : > { %v1045_v19 = vpop.f32.mrf.mxu1 }
 0x1db   : > { %v1046_v7 = vadd.f32 %v1045_v19, %v969_v50  ;;  %v1122_v19 = vld [vmem:[%s2880_s8 + $0x8] sm:$0xff] }
 0x1dd   : > { %v1075_v10 = vadd.f32 %v1074_v39, %v1046_v7  ;;  %v1124_v39 = vld [vmem:[%s2880_s8 + $0x18] sm:$0xff]  ;;  %v1215_v59 = vpop.permute.xlu0 %1214 }
 0x1df   : > { %v1088_v53 = vmax.f32 %v1075_v10, 0.0 }
 0x1e2   : > { %v1047_v61 = vpop.f32.mrf.mxu1 }
 0x1e3   : > { %v1048_v57 = vadd.f32 %v1047_v61, %v974_v37  ;;  %v1127_v37 = vld [vmem:[%s2880_s8 + $0x30] sm:$0xff]  ;;  %v2117_v61 = vmov 4  }
 0x1e5   : > { %v1077_v4 = vadd.f32 %v1076_v58, %v1048_v57  ;;  %v2116_v58 = vmov 7  }
 0x1e6   : > { %2003 = vset.pattern.permute.xlu0 %v2116_v58  ;;  %2002 = vset.pattern.permute.xlu2 %v2116_v58 }
 0x1e7   : > { %v1089_v29 = vmax.f32 %v1077_v4, 0.0  ;;  %1443 = vperm.xlu0 %2003, %v2456_v3   ;;  %1439 = vperm.xlu2 %2002, %v2431_v60  }
 0x1e8   : > { %2005 = vset.pattern.permute.xlu1 %v2116_v58  ;;  %v2013_v58 = vld [vmem:[#allocation3] ss:$0 sm:$0xff] }
 0x1e9   : > { %v1095_v51 = vpack.c.bf16 %v1089_v29, %v1088_v53  ;;  %1447 = vperm.xlu1 %2005, %v2451_v2  }
 0x1ea   : > { %v1050_v33 = vpop.f32.mrf.mxu1 }
 0x1eb   : > { %v1051_v45 = vadd.f32 %v1050_v33, %v979_v30  ;;  %v1131_v30 = vld [vmem:[%s2880_s8 + $0x50] sm:$0xff] }
 0x1ed   : > { %v1080_v17 = vadd.f32 %v1079_v41, %v1051_v45 }
 0x1ef   : > { %v1090_v12 = vmax.f32 %v1080_v17, 0.0  ;;  %2004 = vset.pattern.permute.xlu0 %v2117_v61  ;;  %1451 = vperm.xlu2 %2002, %v2444_v0  }
 0x1f0   : > { %1334 = vperm.xlu0 %2004, %v2431_v60  }
 0x1f1   : > { %2006 = vset.pattern.permute.xlu1 %v2117_v61 }
 0x1f2   : > { %v1052_v63 = vpop.f32.mrf.mxu1  ;;  %1338 = vperm.xlu1 %2006, %v2456_v3   ;;  %v2693_v3 = vpop.permute.xlu2 %1186 }
 0x1f3   : > { %v1053_v18 = vadd.f32 %v1052_v63, %v984_v49  ;;  %v1101_v49 = vpop.permute.xlu1 %1100 }
 0x1f4   : > { %v1103_v50 = vperm.slane %v1101_v49, 0 }
 0x1f5   : > { %v1082_v6 = vadd.f32 %v1081_v23, %v1053_v18 }
 0x1f7   : > { %v1091_v13 = vmax.f32 %v1082_v6, 0.0  ;;  %2007 = vset.pattern.permute.xlu2 %v2117_v61 }
 0x1f8   : > { %1346 = vperm.xlu0 %2004, %v2444_v0   ;;  %1342 = vperm.xlu2 %2007, %v2451_v2  }
 0x1f9   : > { %v1096_v27 = vpack.c.bf16 %v1091_v13, %v1090_v12 }
 0x1fa   : > { %2010 = vset.pattern.permute.xlu1 %v2110_v5  ;;  %v2695_v0 = vpop.permute.xlu2 %1201 }
 0x1fb   : > { %1112 = vmatpush.bf16.msrb.mxu3 %v1096_v27  ;;  %v2697_v45 = vpop.permute.xlu1 %1196  ;;  %v1255_v27 = vpop.permute.xlu0 %1254 }
 0x1ff   : > { %1113 = vmatpush.bf16.msrb.mxu3 %v1095_v51 }
 0x200   : > { %2009 = vset.pattern.permute.xlu0 %v2111_v56  ;;  %2008 = vset.pattern.permute.xlu2 %v2110_v5 }
 0x202   : > { %v1223_v48 = vpop.permute.xlu2 %1222 }
 0x203   : > { %1114 = vmatpush.bf16.msrb.mxu3 %v1094_v36  ;;  %v1219_v57 = vpop.permute.xlu1 %1218  ;;  %v1295_v36 = vpop.permute.xlu0 %1294 }
 0x207   : > { %1115 = vmatpush.bf16.msrb.mxu3 %v1093_v52 }
 0x20a   : > { %1888 = vmatmul.msk.bf16.vlgmr.msrb.gmra.mxu3 %vm1104_vm1, %v1092_v24  ;;  %v1263_v2 = vpop.permute.xlu2 %1262 }
 0x20b   : > { %1148 = vmatpush.msra.mxu3 %v1135_v38  ;;  %v1227_v7 = vpop.permute.xlu1 %1226 }
 0x20d   : > { %1149 = vmatpush.msra.mxu3 %v1133_v43 }
 0x20f   : > { %1150 = vmatpush.msra.mxu3 %v1131_v30 }
 0x211   : > { %1151 = vmatpush.msra.mxu3 %v1129_v21 }
 0x212   : > { %v1303_v63 = vpop.permute.xlu2 %1302 }
 0x213   : > { %1152 = vmatpush.msra.mxu3 %v1127_v37  ;;  %v1259_v18 = vpop.permute.xlu1 %1258 }
 0x215   : > { %1153 = vmatpush.msra.mxu3 %v1125_v44 }
 0x217   : > { %1154 = vmatpush.msra.mxu3 %v1123_v16 }
 0x219   : > { %1155 = vmatpush.msra.mxu3 %v1121_v11 }
 0x21a   : > { %v2699_v17 = vpop.permute.xlu2 %1363 }
 0x21b   : > { %1168 = vmatpush.msrb.mxu3 %v1136_v32  ;;  %v1267_v22 = vpop.permute.xlu1 %1266 }
 0x21d   : > { %1169 = vmatpush.msrb.mxu3 %v1134_v46 }
 0x21f   : > { %1170 = vmatpush.msrb.mxu3 %v1132_v35 }
 0x221   : > { %1171 = vmatpush.msrb.mxu3 %v1130_v54 }
 0x222   : > { %v2701_v56 = vpop.permute.xlu2 %1371 }
 0x223   : > { %1172 = vmatpush.msrb.mxu3 %v1128_v34  ;;  %v1299_v26 = vpop.permute.xlu1 %1298 }
 0x225   : > { %1173 = vmatpush.msrb.mxu3 %v1126_v14 }
 0x227   : > { %1174 = vmatpush.msrb.mxu3 %v1124_v39 }
 0x229   : > { %1175 = vmatpush.msrb.mxu3 %v1122_v19 }
 0x22a   : > { %v2703_v23 = vpop.permute.xlu2 %1407 }
 0x22b   : > { %v1307_v6 = vpop.permute.xlu1 %1306 }
 0x233   : > { %v1360_v1 = vpop.permute.xlu1 %1359 }
 0x23b   : > { %v1368_v8 = vpop.permute.xlu1 %1367 }
 0x23f   : > { %v1400_v43 = vpop.permute.xlu0 %1399 }
 0x241   : > { %v1440_v4 = vpop.permute.xlu2 %1439 }
 0x243   : > { %v1404_v24 = vpop.permute.xlu1 %1403 }
 0x249   : > { %v1452_v10 = vpop.permute.xlu2 %1451 }
 0x24b   : > { %v1412_v37 = vpop.permute.xlu1 %1411 }
 0x252   : > { %v1343_v53 = vpop.permute.xlu2 %1342 }
 0x259   : > { %v1444_v49 = vpop.permute.xlu0 %1443 }
 0x25b   : > { %v1448_v32 = vpop.permute.xlu1 %1447 }
 0x28d   : > { %v1117_v41 = vpop.f32.mrf.mxu3 }
 0x28e   : > { %v1118_v33 = vadd.f32 %v1117_v41, %v1103_v50 }
 0x290   : > { %1889 = vmatmul.msk.f32.vlgmr.msra.gmra.mxu3 %vm1104_vm1, %v1118_v33 }
 0x295   : > { %v1119_v60 = vpop.f32.mrf.mxu3 }
 0x298   : > { %1890 = vmatmul.msk.f32.vlgmr.msrb.gmra.mxu3 %vm1104_vm1, %v1118_v33  ;;  %v1335_v33 = vpop.permute.xlu0 %1334 }
 0x313   : > { %v1157_v12 = vpop.f32.mrf.mxu3 }
 0x314   : > { %v2707_v13 = vperm.slane %v1157_v12, 0 }
 0x316   : > { %v1231_v9 = vmul.f32 %v1223_v48, %v2707_v13  ;;  %v1230_v62 = vmul.f32 %v1219_v57, %v2707_v13  ;;  %v1229_v29 = vmul.f32 %v1215_v59, %v2707_v13  ;;  %v1271_v51 = vmul.f32 %v1263_v2, %v2707_v13  ;;  %v1339_v48 = vpop.permute.xlu1 %1338 }
 0x317   : > { %v1270_v25 = vmul.f32 %v1259_v18, %v2707_v13  ;;  %v1232_v15 = vmul.f32 %v1227_v7, %v2707_v13  ;;  %v1311_v42 = vmul.f32 %v1303_v63, %v2707_v13  ;;  %v1310_v52 = vmul.f32 %v1299_v26, %v2707_v13 }
 0x318   : > { %1241 = vrot.lane.b32.xlu1 %v1231_v9, %s2118_s27  ;;  %1239 = vrot.lane.b32.xlu0 %v1230_v62, %s2118_s27  ;;  %v1269_v38 = vmul.f32 %v1255_v27, %v2707_v13  ;;  %v1272_v21 = vmul.f32 %v1267_v22, %v2707_v13  ;;  %v1309_v11 = vmul.f32 %v1295_v36, %v2707_v13 }
 0x319   : > { %1237 = vrot.lane.b32.xlu2 %v1229_v29, %s2118_s27  ;;  %v1312_v54 = vmul.f32 %v1307_v6, %v2707_v13  ;;  %v1207_v59 = vmul.f32 %v2707_v13, %v2697_v45  ;;  %v1208_v12 = vmul.f32 %v2707_v13, %v2695_v0 }
 0x31b   : > { %v1177_v47 = vpop.f32.mrf.mxu3 }
 0x31c   : > { %v2715_v31 = vperm.slane %v1177_v47, 0 }
 0x31e   : > { %v2718_v40 = vmul.f32 %v2715_v31, %v1343_v53  ;;  %v1414_v20 = vmul.f32 %v1400_v43, %v2715_v31  ;;  %v1374_v30 = vmul.f32 %v1360_v1, %v2715_v31  ;;  %v1417_v44 = vmul.f32 %v1412_v37, %v2715_v31 }
 0x31f   : > { %v1376_v16 = vmul.f32 %v1368_v8, %v2715_v31  ;;  %v1456_v46 = vmul.f32 %v1448_v32, %v2715_v31  ;;  %v1415_v35 = vmul.f32 %v1404_v24, %v2715_v31  ;;  %v1454_v34 = vmul.f32 %v1440_v4, %v2715_v31 }
 0x320   : > { %1281 = vrot.lane.b32.xlu1 %v1271_v51, %s2119_s14  ;;  %1279 = vrot.lane.b32.xlu0 %v1270_v25, %s2119_s14  ;;  %v1375_v14 = vmul.f32 %v2699_v17, %v2715_v31  ;;  %v1457_v39 = vmul.f32 %v1452_v10, %v2715_v31  ;;  %v1377_v19 = vmul.f32 %v2701_v56, %v2715_v31 }
 0x321   : > { %1243 = vrot.lane.b32.xlu2 %v1232_v15, %s2118_s27  ;;  %v1416_v61 = vmul.f32 %v2703_v23, %v2715_v31  ;;  %v1455_v50 = vmul.f32 %v1444_v49, %v2715_v31  ;;  %v1205_v17 = vmul.f32 %v2707_v13, %v2693_v3  ;;  %v1350_v6 = vmul.f32 %v2715_v31, %v1335_v33 }
 0x322   : > { %v1206_v10 = vmul.f32 %v2707_v13, %v2705_v28  ;;  %v1351_v25 = vmul.f32 %v2715_v31, %v1339_v48 }
 0x328   : > { %1321 = vrot.lane.b32.xlu1 %v1311_v42, %s2120_s17  ;;  %1319 = vrot.lane.b32.xlu0 %v1310_v52, %s2120_s17 }
 0x329   : > { %1277 = vrot.lane.b32.xlu2 %v1269_v38, %s2119_s14 }
 0x330   : > { %1422 = vrot.lane.b32.xlu0 %v1414_v20, %s2119_s14  ;;  %1382 = vrot.lane.b32.xlu1 %v1374_v30, %s2118_s27 }
 0x331   : > { %1283 = vrot.lane.b32.xlu2 %v1272_v21, %s2119_s14 }
 0x338   : > { %1428 = vrot.lane.b32.xlu0 %v1417_v44, %s2119_s14  ;;  %1386 = vrot.lane.b32.xlu1 %v1376_v16, %s2118_s27 }
 0x339   : > { %1317 = vrot.lane.b32.xlu2 %v1309_v11, %s2120_s17 }
 0x340   : > { %1466 = vrot.lane.b32.xlu0 %v1456_v46, %s2120_s17  ;;  %1424 = vrot.lane.b32.xlu1 %v1415_v35, %s2119_s14 }
 0x341   : > { %1323 = vrot.lane.b32.xlu2 %v1312_v54, %s2120_s17 }
 0x348   : > { %1462 = vrot.lane.b32.xlu1 %v1454_v34, %s2120_s17  ;;  %1575 = vperm.xlu0 %2009, %v2012_v55  }
 0x349   : > { %1384 = vrot.lane.b32.xlu2 %v1375_v14, %s2118_s27 }
 0x350   : > { %1468 = vrot.lane.b32.xlu1 %v1457_v39, %s2120_s17  ;;  %2011 = vset.pattern.permute.xlu0 %v2110_v5  ;;  %v1347_v5 = vpop.permute.xlu0 %1346 }
 0x351   : > { %1388 = vrot.lane.b32.xlu2 %v1377_v19, %s2118_s27  ;;  %v1353_v36 = vmul.f32 %v2715_v31, %v1347_v5 }
 0x358   : > { %1589 = vperm.xlu1 %2010, %v2013_v58  }
 0x359   : > { %1426 = vrot.lane.b32.xlu2 %v1416_v61, %s2119_s14 }
 0x361   : > { %1464 = vrot.lane.b32.xlu2 %v1455_v50, %s2120_s17  ;;  %s1690_s17 = sshll.u32 %s2824_s30, 4  ;;  %s1691_s17 = int_to_ptr.vmem [resolvable:$true] %s1690_s17 }
 0x369   : > { %1563 = vperm.xlu2 %2008, %v2012_v55  }
 0x373   : > { %v1238_v41 = vpop.permute.xlu2 %1237 }
 0x374   : > { %v1249_v18 = vadd.f32 %v1238_v41, %v1205_v17 }
 0x37b   : > { %v1244_v60 = vpop.permute.xlu2 %1243 }
 0x37c   : > { %v1252_v62 = vadd.f32 %v1244_v60, %v1208_v12 }
 0x383   : > { %v1278_v2 = vpop.permute.xlu2 %1277 }
 0x384   : > { %v1289_v56 = vadd.f32 %v1278_v2, %v1249_v18 }
 0x38a   : > { %v1242_v57 = vpop.permute.xlu1 %1241  ;;  %v1240_v63 = vpop.permute.xlu0 %1239 }
 0x38b   : > { %v1284_v7 = vpop.permute.xlu2 %1283  ;;  %v1251_v9 = vadd.f32 %v1242_v57, %v1207_v59  ;;  %v1250_v3 = vadd.f32 %v1240_v63, %v1206_v10 }
 0x38c   : > { %v1292_v47 = vadd.f32 %v1284_v7, %v1252_v62 }
 0x392   : > { %v1282_v22 = vpop.permute.xlu1 %1281  ;;  %v1280_v23 = vpop.permute.xlu0 %1279 }
 0x393   : > { %v1318_v26 = vpop.permute.xlu2 %1317  ;;  %v1291_v29 = vadd.f32 %v1282_v22, %v1251_v9  ;;  %v1290_v27 = vadd.f32 %v1280_v23, %v1250_v3 }
 0x394   : > { %v1329_v4 = vadd.f32 %v1318_v26, %v1289_v56 }
 0x396   : > { %v1354_v1 = vadd.f32 %v1350_v6, %v1329_v4  ;;  %v1558_v6 = vld [vmem:[%s2788_s24 + $0x10] sm:$0xff] }
 0x39a   : > { %v1322_v53 = vpop.permute.xlu1 %1321  ;;  %v1320_v51 = vpop.permute.xlu0 %1319 }
 0x39b   : > { %v1331_v8 = vadd.f32 %v1322_v53, %v1291_v29  ;;  %v1330_v15 = vadd.f32 %v1320_v51, %v1290_v27  ;;  %v1324_v45 = vpop.permute.xlu2 %1323  ;;  %v1556_v53 = vld [vmem:[%s2788_s24] sm:$0xff]  ;;  %v1557_v51 = vld [vmem:[%s2788_s24 + $0x8] sm:$0xff] }
 0x39c   : > { %v1332_v28 = vadd.f32 %v1324_v45, %v1292_v47 }
 0x39d   : > { %v1355_v42 = vadd.f32 %v1351_v25, %v1330_v15  ;;  %v1356_v0 = vadd.f32 %v2718_v40, %v1331_v8 }
 0x39e   : > { %v1357_v13 = vadd.f32 %v1353_v36, %v1332_v28 }
 0x3a2   : > { %v1423_v52 = vpop.permute.xlu0 %1422  ;;  %v1383_v38 = vpop.permute.xlu1 %1382 }
 0x3a3   : > { %v1385_v24 = vpop.permute.xlu2 %1384  ;;  %v1394_v11 = vadd.f32 %v1383_v38, %v1354_v1 }
 0x3a4   : > { %v1395_v35 = vadd.f32 %v1385_v24, %v1355_v42 }
 0x3a5   : > { %v1434_v54 = vadd.f32 %v1423_v52, %v1394_v11 }
 0x3aa   : > { %v1387_v43 = vpop.permute.xlu1 %1386  ;;  %v1429_v20 = vpop.permute.xlu0 %1428 }
 0x3ab   : > { %v1389_v30 = vpop.permute.xlu2 %1388  ;;  %v1396_v21 = vadd.f32 %v1387_v43, %v1356_v0 }
 0x3ac   : > { %v1397_v19 = vadd.f32 %v1389_v30, %v1357_v13 }
 0x3ae   : > { %v1437_v41 = vadd.f32 %v1429_v20, %v1397_v19 }
 0x3b2   : > { %v1425_v37 = vpop.permute.xlu1 %1424  ;;  %v1467_v32 = vpop.permute.xlu0 %1466 }
 0x3b3   : > { %v1427_v44 = vpop.permute.xlu2 %1426  ;;  %v1435_v55 = vadd.f32 %v1425_v37, %v1395_v35 }
 0x3b4   : > { %v1436_v16 = vadd.f32 %v1427_v44, %v1396_v21 }
 0x3b6   : > { %v1476_v46 = vadd.f32 %v1467_v32, %v1436_v16 }
 0x3b8   : > { %v1893_v31 = vmul.f32 -1.442695, %v1476_v46 }
 0x3ba   : > { %2014 = vpow2.f32 %v1893_v31  ;;  %v1463_v40 = vpop.permute.xlu1 %1462  ;;  %v2793_v59 = vpop.permute.xlu0 %1575 }
 0x3bb   : > { %v1465_v34 = vpop.permute.xlu2 %1464  ;;  %v1474_v14 = vadd.f32 %v1463_v40, %v1434_v54  ;;  %v1580_v62 = vmul.f32 %v2793_v59, %v1558_v6  ;;  %v1578_v38 = vmul.f32 %v2793_v59, %v1556_v53  ;;  %v1579_v24 = vmul.f32 %v2793_v59, %v1557_v51 }
 0x3bc   : > { %v1475_v39 = vadd.f32 %v1465_v34, %v1435_v55 }
 0x3bd   : > { %v1891_v58 = vmul.f32 -1.442695, %v1474_v14 }
 0x3be   : > { %v1892_v61 = vmul.f32 -1.442695, %v1475_v39 }
 0x3bf   : > { %2016 = vpow2.f32 %v1891_v58 }
 0x3c0   : > { %v2015_v49 = vpop.eup %2014  ;;  %2018 = vpow2.f32 %v1892_v61 }
 0x3c1   : > { %v1492_v50 = vadd.f32 1.0, %v2015_v49  ;;  %v1559_v49 = vld [vmem:[%s2788_s24 + $0x18] sm:$0xff] }
 0x3c2   : > { %v1469_v33 = vpop.permute.xlu1 %1468 }
 0x3c3   : > { %2020 = vrcp.f32 %v1492_v50  ;;  %v1477_v60 = vadd.f32 %v1469_v33, %v1437_v41  ;;  %v1533_v22 = vand.u32 2147483647, %v1492_v50  ;;  %v1535_v23 = vand.u32 2147483648, %v1492_v50  ;;  %v2798_v29 = vpop.permute.xlu2 %1563 }
 0x3c4   : > { %vm1529_vm3 = vweird.f32 %v1492_v50 }
 0x3c5   : > { %v2017_v48 = vpop.eup %2016  ;;  %v1894_v5 = vmul.f32 -1.442695, %v1477_v60  ;;  %vm1534_vm5 = vcmp.eq.f32.partialorder %v1533_v22, 8.507059e+37  ;;  %v1536_v47 = vor.u32 1.1754944e-38, %v1535_v23 }
 0x3c6   : > { %v2019_v2 = vpop.eup %2018  ;;  %v1490_v57 = vadd.f32 1.0, %v2017_v48 }
 0x3c7   : > { %v2781_v63 = vadd.f32 1.0, %v2019_v2  ;;  %2022 = vpow2.f32 %v1894_v5  ;;  %v1581_v5 = vmul.f32 %v2793_v59, %v1559_v49 }
 0x3c8   : > { %2024 = vrcp.f32 %v1490_v57  ;;  %v1503_v25 = vand.u32 2147483647, %v1490_v57  ;;  %v1505_v8 = vand.u32 2147483648, %v1490_v57  ;;  %vm1499_vm8 = vweird.f32 %v1490_v57 }
 0x3c9   : > { %v2021_v7 = vpop.eup %2020  ;;  %2026 = vrcp.f32 %v2781_v63  ;;  %v1520_v28 = vand.u32 2147483648, %v2781_v63  ;;  %v1518_v13 = vand.u32 2147483647, %v2781_v63  ;;  %vm1514_vm10 = vweird.f32 %v2781_v63 }
 0x3ca   : > { %v1525_v17 = vmul.f32 %v2021_v7, %v1492_v50  ;;  %vm1530_vm2 = vweird.f32 %v2021_v7  ;;  %v1590_v20 = vpop.permute.xlu1 %1589  ;;  %v1506_v21 = vor.u32 1.1754944e-38, %v1505_v8  ;;  %vm1504_vm11 = vcmp.eq.f32.partialorder %v1503_v25, 8.507059e+37 }
 0x3cb   : > { %vm1531_vm4 = vmor %vm1529_vm3, %vm1530_vm2  ;;  %v1521_v11 = vor.u32 1.1754944e-38, %v1520_v28  ;;  %vm1519_vm13 = vcmp.eq.f32.partialorder %v1518_v13, 8.507059e+37 }
 0x3cc   : > { %v1526_v18 = vsub.f32 1.0, %v1525_v17 }
 0x3cd   : > { %v2023_v56 = vpop.eup %2022 }
 0x3ce   : > { %v2025_v26 = vpop.eup %2024  ;;  %v2790_v4 = vadd.f32 1.0, %v2023_v56  ;;  %v1527_v10 = vmul.f32 %v2021_v7, %v1526_v18 }
 0x3cf   : > { %v2027_v12 = vpop.eup %2026  ;;  %v1495_v1 = vmul.f32 %v2025_v26, %v1490_v57  ;;  %vm1500_vm6 = vweird.f32 %v2025_v26 }
 0x3d0   : > { %2028 = vrcp.f32 %v2790_v4  ;;  %v1510_v9 = vmul.f32 %v2027_v12, %v2781_v63  ;;  %v1528_v3 = vadd.f32 %v2021_v7, %v1527_v10  ;;  %vm1515_vm7 = vweird.f32 %v2027_v12  ;;  %vm1501_vm9 = vmor %vm1499_vm8, %vm1500_vm6 }
 0x3d1   : > { %v1496_v27 = vsub.f32 1.0, %v1495_v1  ;;  %vm1516_vm12 = vmor %vm1514_vm10, %vm1515_vm7  ;;  %v1550_v34 = vand.u32 2147483648, %v2790_v4  ;;  %v1548_v58 = vand.u32 2147483647, %v2790_v4  ;;  %vm1544_vm15 = vweird.f32 %v2790_v4 }
 0x3d2   : > { %v1511_v15 = vsub.f32 1.0, %v1510_v9  ;;  %v1532_v45 = vsel %vm1531_vm4, %v2021_v7, %v1528_v3  ;;  %vm1672_vm6 = vcmask 261120  }
 0x3d3   : > { %v1497_v36 = vmul.f32 %v2025_v26, %v1496_v27  ;;  %v1537_v42 = vsel %vm1534_vm5, %v1536_v47, %v1532_v45  ;;  %v1551_v60 = vor.u32 1.1754944e-38, %v1550_v34  ;;  %vm1549_vm1 = vcmp.eq.f32.partialorder %v1548_v58, 8.507059e+37 }
 0x3d4   : > { %v1512_v0 = vmul.f32 %v2027_v12, %v1511_v15  ;;  %v1568_v52 = vmul.f32 %v2798_v29, %v1537_v42 }
 0x3d5   : > { %v1498_v43 = vadd.f32 %v2025_v26, %v1497_v36 }
 0x3d6   : > { %v2029_v30 = vpop.eup %2028  ;;  %v1513_v37 = vadd.f32 %v2027_v12, %v1512_v0  ;;  %v1584_v44 = vadd.f32 %v1580_v62, %v1568_v52 }
 0x3d7   : > { %v1502_v16 = vsel %vm1501_vm9, %v2025_v26, %v1498_v43  ;;  %v1540_v32 = vmul.f32 %v2029_v30, %v2790_v4  ;;  %vm1545_vm14 = vweird.f32 %v2029_v30 }
 0x3d8   : > { %v1507_v46 = vsel %vm1504_vm11, %v1506_v21, %v1502_v16  ;;  %v1517_v35 = vsel %vm1516_vm12, %v2027_v12, %v1513_v37  ;;  %v1594_v31 = vadd.f32 %v1590_v20, %v1584_v44  ;;  %vm1546_vm0 = vmor %vm1544_vm15, %vm1545_vm14 }
 0x3d9   : > { %v1522_v54 = vsel %vm1519_vm13, %v1521_v11, %v1517_v35  ;;  %v1541_v55 = vsub.f32 1.0, %v1540_v32  ;;  %v1566_v40 = vmul.f32 %v2798_v29, %v1507_v46 }
 0x3da   : > { %v1567_v14 = vmul.f32 %v2798_v29, %v1522_v54  ;;  %v1897_v39 = vmul.f32 -1.442695, %v1594_v31 }
 0x3db   : > { %v1542_v19 = vmul.f32 %v2029_v30, %v1541_v55  ;;  %v1582_v61 = vadd.f32 %v1578_v38, %v1566_v40 }
 0x3dc   : > { %v1583_v50 = vadd.f32 %v1579_v24, %v1567_v14  ;;  %2030 = vpow2.f32 %v1897_v39 }
 0x3dd   : > { %v1543_v41 = vadd.f32 %v2029_v30, %v1542_v19  ;;  %v1592_v33 = vadd.f32 %v1590_v20, %v1582_v61 }
 0x3de   : > { %v1593_v48 = vadd.f32 %v1590_v20, %v1583_v50 }
 0x3df   : > { %v1547_v2 = vsel %vm1546_vm0, %v2029_v30, %v1543_v41  ;;  %v1895_v57 = vmul.f32 -1.442695, %v1592_v33 }
 0x3e0   : > { %v1552_v63 = vsel %vm1549_vm1, %v1551_v60, %v1547_v2  ;;  %v1896_v7 = vmul.f32 -1.442695, %v1593_v48 }
 0x3e1   : > { %v1569_v17 = vmul.f32 %v2798_v29, %v1552_v63  ;;  %2032 = vpow2.f32 %v1895_v57 }
 0x3e2   : > { %v2031_v18 = vpop.eup %2030  ;;  %2034 = vpow2.f32 %v1896_v7 }
 0x3e3   : > { %v1585_v56 = vadd.f32 %v1581_v5, %v1569_v17  ;;  %v1610_v22 = vadd.f32 1.0, %v2031_v18 }
 0x3e5   : > { %v1595_v23 = vadd.f32 %v1590_v20, %v1585_v56  ;;  %2036 = vrcp.f32 %v1610_v22  ;;  %v1651_v62 = vand.u32 2147483647, %v1610_v22  ;;  %v1653_v29 = vand.u32 2147483648, %v1610_v22 }
 0x3e6   : > { %vm1647_vm3 = vweird.f32 %v1610_v22 }
 0x3e7   : > { %v2033_v26 = vpop.eup %2032  ;;  %v1898_v4 = vmul.f32 -1.442695, %v1595_v23  ;;  %vm1652_vm5 = vcmp.eq.f32.partialorder %v1651_v62, 8.507059e+37  ;;  %v1654_v36 = vor.u32 1.1754944e-38, %v1653_v29 }
 0x3e8   : > { %v2035_v6 = vpop.eup %2034  ;;  %v1608_v10 = vadd.f32 1.0, %v2033_v26 }
 0x3e9   : > { %2038 = vpow2.f32 %v1898_v4  ;;  %v1609_v59 = vadd.f32 1.0, %v2035_v6 }
 0x3ea   : > { %2040 = vrcp.f32 %v1608_v10  ;;  %v1621_v28 = vand.u32 2147483647, %v1608_v10  ;;  %v1623_v42 = vand.u32 2147483648, %v1608_v10  ;;  %vm1617_vm9 = vweird.f32 %v1608_v10 }
 0x3eb   : > { %v2037_v12 = vpop.eup %2036  ;;  %2042 = vrcp.f32 %v1609_v59  ;;  %v1638_v38 = vand.u32 2147483648, %v1609_v59  ;;  %v1636_v20 = vand.u32 2147483647, %v1609_v59  ;;  %vm1632_vm11 = vweird.f32 %v1609_v59 }
 0x3ec   : > { %v1643_v1 = vmul.f32 %v2037_v12, %v1610_v22  ;;  %vm1648_vm2 = vweird.f32 %v2037_v12  ;;  %v1624_v37 = vor.u32 1.1754944e-38, %v1623_v42  ;;  %vm1622_vm12 = vcmp.eq.f32.partialorder %v1621_v28, 8.507059e+37 }
 0x3ed   : > { %vm1649_vm4 = vmor %vm1647_vm3, %vm1648_vm2  ;;  %v1639_v11 = vor.u32 1.1754944e-38, %v1638_v38  ;;  %vm1637_vm14 = vcmp.eq.f32.partialorder %v1636_v20, 8.507059e+37 }
 0x3ee   : > { %v1644_v9 = vsub.f32 1.0, %v1643_v1 }
 0x3ef   : > { %v2039_v3 = vpop.eup %2038 }
 0x3f0   : > { %v2041_v27 = vpop.eup %2040  ;;  %v2819_v47 = vadd.f32 1.0, %v2039_v3  ;;  %v1645_v53 = vmul.f32 %v2037_v12, %v1644_v9 }
 0x3f1   : > { %v2043_v51 = vpop.eup %2042  ;;  %v1613_v25 = vmul.f32 %v2041_v27, %v1608_v10  ;;  %vm1618_vm7 = vweird.f32 %v2041_v27 }
 0x3f2   : > { %v1628_v8 = vmul.f32 %v2043_v51, %v1609_v59  ;;  %v1646_v15 = vadd.f32 %v2037_v12, %v1645_v53  ;;  %2044 = vrcp.f32 %v2819_v47  ;;  %vm1633_vm8 = vweird.f32 %v2043_v51  ;;  %vm1619_vm10 = vmor %vm1617_vm9, %vm1618_vm7 }
 0x3f3   : > { %v1614_v45 = vsub.f32 1.0, %v1613_v25  ;;  %vm1634_vm13 = vmor %vm1632_vm11, %vm1633_vm8  ;;  %v1668_v55 = vand.u32 2147483648, %v2819_v47  ;;  %v1666_v34 = vand.u32 2147483647, %v2819_v47  ;;  %vm1662_vm0 = vweird.f32 %v2819_v47 }
 0x3f4   : > { %v1629_v0 = vsub.f32 1.0, %v1628_v8  ;;  %v1650_v13 = vsel %vm1649_vm4, %v2037_v12, %v1646_v15 }
 0x3f5   : > { %v1615_v52 = vmul.f32 %v2041_v27, %v1614_v45  ;;  %v1655_v24 = vsel %vm1652_vm5, %v1654_v36, %v1650_v13  ;;  %v1669_v39 = vor.u32 1.1754944e-38, %v1668_v55  ;;  %vm1667_vm2 = vcmp.eq.f32.partialorder %v1666_v34, 8.507059e+37 }
 0x3f6   : > { %v1630_v43 = vmul.f32 %v2043_v51, %v1629_v0  ;;  %1675 = vst.msk [vmem:[%s2824_s30 + $0x10] sm:$0xff] %vm1672_vm6, %v1655_v24 }
 0x3f7   : > { %v1616_v30 = vadd.f32 %v2041_v27, %v1615_v52 }
 0x3f8   : > { %v2045_v21 = vpop.eup %2044  ;;  %v1631_v44 = vadd.f32 %v2043_v51, %v1630_v43 }
 0x3f9   : > { %v1620_v16 = vsel %vm1619_vm10, %v2041_v27, %v1616_v30  ;;  %v1658_v32 = vmul.f32 %v2045_v21, %v2819_v47  ;;  %vm1663_vm15 = vweird.f32 %v2045_v21 }
 0x3fa   : > { %v1625_v46 = vsel %vm1622_vm12, %v1624_v37, %v1620_v16  ;;  %v1635_v35 = vsel %vm1634_vm13, %v2043_v51, %v1631_v44  ;;  %vm1664_vm1 = vmor %vm1662_vm0, %vm1663_vm15 }
 0x3fb   : > { %v1640_v31 = vsel %vm1637_vm14, %v1639_v11, %v1635_v35  ;;  %v1659_v54 = vsub.f32 1.0, %v1658_v32  ;;  %1673 = vst.msk [vmem:[%s2824_s30] sm:$0xff] %vm1672_vm6, %v1625_v46 }
 0x3fc   : > { %1674 = vst.msk [vmem:[%s2824_s30 + $0x8] sm:$0xff] %vm1672_vm6, %v1640_v31 }
 0x3fd   : > { %v1660_v40 = vmul.f32 %v2045_v21, %v1659_v54 }
 0x3ff   : > { %v1661_v14 = vadd.f32 %v2045_v21, %v1660_v40 }
 0x401   : > { %v1665_v19 = vsel %vm1664_vm1, %v2045_v21, %v1661_v14 }
 0x402   : > { %v1670_v58 = vsel %vm1667_vm2, %v1669_v39, %v1665_v19 }
 0x403   : > { %1676 = vst.msk [vmem:[%s2824_s30 + $0x18] sm:$0xff] %vm1672_vm6, %v1670_v58 }
 0x404   : > { %2073 = shalt.err (!%p2070_p3)
}
 0x405   : > { %s2121_s23 = smov 128   ;;  %s2122_s30 = smov 8  }
 0x406   : > { %1933 = dma.vmem_to_hbm [thread:$0]  (%p2232_p5), %s1691_s17, 512, %s1693_s18, %s1678_s19, %s2121_s23, %s2121_s23, %s2122_s30  }
 0x407 PF: > { %p1939_p4 = scmp.ge.s32.totalorder %s2108_s28, 2  ;;  %s1707_s14 = sand.u32 1, %s2096_s25  }
 0x408   : > { %s1708_s7 = scalar_lea.sflag [#allocation5], %s1707_s14 }
 0x409   : > { %p1936_p7 = pnand %p1939_p4, %p2236_p6 }
 0x40b   : > { %p1937_p8 = pneg %p1936_p7 }
 0x40d   : > { %2091 = dma.done.wait (%p1937_p8), %s1708_s7, 512  }
 0x40e   : > { %2093 = vsyncadd (%p1937_p8), %s1708_s7, 4294966784  ;;  %s2890_s20 = sld [smem:[#allocation7_spill]]  ;;  %p26_p9 = scmp.ge.s32.totalorder %s2219_s29, 4  }
 0x40f   : > { %s2891_s27 = sld [smem:[#allocation8_spill]]  ;;  %s2892_s25 = smov %s2100_s26 }
 0x410   : > { %s2894_s28 = smov %s2219_s29  ;;  %28 = sbr.rel (!%p26_p9) target bundleno = 7 (0x7), region = 106 }
 0x414   : > { %s2893_s26 = smov %s2890_s20 }
 0x415   :  { %1714 = vsyncpa [#allocation5], 1 }
 0x416   :  { %1716 = vsyncpa [#allocation5 + $0x1], 1 }

// kernel: vigseg_forward.5
= control target key start
LH: loop header
LB: loop body
LE: loop exit
PB: predicated region body
PF: predicated region fallthrough
CT: control target
= control target key end

     0   :  { %s2878_s0 = inlined_call_operand.vmem [shape: f32[2,16,64], index: 0, kind: input, shape index: {}]   ;;  %s2879_s1 = inlined_call_operand.vmem [shape: bf16[64,64], index: 1, kind: input, shape index: {}]   ;;  %s2880_s2 = inlined_call_operand.vmem [shape: f32[1,64], index: 2, kind: input, shape index: {}]   ;;  %s2881_s3 = inlined_call_operand.vmem [shape: bf16[64,64], index: 3, kind: input, shape index: {}]   ;;  %s2882_s4 = inlined_call_operand.vmem [shape: f32[1,64], index: 4, kind: input, shape index: {}]   ;;  %s2883_s5 = inlined_call_operand.vmem [shape: bf16[128,64], index: 5, kind: input, shape index: {}]   ;;  %s2884_s6 = inlined_call_operand.vmem [shape: f32[1,64], index: 6, kind: input, shape index: {}]   ;;  %s2885_s7 = inlined_call_operand.vmem [shape: bf16[64,64], index: 7, kind: input, shape index: {}]   ;;  %s2886_s8 = inlined_call_operand.vmem [shape: f32[1,64], index: 8, kind: input, shape index: {}]   ;;  %s2887_s9 = inlined_call_operand.vmem [shape: bf16[64,64], index: 9, kind: input, shape index: {}]   ;;  %s2888_s10 = inlined_call_operand.vmem [shape: f32[1,64], index: 10, kind: input, shape index: {}]   ;;  %s2889_s11 = inlined_call_operand.vmem [shape: bf16[64,256], index: 11, kind: input, shape index: {}]   ;;  %s2890_s12 = inlined_call_operand.vmem [shape: f32[1,256], index: 12, kind: input, shape index: {}]   ;;  %s2891_s13 = inlined_call_operand.vmem [shape: bf16[256,64], index: 13, kind: input, shape index: {}]   ;;  %s2892_s14 = inlined_call_operand.vmem [shape: f32[1,64], index: 14, kind: input, shape index: {}]   ;;  %s2893_s15 = inlined_call_operand.vmem [shape: bf16[64,256], index: 15, kind: input, shape index: {}]   ;;  %s2894_s16 = inlined_call_operand.vmem [shape: f32[1,256], index: 16, kind: input, shape index: {}]   ;;  %s2895_s17 = inlined_call_operand.vmem [shape: bf16[256,64], index: 17, kind: input, shape index: {}]   ;;  %s2896_s18 = inlined_call_operand.vmem [shape: f32[1,64], index: 18, kind: input, shape index: {}]   ;;  %s2897_s19 = inlined_call_operand.vmem [shape: f32[2,16,64], index: 19, kind: output, shape index: {}]  }
   0x1   :  { %2901 = sst [smem:[#allocation2_spill]] %s2878_s0  ;;  %s2441_s0 = smov 0  }
   0x2   :  { %2902 = sst [smem:[#allocation3_spill]] %s2879_s1 }
   0x3   :  { %2903 = sst [smem:[#allocation4_spill]] %s2880_s2 }
   0x4   :  { %2904 = sst [smem:[#allocation5_spill]] %s2881_s3 }
   0x5 LB: > { %s1876_s30 = sadd.s32 4294967295, %s2337_s0   ;;  %p1880_p0 = scmp.ge.s32.totalorder %s2337_s0, 1  ;;  %s2337_s0 = sphi %s2441_s0, %s29_s0  }
   0x6   : > { %p537_p1 = scmp.lt.s32.totalorder %s2337_s0, 3 }
   0x8   : > { %p538_p2 = pnand %p1880_p0, %p537_p1 }
   0x9   : > { %p593_p3 = scmp.lt.s32.totalorder (!%p538_p2), %s1876_s30, 1  ;;  %s2905_s1 = sld [smem:[#allocation3_spill]] (!%p538_p2) }
   0xa   : > { %541 = sbr.rel (%p538_p2) target bundleno = 2482 (0x9b2), region = 96  ;;  %s2906_s3 = sld [smem:[#allocation2_spill]] (!%p538_p2) }
   0xb   : > { %s2907_s2 = sld [smem:[#allocation5_spill]] (!%p538_p2)  ;;  %s2340_s28 = smov (!%p538_p2), 64  }
   0xc   : > { %s2908_s21 = sld [smem:[#allocation4_spill]] (!%p538_p2) }
   0xf   : > { %v2208_v0 = vld [vmem:[%s2905_s1 + $0x18] sm:$0xff]  ;;  %s2911_s30 = smov (!%p593_p3, %s1876_s30), 1  ;;  %v2207_v1 = vld [vmem:[%s2905_s1 + $0x10] sm:$0xff]  ;;  %vm643_vm0 = vcmask 523264   ;;  %v2206_v3 = vld [vmem:[%s2905_s1 + $0x8] sm:$0xff]  ;;  %vm767_vm1 = vcmask 130048   ;;  %v764_v39 = vlaneseq }
  0x10   : > { %651 = vmatpush.bf16.msra.mxu0 %v2208_v0  ;;  %s2900_s23 = sshll.u32 %s2911_s30, 4  ;;  %v2205_v5 = vld [vmem:[%s2905_s1] sm:$0xff]  ;;  %v2339_v56 = vmov 0.0   ;;  %s2909_s25 = sshll.u32 %s2911_s30, 4 }
  0x11   : > { %s597_s26 = scalar_lea.vmem %s2906_s3, %s2900_s23  ;;  %v2212_v7 = vld [vmem:[%s2907_s2 + $0x18] sm:$0xff]  ;;  %v2211_v8 = vld [vmem:[%s2907_s2 + $0x10] sm:$0xff]  ;;  %v2210_v9 = vld [vmem:[%s2907_s2 + $0x8] sm:$0xff]  ;;  %v765_v40 = vand.u32 127, %v764_v39 }
  0x12   : > { %v2463_v2 = vld [vmem:[%s597_s26 + $0x8] sm:$0xff]  ;;  %v2470_v4 = vld [vmem:[%s597_s26] sm:$0xff]  ;;  %723 = vmatpush.bf16.msra.mxu1 %v2212_v7  ;;  %s602_s26 = scalar_lea.vmem %s2897_s19, %s2909_s25 }
  0x13   : > { %1919 = vmatpush.xpose.msk.msra.mxu2 %vm643_vm0, %v2463_v2  ;;  %v606_v6 = vpack.c.bf16 %v2463_v2, %v2470_v4  ;;  %v2209_v10 = vld [vmem:[%s2907_s2] sm:$0xff]  ;;  %v2502_v41 = vcvt.s32.f32 %v765_v40 }
  0x14   : > { %652 = vmatpush.bf16.msra.mxu0 %v2207_v1  ;;  %v2292_v11 = vld [vmem:[%s2908_s21] ss:$0 sm:$0xff] }
  0x15   : > { %v2293_v49 = vld [vmem:[%s2882_s4] ss:$0 sm:$0xff] }
  0x16   : > { %724 = vmatpush.bf16.msra.mxu1 %v2211_v8 }
  0x17   : > { %1920 = vmatpush.xpose.msk.msra.mxu2 %vm643_vm0, %v2470_v4 }
  0x18   : > { %653 = vmatpush.bf16.msra.mxu0 %v2206_v3 }
  0x1a   : > { %1921 = vmatmul.msk.f32.vlgmr.msra.gmra.mxu2 %vm643_vm0, %v2470_v4  ;;  %725 = vmatpush.bf16.msra.mxu1 %v2210_v9 }
  0x1c   : > { %654 = vmatpush.bf16.msra.mxu0 %v2205_v5 }
  0x1e   : > { %726 = vmatpush.bf16.msra.mxu1 %v2209_v10 }
  0x1f   : > { %1901 = vmatmul.msk.bf16.vlgmr.msra.gmra.mxu0 %vm643_vm0, %v606_v6 }
  0x22   : > { %1922 = vmatmul.msk.f32.gmra.mxu2 %vm643_vm0, %v2463_v2 }
  0x9c   : > { %v656_v12 = vpop.f32.mrf.mxu0 }
  0x9d   : > { %v657_v13 = vadd.f32 %v2292_v11, %v656_v12  ;;  %v758_v14 = vpop.f32.mrf.mxu2 }
  0x9e   : > { %v768_v16 = vsel %vm767_vm1, %v758_v14, -inf }
  0x9f   : > { %v663_v15 = vmul.f32 0.044715, %v657_v13  ;;  %769 = vmax.xlane.f32.xlu0 %v768_v16  ;;  %v661_v31 = vmul.f32 0.5, %v657_v13 }
  0xa1   : > { %v665_v17 = vmul.f32 %v663_v15, %v657_v13 }
  0xa3   : > { %v667_v18 = vmul.f32 %v665_v17, %v657_v13 }
  0xa4   : > { %v658_v19 = vpop.f32.mrf.mxu0 }
  0xa5   : > { %v659_v20 = vadd.f32 %v2292_v11, %v658_v19  ;;  %v669_v21 = vadd.f32 %v667_v18, %v657_v13  ;;  %v761_v22 = vpop.f32.mrf.mxu2 }
  0xa6   : > { %v771_v25 = vsel %vm767_vm1, %v761_v22, -inf }
  0xa7   : > { %v664_v23 = vmul.f32 0.044715, %v659_v20  ;;  %v671_v24 = vmul.f32 0.7978846, %v669_v21  ;;  %772 = vmax.xlane.f32.xlu0 %v771_v25  ;;  %v662_v33 = vmul.f32 0.5, %v659_v20 }
  0xa9   : > { %v666_v26 = vmul.f32 %v664_v23, %v659_v20  ;;  %2299 = vtanh.f32 %v671_v24 }
  0xab   : > { %v668_v27 = vmul.f32 %v666_v26, %v659_v20 }
  0xad   : > { %v670_v28 = vadd.f32 %v668_v27, %v659_v20 }
  0xaf   : > { %v672_v29 = vmul.f32 0.7978846, %v670_v28  ;;  %v2300_v30 = vpop.eup %2299 }
  0xb0   : > { %v675_v32 = vadd.f32 1.0, %v2300_v30 }
  0xb1   : > { %2301 = vtanh.f32 %v672_v29 }
  0xb2   : > { %v677_v36 = vmul.f32 %v675_v32, %v661_v31 }
  0xb7   : > { %v2302_v34 = vpop.eup %2301 }
  0xb8   : > { %v676_v35 = vadd.f32 1.0, %v2302_v34 }
  0xba   : > { %v678_v37 = vmul.f32 %v676_v35, %v662_v33 }
  0xbc   : > { %v679_v38 = vpack.c.bf16 %v678_v37, %v677_v36 }
  0xbe   : > { %1918 = vmatmul.msk.bf16.vlgmr.msra.gmra.mxu1 %vm643_vm0, %v679_v38 }
 0x112   : > { %v770_v42 = vpop.xlane.xlu0 %769 }
 0x113   : > { %vm774_vm2 = vcmp.ge.f32.partialorder %v758_v14, %v770_v42  ;;  %v2220_v42 = vld [vmem:[%s2883_s5 + $0x38] sm:$0xff] }
 0x114   : > { %v776_v43 = vsel %vm774_vm2, %v2502_v41, 16.0  ;;  %1065 = vmatpush.bf16.msrb.mxu1 %v2220_v42  ;;  %v2295_v42 = vld [vmem:[%s2886_s8] ss:$0 sm:$0xff] }
 0x115   : > { %v778_v44 = vsel %vm767_vm1, %v776_v43, inf  ;;  %v2219_v43 = vld [vmem:[%s2883_s5 + $0x30] sm:$0xff] }
 0x116   : > { %779 = vmin.xlane.f32.xlu1 %v778_v44 }
 0x118   : > { %1066 = vmatpush.bf16.msrb.mxu1 %v2219_v43 }
 0x11a   : > { %v773_v45 = vpop.xlane.xlu0 %772 }
 0x11b   : > { %vm775_vm3 = vcmp.ge.f32.partialorder %v761_v22, %v773_v45 }
 0x11c   : > { %v777_v46 = vsel %vm775_vm3, %v2502_v41, 16.0 }
 0x11d   : > { %v781_v47 = vsel %vm767_vm1, %v777_v46, inf  ;;  %v2217_v46 = vld [vmem:[%s2883_s5 + $0x20] sm:$0xff] }
 0x11e   : > { %782 = vmin.xlane.f32.xlu1 %v781_v47 }
 0x13b   : > { %v728_v48 = vpop.f32.mrf.mxu1 }
 0x13c   : > { %v729_v50 = vadd.f32 %v2293_v49, %v728_v48  ;;  %v2216_v48 = vld [vmem:[%s2883_s5 + $0x18] sm:$0xff] }
 0x13e   : > { %v2512_v53 = vadd.f32 %v729_v50, %v2470_v4  ;;  %v2215_v50 = vld [vmem:[%s2883_s5 + $0x10] sm:$0xff] }
 0x143   : > { %v730_v51 = vpop.f32.mrf.mxu1 }
 0x144   : > { %v731_v52 = vadd.f32 %v2293_v49, %v730_v51 }
 0x146   : > { %v2515_v54 = vadd.f32 %v731_v52, %v2463_v2 }
 0x148   : > { %810 = vmatpush.msrb.mxu2 %v2515_v54  ;;  %863 = vmatpush.msra.mxu3 %v2515_v54 }
 0x149   : > { %973 = vmatpush.msrb.mxu0 %v2515_v54 }
 0x14a   : > { %811 = vmatpush.msrb.mxu2 %v2512_v53  ;;  %864 = vmatpush.msra.mxu3 %v2512_v53 }
 0x14b   : > { %974 = vmatpush.msrb.mxu0 %v2512_v53 }
 0x14c   : > { %918 = vmatpush.msra.mxu2 %v2515_v54 }
 0x14e   : > { %919 = vmatpush.msra.mxu2 %v2512_v53 }
 0x189   : > { %v780_v55 = vpop.xlane.xlu1 %779 }
 0x18a   : > { %vm784_vm4 = vcmp.eq.f32.partialorder %v2502_v41, %v780_v55 }
 0x18b   : > { %v1923_v57 = vsel %vm784_vm4, 1.0, %v2339_v56  ;;  %v819_v58 = vsel %vm784_vm4, -inf, %v758_v14 }
 0x18c   : > { %1925 = vmatmul.msk.f32.vlgmr.msrb.gmra.mxu2 %vm767_vm1, %v1923_v57  ;;  %v821_v59 = vsel %vm767_vm1, %v819_v58, -inf }
 0x18d   : > { %822 = vmax.xlane.f32.xlu2 %v821_v59 }
 0x191   : > { %v783_v60 = vpop.xlane.xlu1 %782 }
 0x192   : > { %vm785_vm5 = vcmp.eq.f32.partialorder %v2502_v41, %v783_v60 }
 0x193   : > { %v1924_v61 = vsel %vm785_vm5, 1.0, %v2339_v56  ;;  %v820_v62 = vsel %vm785_vm5, -inf, %v761_v22 }
 0x194   : > { %1926 = vmatmul.msk.f32.gmra.mxu2 %vm767_vm1, %v1924_v61  ;;  %v824_v63 = vsel %vm767_vm1, %v820_v62, -inf }
 0x195   : > { %825 = vmax.xlane.f32.xlu2 %v824_v63 }
 0x200   : > { %v823_v0 = vpop.xlane.xlu2 %822 }
 0x201   : > { %vm827_vm6 = vcmp.ge.f32.partialorder %v819_v58, %v823_v0 }
 0x202   : > { %v829_v1 = vsel %vm827_vm6, %v2502_v41, 16.0 }
 0x203   : > { %v831_v3 = vsel %vm767_vm1, %v829_v1, inf }
 0x204   : > { %832 = vmin.xlane.f32.xlu0 %v831_v3  ;;  %v2213_v3 = vld [vmem:[%s2883_s5] sm:$0xff] }
 0x208   : > { %v826_v5 = vpop.xlane.xlu2 %825 }
 0x209   : > { %vm828_vm7 = vcmp.ge.f32.partialorder %v820_v62, %v826_v5 }
 0x20a   : > { %v830_v6 = vsel %vm828_vm7, %v2502_v41, 16.0 }
 0x20b   : > { %v834_v7 = vsel %vm767_vm1, %v830_v6, inf }
 0x20c   : > { %835 = vmin.xlane.f32.xlu1 %v834_v7 }
 0x20f   : > { %v813_v40 = vpop.f32.mrf.mxu2 }
 0x217   : > { %v816_v44 = vpop.f32.mrf.mxu2 }
 0x277   : > { %v833_v8 = vpop.xlane.xlu0 %832 }
 0x278   : > { %vm837_vm8 = vcmp.eq.f32.partialorder %v2502_v41, %v833_v8 }
 0x279   : > { %v1927_v9 = vsel %vm837_vm8, 1.0, %v2339_v56  ;;  %v874_v10 = vsel %vm837_vm8, -inf, %v819_v58  ;;  %v2214_v58 = vld [vmem:[%s2883_s5 + $0x8] sm:$0xff] }
 0x27a   : > { %1929 = vmatmul.msk.f32.vlgmr.msra.gmra.mxu3 %vm767_vm1, %v1927_v9  ;;  %v876_v11 = vsel %vm767_vm1, %v874_v10, -inf }
 0x27b   : > { %877 = vmax.xlane.f32.xlu2 %v876_v11  ;;  %v2224_v11 = vld [vmem:[%s2885_s7 + $0x18] sm:$0xff] }
 0x27c   : > { %1141 = vmatpush.bf16.msrb.mxu3 %v2224_v11  ;;  %v2023_v11 = vld [vmem:[%s2889_s11 + $0x20] sm:$0xf] }
 0x27f   : > { %v836_v12 = vpop.xlane.xlu1 %835 }
 0x280   : > { %vm838_vm9 = vcmp.eq.f32.partialorder %v2502_v41, %v836_v12  ;;  %v2223_v12 = vld [vmem:[%s2885_s7 + $0x10] sm:$0xff] }
 0x281   : > { %v1928_v13 = vsel %vm838_vm9, 1.0, %v2339_v56  ;;  %v875_v14 = vsel %vm838_vm9, -inf, %v820_v62  ;;  %1142 = vmatpush.bf16.msrb.mxu3 %v2223_v12  ;;  %v2234_v12 = vld [vmem:[%s2889_s11 + $0x24] sm:$0xf0] }
 0x282   : > { %1930 = vmatmul.msk.f32.gmra.mxu3 %vm767_vm1, %v1928_v13  ;;  %v879_v15 = vsel %vm767_vm1, %v875_v14, -inf  ;;  %v2222_v13 = vld [vmem:[%s2885_s7 + $0x8] sm:$0xff] }
 0x283   : > { %880 = vmax.xlane.f32.xlu0 %v879_v15 }
 0x285   : > { %1143 = vmatpush.bf16.msrb.mxu3 %v2222_v13  ;;  %v2233_v13 = vld [vmem:[%s2889_s11 + $0x24] sm:$0xf] }
 0x2ee   : > { %v878_v16 = vpop.xlane.xlu2 %877 }
 0x2ef   : > { %vm882_vm10 = vcmp.ge.f32.partialorder %v874_v10, %v878_v16 }
 0x2f0   : > { %v884_v17 = vsel %vm882_vm10, %v2502_v41, 16.0 }
 0x2f1   : > { %v886_v18 = vsel %vm767_vm1, %v884_v17, inf }
 0x2f2   : > { %887 = vmin.xlane.f32.xlu1 %v886_v18 }
 0x2f6   : > { %v881_v19 = vpop.xlane.xlu0 %880 }
 0x2f7   : > { %vm883_vm11 = vcmp.ge.f32.partialorder %v875_v14, %v881_v19 }
 0x2f8   : > { %v885_v20 = vsel %vm883_vm11, %v2502_v41, 16.0 }
 0x2f9   : > { %v889_v21 = vsel %vm767_vm1, %v885_v20, inf }
 0x2fa   : > { %890 = vmin.xlane.f32.xlu2 %v889_v21 }
 0x2fd   : > { %v866_v45 = vpop.f32.mrf.mxu3 }
 0x2fe   : > { %v872_v52 = vmax.f32 %v813_v40, %v866_v45  ;;  %v2225_v40 = vld [vmem:[%s2887_s9] sm:$0xff] }
 0x305   : > { %v869_v51 = vpop.f32.mrf.mxu3 }
 0x365   : > { %v888_v22 = vpop.xlane.xlu1 %887 }
 0x366   : > { %vm892_vm12 = vcmp.eq.f32.partialorder %v2502_v41, %v888_v22 }
 0x367   : > { %v1931_v23 = vsel %vm892_vm12, 1.0, %v2339_v56  ;;  %v929_v24 = vsel %vm892_vm12, -inf, %v874_v10 }
 0x368   : > { %1933 = vmatmul.msk.f32.vlgmr.msra.gmra.mxu2 %vm767_vm1, %v1931_v23  ;;  %v931_v25 = vsel %vm767_vm1, %v929_v24, -inf }
 0x369   : > { %932 = vmax.xlane.f32.xlu0 %v931_v25 }
 0x36d   : > { %v891_v26 = vpop.xlane.xlu2 %890 }
 0x36e   : > { %vm893_vm13 = vcmp.eq.f32.partialorder %v2502_v41, %v891_v26 }
 0x36f   : > { %v1932_v27 = vsel %vm893_vm13, 1.0, %v2339_v56  ;;  %v930_v28 = vsel %vm893_vm13, -inf, %v875_v14 }
 0x370   : > { %1934 = vmatmul.msk.f32.gmra.mxu2 %vm767_vm1, %v1932_v27  ;;  %v934_v29 = vsel %vm767_vm1, %v930_v28, -inf }
 0x371   : > { %935 = vmax.xlane.f32.xlu1 %v934_v29 }
 0x3dc   : > { %v933_v30 = vpop.xlane.xlu0 %932 }
 0x3dd   : > { %vm937_vm14 = vcmp.ge.f32.partialorder %v929_v24, %v933_v30 }
 0x3de   : > { %v939_v31 = vsel %vm937_vm14, %v2502_v41, 16.0 }
 0x3df   : > { %v941_v32 = vsel %vm767_vm1, %v939_v31, inf }
 0x3e0   : > { %942 = vmin.xlane.f32.xlu2 %v941_v32 }
 0x3e4   : > { %v936_v33 = vpop.xlane.xlu1 %935 }
 0x3e5   : > { %vm938_vm15 = vcmp.ge.f32.partialorder %v930_v28, %v936_v33 }
 0x3e6   : > { %v940_v34 = vsel %vm938_vm15, %v2502_v41, 16.0 }
 0x3e7   : > { %v944_v35 = vsel %vm767_vm1, %v940_v34, inf }
 0x3e8   : > { %945 = vmin.xlane.f32.xlu0 %v944_v35 }
 0x3eb   : > { %v921_v47 = vpop.f32.mrf.mxu2 }
 0x3ec   : > { %v927_v57 = vmax.f32 %v872_v52, %v921_v47 }
 0x3f3   : > { %v924_v55 = vpop.f32.mrf.mxu2 }
 0x453   : > { %v943_v36 = vpop.xlane.xlu2 %942 }
 0x454   : > { %vm947_vm2 = vcmp.eq.f32.partialorder %v2502_v41, %v943_v36 }
 0x455   : > { %v1935_v37 = vsel %vm947_vm2, 1.0, %v2339_v56 }
 0x456   : > { %1937 = vmatmul.msk.f32.vlgmr.msrb.gmra.mxu0 %vm767_vm1, %v1935_v37  ;;  %v2228_v37 = vld [vmem:[%s2887_s9 + $0x18] sm:$0xff] }
 0x457   : > { %1213 = vmatpush.bf16.msrb.mxu2 %v2228_v37 }
 0x45b   : > { %v946_v38 = vpop.xlane.xlu0 %945 }
 0x45c   : > { %vm948_vm3 = vcmp.eq.f32.partialorder %v2502_v41, %v946_v38  ;;  %v2218_v41 = vld [vmem:[%s2883_s5 + $0x28] sm:$0xff]  ;;  %v2227_v38 = vld [vmem:[%s2887_s9 + $0x10] sm:$0xff] }
 0x45d   : > { %v1936_v39 = vsel %vm948_vm3, 1.0, %v2339_v56  ;;  %1067 = vmatpush.bf16.msrb.mxu1 %v2218_v41  ;;  %v873_v56 = vmax.f32 %v816_v44, %v869_v51  ;;  %1214 = vmatpush.bf16.msrb.mxu2 %v2227_v38 }
 0x45e   : > { %1938 = vmatmul.msk.f32.gmra.mxu0 %vm767_vm1, %v1936_v39  ;;  %v2226_v39 = vld [vmem:[%s2887_s9 + $0x8] sm:$0xff] }
 0x45f   : > { %v928_v59 = vmax.f32 %v873_v56, %v924_v55 }
 0x461   : > { %1068 = vmatpush.bf16.msrb.mxu1 %v2217_v46  ;;  %1215 = vmatpush.bf16.msrb.mxu2 %v2226_v39  ;;  %v2251_v39 = vld [vmem:[%s2891_s13 + $0x70] sm:$0xff] }
 0x465   : > { %1069 = vmatpush.bf16.msrb.mxu1 %v2216_v48  ;;  %1216 = vmatpush.bf16.msrb.mxu2 %v2225_v40  ;;  %v2241_v40 = vld [vmem:[%s2891_s13 + $0x20] sm:$0xff] }
 0x469   : > { %1070 = vmatpush.bf16.msrb.mxu1 %v2215_v50 }
 0x46d   : > { %1071 = vmatpush.bf16.msrb.mxu1 %v2214_v58 }
 0x471   : > { %1072 = vmatpush.bf16.msrb.mxu1 %v2213_v3 }
 0x4d3   : > { %v976_v49 = vpop.f32.mrf.mxu0 }
 0x4d4   : > { %v982_v60 = vmax.f32 %v927_v57, %v976_v49 }
 0x4d6   : > { %v984_v63 = vsub.f32 %v982_v60, %v2512_v53 }
 0x4db   : > { %v979_v61 = vpop.f32.mrf.mxu0 }
 0x4dc   : > { %v983_v62 = vmax.f32 %v928_v59, %v979_v61 }
 0x4de   : > { %v985_v0 = vsub.f32 %v983_v62, %v2515_v54 }
 0x4e0   : > { %v2287_v1 = vpack.i.bf16 %v985_v0, %v984_v63 }
 0x4e2   : > { %2288 = vrot.lane.b32.xlu1 %v2287_v1, %s2340_s28 }
 0x554   : > { %v2289_v5 = vpop.permute.xlu1 %2288 }
 0x555   : > { %v2291_v6 = vunpack.i.h.bf16 %v2289_v5  ;;  %v2290_v7 = vunpack.i.l.bf16 %v2289_v5  ;;  %v2031_v5 = vld [vmem:[%s2889_s11 + $0x30] sm:$0xf] }
 0x557   : > { %v994_v8 = vsel %vm643_vm0, %v2512_v53, %v2290_v7  ;;  %v995_v9 = vsel %vm643_vm0, %v2515_v54, %v2291_v6  ;;  %v2221_v53 = vld [vmem:[%s2885_s7] sm:$0xff]  ;;  %v2236_v6 = vld [vmem:[%s2889_s11 + $0x34] sm:$0xf0]  ;;  %v2235_v7 = vld [vmem:[%s2889_s11 + $0x34] sm:$0xf] }
 0x558   : > { %v996_v10 = vpack.c.bf16 %v995_v9, %v994_v8  ;;  %v2294_v54 = vld [vmem:[%s2884_s6] ss:$0 sm:$0xff]  ;;  %1144 = vmatpush.bf16.msrb.mxu3 %v2221_v53  ;;  %v2032_v8 = vor.u32 %v2236_v6, %v2031_v5  ;;  %v2033_v9 = vld [vmem:[%s2889_s11 + $0x38] sm:$0xf0]  ;;  %v2024_v53 = vor.u32 %v2234_v12, %v2023_v11 }
 0x55a   : > { %1073 = vmatmul.bf16.vlgmr.msrb.gmra.mxu1 %v996_v10  ;;  %v2036_v10 = vor.u32 %v2235_v7, %v2033_v9  ;;  %1289 = vmatpush.bf16.msra.mxu0 %v2032_v8 }
 0x55c   : > { %1303 = vmatpush.bf16.msra.mxu3 %v2036_v10 }
 0x55e   : > { %1290 = vmatpush.bf16.msra.mxu0 %v2024_v53 }
 0x5d7   : > { %v1074_v14 = vpop.f32.mrf.mxu1 }
 0x5d8   : > { %v1075_v15 = vadd.f32 %v2294_v54, %v1074_v14 }
 0x5da   : > { %v1081_v16 = vmul.f32 0.044715, %v1075_v15  ;;  %v1079_v31 = vmul.f32 0.5, %v1075_v15 }
 0x5dc   : > { %v1083_v17 = vmul.f32 %v1081_v16, %v1075_v15  ;;  %v2232_v16 = vld [vmem:[%s2889_s11 + $0x14] sm:$0xf0] }
 0x5de   : > { %v1085_v18 = vmul.f32 %v1083_v17, %v1075_v15  ;;  %v2231_v17 = vld [vmem:[%s2889_s11 + $0x14] sm:$0xf] }
 0x5df   : > { %v1076_v19 = vpop.f32.mrf.mxu1 }
 0x5e0   : > { %v1087_v20 = vadd.f32 %v1085_v18, %v1075_v15  ;;  %v1077_v21 = vadd.f32 %v2294_v54, %v1076_v19  ;;  %v2025_v54 = vld [vmem:[%s2889_s11 + $0x28] sm:$0xf0]  ;;  %v2015_v15 = vld [vmem:[%s2889_s11 + $0x10] sm:$0xf]  ;;  %v2017_v19 = vld [vmem:[%s2889_s11 + $0x18] sm:$0xf0] }
 0x5e1   : > { %v2028_v14 = vor.u32 %v2233_v13, %v2025_v54  ;;  %v2016_v18 = vor.u32 %v2232_v16, %v2015_v15 }
 0x5e2   : > { %v1082_v22 = vmul.f32 0.044715, %v1077_v21  ;;  %v1089_v23 = vmul.f32 0.7978846, %v1087_v20  ;;  %v1080_v32 = vmul.f32 0.5, %v1077_v21  ;;  %v2020_v20 = vor.u32 %v2231_v17, %v2017_v19 }
 0x5e3   : > { %1304 = vmatpush.bf16.msra.mxu3 %v2028_v14  ;;  %1291 = vmatpush.bf16.msra.mxu0 %v2016_v18 }
 0x5e4   : > { %v1084_v24 = vmul.f32 %v1082_v22, %v1077_v21  ;;  %2303 = vtanh.f32 %v1089_v23  ;;  %v2230_v22 = vld [vmem:[%s2889_s11 + $0x4] sm:$0xf0]  ;;  %v2229_v23 = vld [vmem:[%s2889_s11 + $0x4] sm:$0xf] }
 0x5e6   : > { %v1086_v25 = vmul.f32 %v1084_v24, %v1077_v21 }
 0x5e7   : > { %1305 = vmatpush.bf16.msra.mxu3 %v2020_v20 }
 0x5e8   : > { %v1088_v26 = vadd.f32 %v1086_v25, %v1077_v21  ;;  %v2007_v21 = vld [vmem:[%s2889_s11] sm:$0xf]  ;;  %v2009_v25 = vld [vmem:[%s2889_s11 + $0x8] sm:$0xf0] }
 0x5e9   : > { %v2008_v24 = vor.u32 %v2230_v22, %v2007_v21 }
 0x5ea   : > { %v1090_v27 = vmul.f32 0.7978846, %v1088_v26  ;;  %v2304_v28 = vpop.eup %2303  ;;  %v2012_v26 = vor.u32 %v2229_v23, %v2009_v25 }
 0x5eb   : > { %v1093_v29 = vadd.f32 1.0, %v2304_v28  ;;  %1292 = vmatpush.bf16.msra.mxu0 %v2008_v24  ;;  %v2296_v28 = vld [vmem:[%s2888_s10] ss:$0 sm:$0xff] }
 0x5ec   : > { %2305 = vtanh.f32 %v1090_v27  ;;  %1306 = vmatpush.bf16.msra.mxu3 %v2012_v26 }
 0x5ed   : > { %v2612_v34 = vmul.f32 %v1093_v29, %v1079_v31 }
 0x5f2   : > { %v2306_v30 = vpop.eup %2305 }
 0x5f3   : > { %v1094_v33 = vadd.f32 1.0, %v2306_v30 }
 0x5f5   : > { %v2614_v35 = vmul.f32 %v1094_v33, %v1080_v32 }
 0x5f7   : > { %v1097_v36 = vpack.c.bf16 %v2614_v35, %v2612_v34 }
 0x5f9   : > { %1987 = vmatmul.msk.bf16.vlgmr.msrb.gmra.mxu3 %vm643_vm0, %v1097_v36 }
 0x67c   : > { %v1146_v43 = vpop.f32.mrf.mxu3 }
 0x67d   : > { %v1147_v44 = vadd.f32 %v2295_v42, %v1146_v43  ;;  %v2240_v43 = vld [vmem:[%s2891_s13 + $0x18] sm:$0xff] }
 0x67f   : > { %v1153_v41 = vmul.f32 0.044715, %v1147_v44  ;;  %v1151_v61 = vmul.f32 0.5, %v1147_v44 }
 0x681   : > { %v1155_v45 = vmul.f32 %v1153_v41, %v1147_v44  ;;  %v2239_v41 = vld [vmem:[%s2891_s13 + $0x10] sm:$0xff] }
 0x683   : > { %v1157_v46 = vmul.f32 %v1155_v45, %v1147_v44  ;;  %v2248_v45 = vld [vmem:[%s2891_s13 + $0x58] sm:$0xff] }
 0x684   : > { %v1148_v47 = vpop.f32.mrf.mxu3 }
 0x685   : > { %v1159_v48 = vadd.f32 %v1157_v46, %v1147_v44  ;;  %v1149_v49 = vadd.f32 %v2295_v42, %v1148_v47  ;;  %v2250_v42 = vld [vmem:[%s2891_s13 + $0x68] sm:$0xff]  ;;  %v2249_v44 = vld [vmem:[%s2891_s13 + $0x60] sm:$0xff]  ;;  %v2247_v47 = vld [vmem:[%s2891_s13 + $0x50] sm:$0xff] }
 0x686   : > { %v2238_v46 = vld [vmem:[%s2891_s13 + $0x8] sm:$0xff] }
 0x687   : > { %v1154_v50 = vmul.f32 0.044715, %v1149_v49  ;;  %v1161_v51 = vmul.f32 0.7978846, %v1159_v48  ;;  %v1152_v62 = vmul.f32 0.5, %v1149_v49 }
 0x688   : > { %v1236_v48 = vld [vmem:[%s2890_s12] sm:$0x3] }
 0x689   : > { %v1156_v52 = vmul.f32 %v1154_v50, %v1149_v49  ;;  %2307 = vtanh.f32 %v1161_v51  ;;  %v1238_v50 = vperm.slane %v1236_v48, 0  ;;  %v2246_v51 = vld [vmem:[%s2891_s13 + $0x48] sm:$0xff] }
 0x68b   : > { %v1158_v55 = vmul.f32 %v1156_v52, %v1149_v49 }
 0x68d   : > { %v1160_v56 = vadd.f32 %v1158_v55, %v1149_v49  ;;  %v2237_v49 = vld [vmem:[%s2891_s13] sm:$0xff] }
 0x68f   : > { %v1162_v57 = vmul.f32 0.7978846, %v1160_v56  ;;  %v2308_v58 = vpop.eup %2307  ;;  %v2245_v56 = vld [vmem:[%s2891_s13 + $0x40] sm:$0xff] }
 0x690   : > { %v1165_v59 = vadd.f32 1.0, %v2308_v58  ;;  %v1239_v58 = vperm.slane %v1236_v48, 1  ;;  %v2258_v48 = vld [vmem:[%s2893_s15 + $0x24] sm:$0xf0] }
 0x691   : > { %2309 = vtanh.f32 %v1162_v57 }
 0x692   : > { %v1167_v0 = vmul.f32 %v1165_v59, %v1151_v61 }
 0x697   : > { %v2310_v60 = vpop.eup %2309 }
 0x698   : > { %v1166_v63 = vadd.f32 1.0, %v2310_v60 }
 0x69a   : > { %v1168_v1 = vmul.f32 %v1166_v63, %v1152_v62 }
 0x69c   : > { %v1169_v3 = vpack.c.bf16 %v1168_v1, %v1167_v0 }
 0x69e   : > { %2004 = vmatmul.msk.bf16.vlgmr.msrb.gmra.mxu2 %vm643_vm0, %v1169_v3 }
 0x721   : > { %v1218_v27 = vpop.f32.mrf.mxu2 }
 0x722   : > { %v1219_v29 = vadd.f32 %v2296_v28, %v1218_v27 }
 0x724   : > { %v1223_v31 = vadd.f32 %v1219_v29, %v2612_v34  ;;  %v2244_v34 = vld [vmem:[%s2891_s13 + $0x38] sm:$0xff] }
 0x725   : > { %1483 = vmatpush.bf16.msra.mxu2 %v2244_v34 }
 0x726   : > { %v2689_v36 = vadd.f32 %v1223_v31, %v2470_v4  ;;  %v2243_v4 = vld [vmem:[%s2891_s13 + $0x30] sm:$0xff] }
 0x729   : > { %v1220_v30 = vpop.f32.mrf.mxu2  ;;  %1484 = vmatpush.bf16.msra.mxu2 %v2243_v4 }
 0x72a   : > { %v1221_v32 = vadd.f32 %v2296_v28, %v1220_v30 }
 0x72c   : > { %v1224_v33 = vadd.f32 %v1221_v32, %v2614_v35  ;;  %v2242_v35 = vld [vmem:[%s2891_s13 + $0x28] sm:$0xff] }
 0x72d   : > { %1485 = vmatpush.bf16.msra.mxu2 %v2242_v35  ;;  %v2259_v35 = vld [vmem:[%s2893_s15 + $0x34] sm:$0xf] }
 0x72e   : > { %v2692_v37 = vadd.f32 %v1224_v33, %v2463_v2  ;;  %v2252_v2 = vld [vmem:[%s2891_s13 + $0x78] sm:$0xff] }
 0x72f   : > { %1497 = vmatpush.bf16.msrb.mxu0 %v2252_v2 }
 0x730   : > { %v1227_v38 = vpack.c.bf16 %v2692_v37, %v2689_v36 }
 0x731   : > { %1486 = vmatpush.bf16.msra.mxu2 %v2241_v40  ;;  %v2129_v40 = vld [vmem:[%s2893_s15 + $0x30] sm:$0xf] }
 0x732   : > { %2037 = vmatmul.msk.bf16.vlgmr.msra.gmra.mxu0 %vm643_vm0, %v1227_v38  ;;  %2038 = vmatmul.msk.bf16.vlgmr.msra.gmra.mxu3 %vm643_vm0, %v1227_v38 }
 0x733   : > { %1498 = vmatpush.bf16.msrb.mxu0 %v2251_v39  ;;  %v2131_v39 = vld [vmem:[%s2893_s15 + $0x38] sm:$0xf0] }
 0x735   : > { %1487 = vmatpush.bf16.msra.mxu2 %v2240_v43  ;;  %v2260_v43 = vld [vmem:[%s2893_s15 + $0x34] sm:$0xf0] }
 0x737   : > { %1499 = vmatpush.bf16.msrb.mxu0 %v2250_v42  ;;  %v2134_v42 = vor.u32 %v2259_v35, %v2131_v39  ;;  %v2273_v35 = vld [vmem:[%s2895_s17 + $0x60] sm:$0xff]  ;;  %v2263_v39 = vld [vmem:[%s2895_s17 + $0x10] sm:$0xff] }
 0x739   : > { %1488 = vmatpush.bf16.msra.mxu2 %v2239_v41  ;;  %1607 = vmatpush.bf16.msrb.mxu3 %v2134_v42  ;;  %v2257_v41 = vld [vmem:[%s2893_s15 + $0x24] sm:$0xf]  ;;  %v2262_v42 = vld [vmem:[%s2895_s17 + $0x8] sm:$0xff] }
 0x73b   : > { %1500 = vmatpush.bf16.msrb.mxu0 %v2249_v44  ;;  %v2130_v44 = vor.u32 %v2260_v43, %v2129_v40  ;;  %v2272_v40 = vld [vmem:[%s2895_s17 + $0x58] sm:$0xff]  ;;  %v2271_v43 = vld [vmem:[%s2895_s17 + $0x50] sm:$0xff] }
 0x73d   : > { %1489 = vmatpush.bf16.msra.mxu2 %v2238_v46  ;;  %1593 = vmatpush.bf16.msra.mxu1 %v2130_v44  ;;  %v2121_v46 = vld [vmem:[%s2893_s15 + $0x20] sm:$0xf] }
 0x73e   : > { %v1540_v44 = vld [vmem:[%s2894_s16] sm:$0x3] }
 0x73f   : > { %1501 = vmatpush.bf16.msrb.mxu0 %v2248_v45  ;;  %v2123_v45 = vld [vmem:[%s2893_s15 + $0x28] sm:$0xf0] }
 0x741   : > { %1490 = vmatpush.bf16.msra.mxu2 %v2237_v49  ;;  %v2255_v49 = vld [vmem:[%s2893_s15 + $0x14] sm:$0xf] }
 0x743   : > { %1502 = vmatpush.bf16.msrb.mxu0 %v2247_v47  ;;  %v2126_v47 = vor.u32 %v2257_v41, %v2123_v45  ;;  %v2261_v41 = vld [vmem:[%s2895_s17] sm:$0xff]  ;;  %v1542_v45 = vperm.slane %v1540_v44, 0 }
 0x745   : > { %1608 = vmatpush.bf16.msrb.mxu3 %v2126_v47 }
 0x747   : > { %1503 = vmatpush.bf16.msrb.mxu0 %v2246_v51  ;;  %v2122_v51 = vor.u32 %v2258_v48, %v2121_v46  ;;  %v2270_v46 = vld [vmem:[%s2895_s17 + $0x48] sm:$0xff] }
 0x749   : > { %1594 = vmatpush.bf16.msra.mxu1 %v2122_v51  ;;  %v1543_v51 = vperm.slane %v1540_v44, 1 }
 0x74b   : > { %1504 = vmatpush.bf16.msrb.mxu0 %v2245_v56 }
 0x7af   : > { %v1294_v52 = vpop.f32.mrf.mxu0 }
 0x7b0   : > { %v1295_v55 = vadd.f32 %v1294_v52, %v1238_v50  ;;  %v2113_v52 = vld [vmem:[%s2893_s15 + $0x10] sm:$0xf] }
 0x7b2   : > { %v1317_v57 = vmul.f32 0.044715, %v1295_v55  ;;  %v1313_v23 = vmul.f32 0.5, %v1295_v55 }
 0x7b4   : > { %v1321_v59 = vmul.f32 %v1317_v57, %v1295_v55 }
 0x7b5   : > { %v1308_v60 = vpop.f32.mrf.mxu3 }
 0x7b6   : > { %v1325_v61 = vmul.f32 %v1321_v59, %v1295_v55  ;;  %v1309_v62 = vadd.f32 %v1308_v60, %v1239_v58  ;;  %v2107_v59 = vld [vmem:[%s2893_s15 + $0x8] sm:$0xf0]  ;;  %v2297_v60 = vld [vmem:[%s2892_s14] ss:$0 sm:$0xff] }
 0x7b7   : > { %v1296_v63 = vpop.f32.mrf.mxu0 }
 0x7b8   : > { %v1329_v0 = vadd.f32 %v1325_v61, %v1295_v55  ;;  %v1318_v1 = vmul.f32 0.044715, %v1309_v62  ;;  %v1297_v3 = vadd.f32 %v1296_v63, %v1238_v50  ;;  %v1314_v32 = vmul.f32 0.5, %v1309_v62  ;;  %v2115_v50 = vld [vmem:[%s2893_s15 + $0x18] sm:$0xf0] }
 0x7b9   : > { %v2256_v55 = vld [vmem:[%s2893_s15 + $0x14] sm:$0xf0]  ;;  %v2118_v56 = vor.u32 %v2255_v49, %v2115_v50  ;;  %v2105_v61 = vld [vmem:[%s2893_s15] sm:$0xf] }
 0x7ba   : > { %v1322_v5 = vmul.f32 %v1318_v1, %v1309_v62  ;;  %v1319_v6 = vmul.f32 0.044715, %v1297_v3  ;;  %v1333_v7 = vmul.f32 0.7978846, %v1329_v0  ;;  %v1315_v24 = vmul.f32 0.5, %v1297_v3  ;;  %v2269_v49 = vld [vmem:[%s2895_s17 + $0x40] sm:$0xff] }
 0x7bb   : > { %v2114_v57 = vor.u32 %v2256_v55, %v2113_v52  ;;  %1609 = vmatpush.bf16.msrb.mxu3 %v2118_v56 }
 0x7bc   : > { %v1326_v8 = vmul.f32 %v1322_v5, %v1309_v62  ;;  %v1323_v9 = vmul.f32 %v1319_v6, %v1297_v3  ;;  %2311 = vtanh.f32 %v1333_v7 }
 0x7bd   : > { %v1310_v10 = vpop.f32.mrf.mxu3  ;;  %1595 = vmatpush.bf16.msra.mxu1 %v2114_v57 }
 0x7be   : > { %v1330_v11 = vadd.f32 %v1326_v8, %v1309_v62  ;;  %v1327_v12 = vmul.f32 %v1323_v9, %v1297_v3  ;;  %v1311_v13 = vadd.f32 %v1310_v10, %v1239_v58  ;;  %v2253_v58 = vld [vmem:[%s2893_s15 + $0x4] sm:$0xf]  ;;  %v2254_v62 = vld [vmem:[%s2893_s15 + $0x4] sm:$0xf0] }
 0x7bf   : > { %v2110_v63 = vor.u32 %v2253_v58, %v2107_v59 }
 0x7c0   : > { %v1331_v53 = vadd.f32 %v1327_v12, %v1297_v3  ;;  %v1320_v54 = vmul.f32 0.044715, %v1311_v13  ;;  %v1334_v14 = vmul.f32 0.7978846, %v1330_v11  ;;  %v1316_v33 = vmul.f32 0.5, %v1311_v13 }
 0x7c1   : > { %v2106_v3 = vor.u32 %v2254_v62, %v2105_v61  ;;  %1610 = vmatpush.bf16.msrb.mxu3 %v2110_v63 }
 0x7c2   : > { %v1335_v15 = vmul.f32 0.7978846, %v1331_v53  ;;  %v1324_v16 = vmul.f32 %v1320_v54, %v1311_v13  ;;  %v2312_v18 = vpop.eup %2311 }
 0x7c3   : > { %v1341_v21 = vadd.f32 1.0, %v2312_v18  ;;  %1596 = vmatpush.bf16.msra.mxu1 %v2106_v3 }
 0x7c4   : > { %v1328_v17 = vmul.f32 %v1324_v16, %v1311_v13  ;;  %2313 = vtanh.f32 %v1335_v15 }
 0x7c5   : > { %2315 = vtanh.f32 %v1334_v14  ;;  %v1345_v27 = vmul.f32 %v1341_v21, %v1313_v23 }
 0x7c6   : > { %v1332_v19 = vadd.f32 %v1328_v17, %v1311_v13 }
 0x7c8   : > { %v1336_v20 = vmul.f32 0.7978846, %v1332_v19 }
 0x7ca   : > { %v2314_v22 = vpop.eup %2313  ;;  %2317 = vtanh.f32 %v1336_v20 }
 0x7cb   : > { %v1343_v25 = vadd.f32 1.0, %v2314_v22  ;;  %v2316_v26 = vpop.eup %2315 }
 0x7cc   : > { %v1342_v30 = vadd.f32 1.0, %v2316_v26 }
 0x7cd   : > { %v1347_v28 = vmul.f32 %v1343_v25, %v1315_v24 }
 0x7ce   : > { %v1346_v34 = vmul.f32 %v1342_v30, %v1314_v32  ;;  %v2268_v30 = vld [vmem:[%s2895_s17 + $0x38] sm:$0xff] }
 0x7cf   : > { %v1349_v29 = vpack.c.bf16 %v1347_v28, %v1345_v27  ;;  %1787 = vmatpush.bf16.msrb.mxu1 %v2268_v30  ;;  %v2276_v32 = vld [vmem:[%s2895_s17 + $0x78] sm:$0xff] }
 0x7d0   : > { %v2318_v31 = vpop.eup %2317  ;;  %1801 = vmatpush.bf16.msra.mxu3 %v2276_v32 }
 0x7d1   : > { %1491 = vmatmul.bf16.vlgmr.msra.gmra.mxu2 %v1349_v29  ;;  %v1344_v38 = vadd.f32 1.0, %v2318_v31  ;;  %v2267_v31 = vld [vmem:[%s2895_s17 + $0x30] sm:$0xff] }
 0x7d3   : > { %v1348_v4 = vmul.f32 %v1344_v38, %v1316_v33  ;;  %1788 = vmatpush.bf16.msrb.mxu1 %v2267_v31  ;;  %v2266_v33 = vld [vmem:[%s2895_s17 + $0x28] sm:$0xff]  ;;  %v2275_v38 = vld [vmem:[%s2895_s17 + $0x70] sm:$0xff] }
 0x7d4   : > { %1802 = vmatpush.bf16.msra.mxu3 %v2275_v38 }
 0x7d5   : > { %v1350_v2 = vpack.c.bf16 %v1348_v4, %v1346_v34  ;;  %v2265_v34 = vld [vmem:[%s2895_s17 + $0x20] sm:$0xff]  ;;  %v2274_v4 = vld [vmem:[%s2895_s17 + $0x68] sm:$0xff] }
 0x7d7   : > { %1505 = vmatmul.bf16.vlgmr.msrb.gmra.mxu0 %v1350_v2  ;;  %1789 = vmatpush.bf16.msrb.mxu1 %v2266_v33  ;;  %v2264_v2 = vld [vmem:[%s2895_s17 + $0x18] sm:$0xff] }
 0x7d8   : > { %1803 = vmatpush.bf16.msra.mxu3 %v2274_v4  ;;  %v2298_v4 = vld [vmem:[%s2896_s18] ss:$0 sm:$0xff] }
 0x7db   : > { %1790 = vmatpush.bf16.msrb.mxu1 %v2265_v34 }
 0x7dc   : > { %1804 = vmatpush.bf16.msra.mxu3 %v2273_v35 }
 0x7df   : > { %1791 = vmatpush.bf16.msrb.mxu1 %v2264_v2 }
 0x7e0   : > { %1805 = vmatpush.bf16.msra.mxu3 %v2272_v40 }
 0x7e3   : > { %1792 = vmatpush.bf16.msrb.mxu1 %v2263_v39 }
 0x7e4   : > { %1806 = vmatpush.bf16.msra.mxu3 %v2271_v43 }
 0x7e7   : > { %1793 = vmatpush.bf16.msrb.mxu1 %v2262_v42 }
 0x7e8   : > { %1807 = vmatpush.bf16.msra.mxu3 %v2270_v46 }
 0x7eb   : > { %1794 = vmatpush.bf16.msrb.mxu1 %v2261_v41 }
 0x7ec   : > { %1808 = vmatpush.bf16.msra.mxu3 %v2269_v49 }
 0x854   : > { %v1492_v0 = vpop.f32.mrf.mxu2  ;;  %v1506_v1 = vpop.f32.mrf.mxu0 }
 0x855   : > { %v1493_v5 = vadd.f32 %v2297_v60, %v1492_v0 }
 0x857   : > { %v1507_v6 = vadd.f32 %v1506_v1, %v1493_v5 }
 0x859   : > { %v1511_v7 = vadd.f32 %v1507_v6, %v2689_v36 }
 0x85b   : > { %v1515_v8 = vmul.f32 0.044715, %v1511_v7  ;;  %v1513_v24 = vmul.f32 0.5, %v1511_v7 }
 0x85c   : > { %v1494_v9 = vpop.f32.mrf.mxu2  ;;  %v1508_v12 = vpop.f32.mrf.mxu0 }
 0x85d   : > { %v1517_v10 = vmul.f32 %v1515_v8, %v1511_v7  ;;  %v1495_v11 = vadd.f32 %v2297_v60, %v1494_v9 }
 0x85f   : > { %v1519_v13 = vmul.f32 %v1517_v10, %v1511_v7  ;;  %v1509_v53 = vadd.f32 %v1508_v12, %v1495_v11 }
 0x861   : > { %v1521_v54 = vadd.f32 %v1519_v13, %v1511_v7  ;;  %v1512_v14 = vadd.f32 %v1509_v53, %v2692_v37 }
 0x863   : > { %v1516_v15 = vmul.f32 0.044715, %v1512_v14  ;;  %v1523_v16 = vmul.f32 0.7978846, %v1521_v54  ;;  %v1514_v25 = vmul.f32 0.5, %v1512_v14 }
 0x865   : > { %v1518_v17 = vmul.f32 %v1516_v15, %v1512_v14  ;;  %2319 = vtanh.f32 %v1523_v16 }
 0x867   : > { %v1520_v18 = vmul.f32 %v1518_v17, %v1512_v14 }
 0x869   : > { %v1522_v19 = vadd.f32 %v1520_v18, %v1512_v14 }
 0x86b   : > { %v1524_v20 = vmul.f32 0.7978846, %v1522_v19  ;;  %v2320_v21 = vpop.eup %2319 }
 0x86c   : > { %v1527_v22 = vadd.f32 1.0, %v2320_v21 }
 0x86d   : > { %2321 = vtanh.f32 %v1524_v20 }
 0x86e   : > { %v2802_v27 = vmul.f32 %v1527_v22, %v1513_v24 }
 0x873   : > { %v2322_v23 = vpop.eup %2321 }
 0x874   : > { %v1528_v26 = vadd.f32 1.0, %v2322_v23 }
 0x876   : > { %v2804_v28 = vmul.f32 %v1528_v26, %v1514_v25 }
 0x878   : > { %v1531_v29 = vpack.c.bf16 %v2804_v28, %v2802_v27 }
 0x87a   : > { %2135 = vmatmul.msk.bf16.vlgmr.msra.gmra.mxu1 %vm643_vm0, %v1531_v29  ;;  %2136 = vmatmul.msk.bf16.vlgmr.msrb.gmra.mxu3 %vm643_vm0, %v1531_v29 }
 0x8f7   : > { %v1598_v47 = vpop.f32.mrf.mxu1 }
 0x8f8   : > { %v1599_v48 = vadd.f32 %v1598_v47, %v1542_v45 }
 0x8fa   : > { %v1621_v50 = vmul.f32 0.044715, %v1599_v48  ;;  %v1617_v18 = vmul.f32 0.5, %v1599_v48 }
 0x8fc   : > { %v1625_v52 = vmul.f32 %v1621_v50, %v1599_v48 }
 0x8fd   : > { %v1612_v55 = vpop.f32.mrf.mxu3 }
 0x8fe   : > { %v1629_v56 = vmul.f32 %v1625_v52, %v1599_v48  ;;  %v1613_v57 = vadd.f32 %v1612_v55, %v1543_v51 }
 0x8ff   : > { %v1600_v58 = vpop.f32.mrf.mxu1 }
 0x900   : > { %v1633_v59 = vadd.f32 %v1629_v56, %v1599_v48  ;;  %v1622_v60 = vmul.f32 0.044715, %v1613_v57  ;;  %v1601_v61 = vadd.f32 %v1600_v58, %v1542_v45  ;;  %v1618_v29 = vmul.f32 0.5, %v1613_v57 }
 0x902   : > { %v1626_v62 = vmul.f32 %v1622_v60, %v1613_v57  ;;  %v1623_v63 = vmul.f32 0.044715, %v1601_v61  ;;  %v1637_v0 = vmul.f32 0.7978846, %v1633_v59  ;;  %v1619_v19 = vmul.f32 0.5, %v1601_v61 }
 0x904   : > { %v1630_v1 = vmul.f32 %v1626_v62, %v1613_v57  ;;  %v1627_v3 = vmul.f32 %v1623_v63, %v1601_v61  ;;  %2323 = vtanh.f32 %v1637_v0 }
 0x905   : > { %v1614_v5 = vpop.f32.mrf.mxu3 }
 0x906   : > { %v1634_v6 = vadd.f32 %v1630_v1, %v1613_v57  ;;  %v1631_v7 = vmul.f32 %v1627_v3, %v1601_v61  ;;  %v1615_v8 = vadd.f32 %v1614_v5, %v1543_v51 }
 0x908   : > { %v1635_v9 = vadd.f32 %v1631_v7, %v1601_v61  ;;  %v1624_v10 = vmul.f32 0.044715, %v1615_v8  ;;  %v1638_v11 = vmul.f32 0.7978846, %v1634_v6  ;;  %v1620_v30 = vmul.f32 0.5, %v1615_v8 }
 0x90a   : > { %v1639_v12 = vmul.f32 0.7978846, %v1635_v9  ;;  %v1628_v13 = vmul.f32 %v1624_v10, %v1615_v8  ;;  %v2324_v54 = vpop.eup %2323 }
 0x90b   : > { %v1645_v16 = vadd.f32 1.0, %v2324_v54 }
 0x90c   : > { %v1632_v53 = vmul.f32 %v1628_v13, %v1615_v8  ;;  %2325 = vtanh.f32 %v1639_v12 }
 0x90d   : > { %2327 = vtanh.f32 %v1638_v11  ;;  %v1649_v22 = vmul.f32 %v1645_v16, %v1617_v18 }
 0x90e   : > { %v1636_v14 = vadd.f32 %v1632_v53, %v1615_v8 }
 0x910   : > { %v1640_v15 = vmul.f32 0.7978846, %v1636_v14 }
 0x912   : > { %v2326_v17 = vpop.eup %2325  ;;  %2329 = vtanh.f32 %v1640_v15 }
 0x913   : > { %v1647_v20 = vadd.f32 1.0, %v2326_v17  ;;  %v2328_v21 = vpop.eup %2327 }
 0x914   : > { %v1646_v25 = vadd.f32 1.0, %v2328_v21 }
 0x915   : > { %v1651_v23 = vmul.f32 %v1647_v20, %v1619_v19 }
 0x916   : > { %v1650_v32 = vmul.f32 %v1646_v25, %v1618_v29 }
 0x917   : > { %v1653_v24 = vpack.c.bf16 %v1651_v23, %v1649_v22 }
 0x918   : > { %v2330_v26 = vpop.eup %2329 }
 0x919   : > { %1795 = vmatmul.bf16.vlgmr.msrb.gmra.mxu1 %v1653_v24  ;;  %v1648_v31 = vadd.f32 1.0, %v2330_v26 }
 0x91b   : > { %v1652_v33 = vmul.f32 %v1648_v31, %v1620_v30 }
 0x91d   : > { %v1654_v38 = vpack.c.bf16 %v1652_v33, %v1650_v32 }
 0x91f   : > { %1809 = vmatmul.bf16.vlgmr.msra.gmra.mxu3 %v1654_v38 }
 0x996   : > { %v1796_v34 = vpop.f32.mrf.mxu1 }
 0x997   : > { %v1797_v2 = vadd.f32 %v2298_v4, %v1796_v34 }
 0x99e   : > { %v1798_v42 = vpop.f32.mrf.mxu1 }
 0x99f   : > { %v1799_v44 = vadd.f32 %v2298_v4, %v1798_v42 }
 0x9a2   : > { %v1810_v35 = vpop.f32.mrf.mxu3 }
 0x9a3   : > { %v1811_v39 = vadd.f32 %v1810_v35, %v1797_v2 }
 0x9a5   : > { %v1815_v40 = vadd.f32 %v1811_v39, %v2802_v27 }
 0x9a7   : > { %v1817_v43 = vadd.f32 %v1815_v40, %v2689_v36 }
 0x9a9   : > { %1819 = vst.msk [vmem:[%s602_s26] sm:$0xff] %vm643_vm0, %v1817_v43 }
 0x9aa   : > { %v1812_v41 = vpop.f32.mrf.mxu3 }
 0x9ab   : > { %v1813_v45 = vadd.f32 %v1812_v41, %v1799_v44 }
 0x9ad   : > { %v1816_v46 = vadd.f32 %v1813_v45, %v2804_v28 }
 0x9af   : > { %v1818_v47 = vadd.f32 %v1816_v46, %v2692_v37 }
 0x9b1   : > { %1820 = vst.msk [vmem:[%s602_s26 + $0x8] sm:$0xff] %vm643_vm0, %v1818_v47 }
 0x9b2 PF: > { %s29_s0 = sadd.s32 1, %s2337_s0  }
 0x9b3   : > { %p26_p4 = scmp.ge.s32.totalorder %s29_s0, 4  }
 0x9b5   :  { %28 = sbr.rel (!%p26_p4) target bundleno = 5 (0x5), region = 126 }

</bundles_post_ra>
